<compile_context>
chip_gen: v7x
topology: tpu7x:2x2x1
jax: 0.10.0
libtpu: 0.0.40
codegen_flags: <defaults>
</compile_context>

<pallas_src>
import math
from functools import partial

import jax
import jax.numpy as jnp
from jax.experimental import pallas as pl
from jax.experimental.pallas import tpu as pltpu


# ---------------------------------------------------------------------------
# Helpers
# ---------------------------------------------------------------------------

def _round_up(x, m):
    return ((x + m - 1) // m) * m


_TILES = None


def _get_tiles():
    """Per-generation tile table (v5e prefers 128-wide tiles; v6e/v7x 256-wide)."""
    global _TILES
    if _TILES is None:
        try:
            kind = jax.devices()[0].device_kind.lower()
        except Exception:
            kind = ""
        if "v5 lite" in kind or "v5e" in kind or "v5litepod" in kind:
            _TILES = dict(tm=128, tn=128, tk=256, tseq=128, tl=128)
        else:
            _TILES = dict(tm=256, tn=256, tk=512, tseq=256, tl=256)
    return _TILES


def gelu_tanh(x):
    c = math.sqrt(2.0 / math.pi)
    return 0.5 * x * (1.0 + jnp.tanh(c * (x + 0.044715 * x ** 3)))


def silu(x):
    return x * jax.nn.sigmoid(x)


# ---------------------------------------------------------------------------
# Pallas kernel: tiled linear (bf16 in, f32 accumulate) with fused activations
# ---------------------------------------------------------------------------

def _linear_kernel(x_ref, w_ref, b_ref, o_ref, acc_ref, *, in_act, out_act):
    @pl.when(pl.program_id(2) == 0)
    def _():
        acc_ref[...] = jnp.zeros_like(acc_ref)

    x = x_ref[...]
    if in_act == "silu":
        # SiLU fused on the input tile (recomputed per N-tile; only used on tiny M).
        xf = x.astype(jnp.float32)
        x = (xf * jax.nn.sigmoid(xf)).astype(jnp.bfloat16)

    acc_ref[...] += jnp.dot(x, w_ref[...], preferred_element_type=jnp.float32)

    @pl.when(pl.program_id(2) == pl.num_programs(2) - 1)
    def _():
        y = acc_ref[...] + b_ref[...]
        if out_act == "gelu":
            y = gelu_tanh(y)
        elif out_act == "silu":
            y = y * jax.nn.sigmoid(y)
        o_ref[...] = y.astype(o_ref.dtype)


def linear_pallas(x, w, b, in_act=None, out_act=None, out_dtype=jnp.float32):
    """y = act_out(act_in(x) @ w + b) ; x: (..., K), w: (K, N) bf16, b: (N,) f32."""
    orig_shape = x.shape
    K = orig_shape[-1]
    N = w.shape[-1]
    x2 = x.reshape(-1, K).astype(jnp.bfloat16)
    M = x2.shape[0]

    t = _get_tiles()
    tm = t["tm"] if M >= t["tm"] else _round_up(M, 8)
    tn = t["tn"] if N >= t["tn"] else _round_up(N, 128)
    tk = t["tk"] if K >= t["tk"] else _round_up(K, 128)
    Mp, Np, Kp = _round_up(M, tm), _round_up(N, tn), _round_up(K, tk)

    wb = w.astype(jnp.bfloat16)
    bb = b.astype(jnp.float32).reshape(1, N)
    if (Mp, Kp) != (M, K):
        x2 = jnp.pad(x2, ((0, Mp - M), (0, Kp - K)))
    if (Kp, Np) != (K, N):
        wb = jnp.pad(wb, ((0, Kp - K), (0, Np - N)))
    if Np != N:
        bb = jnp.pad(bb, ((0, 0), (0, Np - N)))

    out = pl.pallas_call(
        partial(_linear_kernel, in_act=in_act, out_act=out_act),
        out_shape=jax.ShapeDtypeStruct((Mp, Np), out_dtype),
        grid=(Mp // tm, Np // tn, Kp // tk),
        in_specs=[
            pl.BlockSpec((tm, tk), lambda i, j, k: (i, k)),
            pl.BlockSpec((tk, tn), lambda i, j, k: (k, j)),
            pl.BlockSpec((1, tn), lambda i, j, k: (0, j)),
        ],
        out_specs=pl.BlockSpec((tm, tn), lambda i, j, k: (i, j)),
        scratch_shapes=[pltpu.VMEM((tm, tn), jnp.float32)],
        compiler_params=pltpu.CompilerParams(
            dimension_semantics=("parallel", "parallel", "arbitrary")),
    )(x2, wb, bb)

    out = out[:M, :N]
    return out.reshape(*orig_shape[:-1], N)


# ---------------------------------------------------------------------------
# Pallas kernel: flash attention (online softmax, tiled over q and kv)
# ---------------------------------------------------------------------------

def _flash_attn_kernel(q_ref, k_ref, v_ref, o_ref, m_ref, l_ref, acc_ref,
                       *, scale, kv_len, need_mask):
    kv = pl.program_id(2)

    @pl.when(kv == 0)
    def _():
        m_ref[...] = jnp.full_like(m_ref, -1e30)
        l_ref[...] = jnp.zeros_like(l_ref)
        acc_ref[...] = jnp.zeros_like(acc_ref)

    q = q_ref[0]  # (tq, D) bf16
    k = k_ref[0]  # (tk, D) bf16
    v = v_ref[0]  # (tk, D) bf16

    s = jax.lax.dot_general(q, k, (((1,), (1,)), ((), ())),
                            preferred_element_type=jnp.float32) * scale
    if need_mask:
        tkv = k.shape[0]
        col = kv * tkv + jax.lax.broadcasted_iota(jnp.int32, s.shape, 1)
        s = jnp.where(col < kv_len, s, -1e30)

    m_prev = m_ref[...]
    m_new = jnp.maximum(m_prev, jnp.max(s, axis=-1, keepdims=True))
    alpha = jnp.exp(m_prev - m_new)
    p = jnp.exp(s - m_new)
    l_ref[...] = alpha * l_ref[...] + jnp.sum(p, axis=-1, keepdims=True)
    acc_ref[...] = alpha * acc_ref[...] + jnp.dot(
        p.astype(v.dtype), v, preferred_element_type=jnp.float32)
    m_ref[...] = m_new

    @pl.when(kv == pl.num_programs(2) - 1)
    def _():
        inv_l = pl.reciprocal(l_ref[...], approx=True)
        o_ref[0] = (acc_ref[...] * inv_l).astype(o_ref.dtype)


def attention_pallas(q, k, v):
    """softmax(q k^T / sqrt(D)) v ; q,k,v: (B, H, L, D) -> (B, H, L, D)."""
    B, H, L, D = q.shape
    scale = 1.0 / math.sqrt(D)
    t = _get_tiles()
    ts = t["tseq"] if L >= t["tseq"] else _round_up(L, 8)
    Lp = _round_up(L, ts)

    qf = q.astype(jnp.bfloat16).reshape(B * H, L, D)
    kf = k.astype(jnp.bfloat16).reshape(B * H, L, D)
    vf = v.astype(jnp.bfloat16).reshape(B * H, L, D)
    if Lp != L:
        pad = ((0, 0), (0, Lp - L), (0, 0))
        qf = jnp.pad(qf, pad)
        kf = jnp.pad(kf, pad)
        vf = jnp.pad(vf, pad)

    out = pl.pallas_call(
        partial(_flash_attn_kernel, scale=scale, kv_len=L, need_mask=(Lp != L)),
        out_shape=jax.ShapeDtypeStruct((B * H, Lp, D), jnp.float32),
        grid=(B * H, Lp // ts, Lp // ts),
        in_specs=[
            pl.BlockSpec((1, ts, D), lambda b, qi, ki: (b, qi, 0)),
            pl.BlockSpec((1, ts, D), lambda b, qi, ki: (b, ki, 0)),
            pl.BlockSpec((1, ts, D), lambda b, qi, ki: (b, ki, 0)),
        ],
        out_specs=pl.BlockSpec((1, ts, D), lambda b, qi, ki: (b, qi, 0)),
        scratch_shapes=[
            pltpu.VMEM((ts, 1), jnp.float32),
            pltpu.VMEM((ts, 1), jnp.float32),
            pltpu.VMEM((ts, D), jnp.float32),
        ],
        compiler_params=pltpu.CompilerParams(
            dimension_semantics=("parallel", "parallel", "arbitrary")),
    )(qf, kf, vf)

    if Lp != L:
        out = out[:, :L, :]
    return out.reshape(B, H, L, D)


# ---------------------------------------------------------------------------
# Pallas kernel: LayerNorm (eps=1e-6, no affine) fused with AdaLN modulation
# ---------------------------------------------------------------------------

def _ln_mod_kernel(x_ref, sc_ref, sh_ref, o_ref):
    x = x_ref[0].astype(jnp.float32)              # (tl, D)
    mu = jnp.mean(x, axis=-1, keepdims=True)
    xc = x - mu
    var = jnp.mean(xc * xc, axis=-1, keepdims=True)
    xn = xc * jax.lax.rsqrt(var + 1e-6)
    o_ref[0] = ((1.0 + sc_ref[0]) * xn + sh_ref[0]).astype(o_ref.dtype)


def layernorm_mod_pallas(x, scale, shift):
    """(1 + scale) * LayerNorm(x) + shift ; x: (B, L, D), scale/shift: (B, 1, D)."""
    B, L, D = x.shape
    t = _get_tiles()
    tl = t["tl"] if L >= t["tl"] else _round_up(L, 8)
    Lp = _round_up(L, tl)
    xp = jnp.pad(x, ((0, 0), (0, Lp - L), (0, 0))) if Lp != L else x

    out = pl.pallas_call(
        _ln_mod_kernel,
        out_shape=jax.ShapeDtypeStruct((B, Lp, D), jnp.float32),
        grid=(B, Lp // tl),
        in_specs=[
            pl.BlockSpec((1, tl, D), lambda b, i: (b, i, 0)),
            pl.BlockSpec((1, 1, D), lambda b, i: (b, 0, 0)),
            pl.BlockSpec((1, 1, D), lambda b, i: (b, 0, 0)),
        ],
        out_specs=pl.BlockSpec((1, tl, D), lambda b, i: (b, i, 0)),
        compiler_params=pltpu.CompilerParams(
            dimension_semantics=("parallel", "parallel")),
    )(xp, scale, shift)

    return out[:, :L, :] if Lp != L else out


# ---------------------------------------------------------------------------
# Plain-JAX glue (RoPE, embeddings, QK RMS-norm, reshapes)
# ---------------------------------------------------------------------------

def rms_norm(x, scale):
    """Flux QKNorm RMSNorm: x: (B, H, L, D), scale: (D,)."""
    rrms = jax.lax.rsqrt(jnp.mean(x * x, axis=-1, keepdims=True) + 1e-6)
    return (x * rrms) * scale


def timestep_embedding(t, dim, max_period=10000, time_factor=1000.0):
    t = time_factor * t.astype(jnp.float32)
    half = dim // 2
    freqs = jnp.exp(-math.log(max_period) *
                    jnp.arange(half, dtype=jnp.float32) / half)
    args = t[:, None] * freqs[None]
    return jnp.concatenate([jnp.cos(args), jnp.sin(args)], axis=-1)


def rope(pos, dim, theta):
    """pos: (B, L) -> (B, L, dim//2, 2, 2)."""
    scale_ = jnp.arange(0, dim, 2, dtype=jnp.float32) / dim
    omega = 1.0 / (theta ** scale_)
    out = pos[..., None].astype(jnp.float32) * omega
    out = jnp.stack([jnp.cos(out), -jnp.sin(out),
                     jnp.sin(out), jnp.cos(out)], axis=-1)
    return out.reshape(*out.shape[:-1], 2, 2)


def embed_nd(ids, axes_dim, theta):
    """EmbedND: ids (B, L, n_axes) -> pe (B, 1, L, pe_dim//2, 2, 2)."""
    embs = [rope(ids[..., i], axes_dim[i], theta) for i in range(ids.shape[-1])]
    emb = jnp.concatenate(embs, axis=-3)
    return emb[:, None]


def apply_rope(xq, xk, pe):
    B, H, L, D = xq.shape
    xq_ = xq.reshape(B, H, L, D // 2, 1, 2)
    xk_ = xk.reshape(B, H, L, D // 2, 1, 2)
    xq_out = pe[..., 0] * xq_[..., 0] + pe[..., 1] * xq_[..., 1]
    xk_out = pe[..., 0] * xk_[..., 0] + pe[..., 1] * xk_[..., 1]
    return xq_out.reshape(B, H, L, D), xk_out.reshape(B, H, L, D)


# TODO(synk): RoPE + QK RMS-norm stay in plain JAX; fully fusing them into the
#             flash-attention prologue would need pe slabs plumbed into the kernel.
def attention(q, k, v, pe):
    q, k = apply_rope(q, k, pe)
    x = attention_pallas(q, k, v)                       # (B, H, L, D)
    B, H, L, D = x.shape
    return jnp.transpose(x, (0, 2, 1, 3)).reshape(B, L, H * D)


def qkv_split(qkv, num_heads):
    """(B, L, 3*H*Dh) -> q, k, v each (B, H, L, Dh)  ('B L (K H D) -> K B H L D')."""
    B, L, threeD = qkv.shape
    D = threeD // 3
    Dh = D // num_heads
    x = qkv.reshape(B, L, 3, num_heads, Dh)
    x = jnp.transpose(x, (2, 0, 3, 1, 4))
    return x[0], x[1], x[2]


# ---------------------------------------------------------------------------
# Flux sub-modules
# ---------------------------------------------------------------------------

def mlp_embedder(p, x):
    h = linear_pallas(x, p['in']['w'], p['in']['b'], out_act='silu')   # fused SiLU
    return linear_pallas(h, p['out']['w'], p['out']['b'])


def modulation_double(vec, p):
    """img_mod + txt_mod computed as one batched linear (H -> 12H)."""
    out = linear_pallas(vec, p['w'], p['b'], in_act='silu')[:, None, :]
    c = jnp.split(out, 12, axis=-1)
    img = ({'shift': c[0], 'scale': c[1], 'gate': c[2]},
           {'shift': c[3], 'scale': c[4], 'gate': c[5]})
    txt = ({'shift': c[6], 'scale': c[7], 'gate': c[8]},
           {'shift': c[9], 'scale': c[10], 'gate': c[11]})
    return img, txt


def modulation_single(vec, p):
    out = linear_pallas(vec, p['w'], p['b'], in_act='silu')[:, None, :]
    c = jnp.split(out, 3, axis=-1)
    return {'shift': c[0], 'scale': c[1], 'gate': c[2]}


def double_block(p, img, txt, vec, pe, num_heads):
    (img_mod1, img_mod2), (txt_mod1, txt_mod2) = modulation_double(vec, p['mod'])

    img_modulated = layernorm_mod_pallas(img, img_mod1['scale'], img_mod1['shift'])
    img_qkv = linear_pallas(img_modulated, p['img_qkv']['w'], p['img_qkv']['b'])
    img_q, img_k, img_v = qkv_split(img_qkv, num_heads)
    img_q = rms_norm(img_q, p['img_q_scale'])
    img_k = rms_norm(img_k, p['img_k_scale'])

    txt_modulated = layernorm_mod_pallas(txt, txt_mod1['scale'], txt_mod1['shift'])
    txt_qkv = linear_pallas(txt_modulated, p['txt_qkv']['w'], p['txt_qkv']['b'])
    txt_q, txt_k, txt_v = qkv_split(txt_qkv, num_heads)
    txt_q = rms_norm(txt_q, p['txt_q_scale'])
    txt_k = rms_norm(txt_k, p['txt_k_scale'])

    q = jnp.concatenate([txt_q, img_q], axis=2)
    k = jnp.concatenate([txt_k, img_k], axis=2)
    v = jnp.concatenate([txt_v, img_v], axis=2)

    attn = attention(q, k, v, pe)
    L_txt = txt.shape[1]
    txt_attn, img_attn = attn[:, :L_txt], attn[:, L_txt:]

    img = img + img_mod1['gate'] * linear_pallas(img_attn, p['img_proj']['w'], p['img_proj']['b'])
    img_mlp_in = layernorm_mod_pallas(img, img_mod2['scale'], img_mod2['shift'])
    # GELU hidden written as bf16: it feeds only the next matmul (which casts to bf16).
    img_h = linear_pallas(img_mlp_in, p['img_mlp1']['w'], p['img_mlp1']['b'],
                          out_act='gelu', out_dtype=jnp.bfloat16)
    img = img + img_mod2['gate'] * linear_pallas(img_h, p['img_mlp2']['w'], p['img_mlp2']['b'])

    txt = txt + txt_mod1['gate'] * linear_pallas(txt_attn, p['txt_proj']['w'], p['txt_proj']['b'])
    txt_mlp_in = layernorm_mod_pallas(txt, txt_mod2['scale'], txt_mod2['shift'])
    txt_h = linear_pallas(txt_mlp_in, p['txt_mlp1']['w'], p['txt_mlp1']['b'],
                          out_act='gelu', out_dtype=jnp.bfloat16)
    txt = txt + txt_mod2['gate'] * linear_pallas(txt_h, p['txt_mlp2']['w'], p['txt_mlp2']['b'])
    return img, txt


def single_block(p, x, vec, pe, num_heads, hidden_size):
    mod = modulation_single(vec, p['mod'])
    x_mod = layernorm_mod_pallas(x, mod['scale'], mod['shift'])
    lin1 = linear_pallas(x_mod, p['linear1']['w'], p['linear1']['b'])
    qkv, mlp = lin1[..., :3 * hidden_size], lin1[..., 3 * hidden_size:]
    q, k, v = qkv_split(qkv, num_heads)
    q = rms_norm(q, p['q_scale'])
    k = rms_norm(k, p['k_scale'])
    attn = attention(q, k, v, pe)
    out = linear_pallas(jnp.concatenate([attn, gelu_tanh(mlp)], axis=-1),
                        p['linear2']['w'], p['linear2']['b'])
    return x + mod['gate'] * out


def final_layer(p, x, vec):
    modout = linear_pallas(vec, p['adaLN']['w'], p['adaLN']['b'], in_act='silu')  # (B, 2H)
    shift, scale = jnp.split(modout, 2, axis=-1)
    x = layernorm_mod_pallas(x, scale[:, None, :], shift[:, None, :])
    return linear_pallas(x, p['linear']['w'], p['linear']['b'])


# ---------------------------------------------------------------------------
# Flux forward
# ---------------------------------------------------------------------------

def flux_forward(params, cfg, img, img_ids, txt, txt_ids, timesteps, y):
    num_heads = cfg['num_heads']
    hidden = cfg['hidden_size']

    img = linear_pallas(img, params['img_in']['w'], params['img_in']['b'])
    vec = mlp_embedder(params['time_in'], timestep_embedding(timesteps, 256))
    # guidance_embed == False -> no guidance branch
    vec = vec + mlp_embedder(params['vector_in'], y)
    txt = linear_pallas(txt, params['txt_in']['w'], params['txt_in']['b'])

    ids = jnp.concatenate([txt_ids, img_ids], axis=1)
    pe = embed_nd(ids, cfg['axes_dim'], cfg['theta'])

    for bp in params['double']:
        img, txt = double_block(bp, img, txt, vec, pe, num_heads)

    x = jnp.concatenate([txt, img], axis=1)
    for bp in params['single']:
        x = single_block(bp, x, vec, pe, num_heads, hidden)
    img = x[:, txt.shape[1]:, :]

    img = final_layer(params['final'], img, vec)
    return img


# ---------------------------------------------------------------------------
# Deterministic parameter initialization (weights stored in bf16 for the MXU)
# ---------------------------------------------------------------------------

def init_params(key, cfg):
    H = cfg['hidden_size']
    mlp_hidden = int(H * cfg['mlp_ratio'])
    Dh = H // cfg['num_heads']

    keys = list(jax.random.split(key, 1024))
    ctr = [0]

    def nk():
        k = keys[ctr[0]]
        ctr[0] += 1
        return k

    def lin(i, o, scale=0.02):
        kw, kb = jax.random.split(nk())
        return {'w': (jax.random.normal(kw, (i, o)) * scale).astype(jnp.bfloat16),
                'b': (jax.random.normal(kb, (o,)) * scale).astype(jnp.float32)}

    def double_params():
        return {
            'mod': lin(H, 12 * H),           # img_mod (6H) ++ txt_mod (6H), batched
            'img_qkv': lin(H, 3 * H), 'txt_qkv': lin(H, 3 * H),
            'img_q_scale': jnp.ones((Dh,), jnp.float32),
            'img_k_scale': jnp.ones((Dh,), jnp.float32),
            'txt_q_scale': jnp.ones((Dh,), jnp.float32),
            'txt_k_scale': jnp.ones((Dh,), jnp.float32),
            'img_proj': lin(H, H), 'txt_proj': lin(H, H),
            'img_mlp1': lin(H, mlp_hidden), 'img_mlp2': lin(mlp_hidden, H),
            'txt_mlp1': lin(H, mlp_hidden), 'txt_mlp2': lin(mlp_hidden, H),
        }

    def single_params():
        return {
            'mod': lin(H, 3 * H),
            'linear1': lin(H, 3 * H + mlp_hidden),
            'linear2': lin(H + mlp_hidden, H),
            'q_scale': jnp.ones((Dh,), jnp.float32),
            'k_scale': jnp.ones((Dh,), jnp.float32),
        }

    return {
        'img_in': lin(cfg['in_channels'], H),
        'time_in': {'in': lin(256, H), 'out': lin(H, H)},
        'vector_in': {'in': lin(cfg['vec_in_dim'], H), 'out': lin(H, H)},
        'txt_in': lin(cfg['context_in_dim'], H),
        'double': [double_params() for _ in range(cfg['depth'])],
        'single': [single_params() for _ in range(cfg['depth_single_blocks'])],
        'final': {'adaLN': lin(H, 2 * H), 'linear': lin(H, cfg['in_channels'])},
        # TODO(synk): guidance_in MLPEmbedder omitted (guidance_embed=False for this config)
    }


# ---------------------------------------------------------------------------
# Main
# ---------------------------------------------------------------------------

if __name__ == "__main__":
    cfg = dict(
        in_channels=16, vec_in_dim=32, context_in_dim=32,
        hidden_size=64, mlp_ratio=4.0, num_heads=2,
        depth=2, depth_single_blocks=2,
        axes_dim=[8, 12, 12], theta=10000,
        qkv_bias=True, guidance_embed=False,
    )
    assert cfg['hidden_size'] % cfg['num_heads'] == 0
    assert sum(cfg['axes_dim']) == cfg['hidden_size'] // cfg['num_heads']

    key = jax.random.PRNGKey(0)
    kp, ki, kt, ky = jax.random.split(key, 4)

    params = init_params(kp, cfg)

    B, L_txt = 2, 8
    hgrid, wgrid = 4, 4
    L_img = hgrid * wgrid  # 16

    img = jax.random.normal(ki, (B, L_img, cfg['in_channels']), jnp.float32)
    txt = jax.random.normal(kt, (B, L_txt, cfg['context_in_dim']), jnp.float32)
    y = jax.random.normal(ky, (B, cfg['vec_in_dim']), jnp.float32)
    timesteps = jnp.linspace(0.1, 0.9, B).astype(jnp.float32)

    # standard Flux position ids: txt ids all-zero, img ids encode (0, row, col)
    rows = jnp.broadcast_to(jnp.arange(hgrid)[:, None], (hgrid, wgrid))
    cols = jnp.broadcast_to(jnp.arange(wgrid)[None, :], (hgrid, wgrid))
    img_ids_single = jnp.stack(
        [jnp.zeros((hgrid, wgrid)), rows, cols], axis=-1).reshape(L_img, 3)
    img_ids = jnp.broadcast_to(img_ids_single[None], (B, L_img, 3)).astype(jnp.float32)
    txt_ids = jnp.zeros((B, L_txt, 3), jnp.float32)

    fwd = jax.jit(lambda p, a, b_, c, d, e, f: flux_forward(p, cfg, a, b_, c, d, e, f))
    out = fwd(params, img, img_ids, txt, txt_ids, timesteps, y)
    jax.block_until_ready(out)

    assert out.shape == (B, L_img, cfg['in_channels']), out.shape
    assert jnp.all(jnp.isfinite(out))
    print("KERNEL_OK")
</pallas_src>

<mosaic_0001>
module attributes {stable_mosaic.version = 11 : i64} {
  func.func @_linear_kernel(%arg0: i32, %arg1: i32, %arg2: i32, %arg3: memref<8x256xbf16, #tpu.memory_space<vmem>>, %arg4: memref<256x128xbf16, #tpu.memory_space<vmem>>, %arg5: memref<1x128xf32, #tpu.memory_space<vmem>>, %arg6: memref<8x128xf32, #tpu.memory_space<vmem>>, %arg7: memref<8x128xf32, #tpu.memory_space<vmem>>) attributes {dimension_semantics = [#tpu.dimension_semantics<parallel>, #tpu.dimension_semantics<parallel>, #tpu.dimension_semantics<arbitrary>], iteration_bounds = array<i64: 1, 1, 1>, scalar_prefetch = 0 : i64, scratch_operands = 1 : i64, tpu.core_type = #tpu.core_type<tc>, window_params = [{transform_indices = @transform_0, window_bounds = array<i64: 8, 256>}, {transform_indices = @transform_1, window_bounds = array<i64: 256, 128>}, {transform_indices = @transform_2, window_bounds = array<i64: 1, 128>}, {transform_indices = @transform_3, window_bounds = array<i64: 8, 128>}]} {
    %c0_i32 = arith.constant 0 : i32
    %0 = arith.cmpi eq, %arg2, %c0_i32 : i32
    %1 = arith.extui %0 : i1 to i32
    %c0_i32_0 = arith.constant 0 : i32
    %2 = arith.cmpi ne, %1, %c0_i32_0 : i32
    scf.if %2 {
      %cst_10 = arith.constant 0.000000e+00 : f32
      %12 = vector.broadcast %cst_10 : f32 to vector<8x128xf32>
      %c0_11 = arith.constant 0 : index
      %c0_12 = arith.constant 0 : index
      %13 = vector.load %arg7[%c0_11, %c0_12] : memref<8x128xf32, #tpu.memory_space<vmem>>, vector<8x128xf32>
      tpu.vector_store %arg7[%c0_11, %c0_12], %12 {strides = array<i32>} : memref<8x128xf32, #tpu.memory_space<vmem>>, vector<8x128xf32>,
    } else {
    }
    %c0 = arith.constant 0 : index
    %c0_1 = arith.constant 0 : index
    %3 = vector.load %arg3[%c0, %c0_1] : memref<8x256xbf16, #tpu.memory_space<vmem>>, vector<8x256xbf16>
    %c0_2 = arith.constant 0 : index
    %c0_3 = arith.constant 0 : index
    %4 = vector.load %arg7[%c0_2, %c0_3] : memref<8x128xf32, #tpu.memory_space<vmem>>, vector<8x128xf32>
    %c0_4 = arith.constant 0 : index
    %c0_5 = arith.constant 0 : index
    %5 = vector.load %arg4[%c0_4, %c0_5] : memref<256x128xbf16, #tpu.memory_space<vmem>>, vector<256x128xbf16>
    %cst = arith.constant dense<0.000000e+00> : vector<8x128xf32>
    %6 = tpu.matmul %3, %5, %cst {dimension_numbers = #tpu.dot_dimension_numbers<[1], [0], [0], [1], [0, 0, 1, 1], [], []>} : vector<8x256xbf16>, vector<256x128xbf16>, vector<8x128xf32> -> vector<8x128xf32>
    %7 = arith.addf %4, %6 : vector<8x128xf32>
    %c0_6 = arith.constant 0 : index
    %c0_7 = arith.constant 0 : index
    %8 = vector.load %arg7[%c0_6, %c0_7] : memref<8x128xf32, #tpu.memory_space<vmem>>, vector<8x128xf32>
    tpu.vector_store %arg7[%c0_6, %c0_7], %7 {strides = array<i32>} : memref<8x128xf32, #tpu.memory_space<vmem>>, vector<8x128xf32>,
    %c0_i32_8 = arith.constant 0 : i32
    %9 = arith.cmpi eq, %arg2, %c0_i32_8 : i32
    %10 = arith.extui %9 : i1 to i32
    %c0_i32_9 = arith.constant 0 : i32
    %11 = arith.cmpi ne, %10, %c0_i32_9 : i32
    scf.if %11 {
      %c0_10 = arith.constant 0 : index
      %c0_11 = arith.constant 0 : index
      %12 = vector.load %arg7[%c0_10, %c0_11] : memref<8x128xf32, #tpu.memory_space<vmem>>, vector<8x128xf32>
      %c0_12 = arith.constant 0 : index
      %c0_13 = arith.constant 0 : index
      %13 = vector.load %arg5[%c0_12, %c0_13] : memref<1x128xf32, #tpu.memory_space<vmem>>, vector<1x128xf32>
      %14 = vector.broadcast %13 : vector<1x128xf32> to vector<8x128xf32>
      %15 = arith.addf %12, %14 : vector<8x128xf32>
      %16 = arith.negf %15 : vector<8x128xf32>
      %17 = math.exp %16 : vector<8x128xf32>
      %cst_14 = arith.constant 1.000000e+00 : f32
      %18 = vector.broadcast %cst_14 : f32 to vector<8x128xf32>
      %19 = arith.addf %18, %17 : vector<8x128xf32>
      %20 = arith.divf %18, %19 : vector<8x128xf32>
      %21 = arith.mulf %15, %20 : vector<8x128xf32>
      %c0_15 = arith.constant 0 : index
      %c0_16 = arith.constant 0 : index
      %22 = vector.load %arg6[%c0_15, %c0_16] : memref<8x128xf32, #tpu.memory_space<vmem>>, vector<8x128xf32>
      tpu.vector_store %arg6[%c0_15, %c0_16], %21 {strides = array<i32>} : memref<8x128xf32, #tpu.memory_space<vmem>>, vector<8x128xf32>,
    } else {
    }
    return
  }
  func.func @transform_0(%arg0: i32, %arg1: i32, %arg2: i32) -> (i32, i32) {
    %c0_i32 = arith.constant 0 : i32
    return %arg0, %arg2 : i32, i32
  }
  func.func @transform_1(%arg0: i32, %arg1: i32, %arg2: i32) -> (i32, i32) {
    %c0_i32 = arith.constant 0 : i32
    return %arg2, %arg1 : i32, i32
  }
  func.func @transform_2(%arg0: i32, %arg1: i32, %arg2: i32) -> (i32, i32) {
    %c0_i32 = arith.constant 0 : i32
    %c0_i32_0 = arith.constant 0 : i32
    return %c0_i32, %arg1 : i32, i32
  }
  func.func @transform_3(%arg0: i32, %arg1: i32, %arg2: i32) -> (i32, i32) {
    %c0_i32 = arith.constant 0 : i32
    return %arg0, %arg1 : i32, i32
  }
}

module attributes {stable_mosaic.version = 11 : i64} {
  func.func @_linear_kernel(%arg0: i32, %arg1: i32, %arg2: i32, %arg3: memref<8x128xbf16, #tpu.memory_space<vmem>>, %arg4: memref<128x128xbf16, #tpu.memory_space<vmem>>, %arg5: memref<1x128xf32, #tpu.memory_space<vmem>>, %arg6: memref<8x128xf32, #tpu.memory_space<vmem>>, %arg7: memref<8x128xf32, #tpu.memory_space<vmem>>) attributes {dimension_semantics = [#tpu.dimension_semantics<parallel>, #tpu.dimension_semantics<parallel>, #tpu.dimension_semantics<arbitrary>], iteration_bounds = array<i64: 1, 1, 1>, scalar_prefetch = 0 : i64, scratch_operands = 1 : i64, tpu.core_type = #tpu.core_type<tc>, window_params = [{transform_indices = @transform_0, window_bounds = array<i64: 8, 128>}, {transform_indices = @transform_1, window_bounds = array<i64: 128, 128>}, {transform_indices = @transform_2, window_bounds = array<i64: 1, 128>}, {transform_indices = @transform_3, window_bounds = array<i64: 8, 128>}]} {
    %c0_i32 = arith.constant 0 : i32
    %0 = arith.cmpi eq, %arg2, %c0_i32 : i32
    %1 = arith.extui %0 : i1 to i32
    %c0_i32_0 = arith.constant 0 : i32
    %2 = arith.cmpi ne, %1, %c0_i32_0 : i32
    scf.if %2 {
      %cst_10 = arith.constant 0.000000e+00 : f32
      %12 = vector.broadcast %cst_10 : f32 to vector<8x128xf32>
      %c0_11 = arith.constant 0 : index
      %c0_12 = arith.constant 0 : index
      %13 = vector.load %arg7[%c0_11, %c0_12] : memref<8x128xf32, #tpu.memory_space<vmem>>, vector<8x128xf32>
      tpu.vector_store %arg7[%c0_11, %c0_12], %12 {strides = array<i32>} : memref<8x128xf32, #tpu.memory_space<vmem>>, vector<8x128xf32>,
    } else {
    }
    %c0 = arith.constant 0 : index
    %c0_1 = arith.constant 0 : index
    %3 = vector.load %arg3[%c0, %c0_1] : memref<8x128xbf16, #tpu.memory_space<vmem>>, vector<8x128xbf16>
    %c0_2 = arith.constant 0 : index
    %c0_3 = arith.constant 0 : index
    %4 = vector.load %arg7[%c0_2, %c0_3] : memref<8x128xf32, #tpu.memory_space<vmem>>, vector<8x128xf32>
    %c0_4 = arith.constant 0 : index
    %c0_5 = arith.constant 0 : index
    %5 = vector.load %arg4[%c0_4, %c0_5] : memref<128x128xbf16, #tpu.memory_space<vmem>>, vector<128x128xbf16>
    %cst = arith.constant dense<0.000000e+00> : vector<8x128xf32>
    %6 = tpu.matmul %3, %5, %cst {dimension_numbers = #tpu.dot_dimension_numbers<[1], [0], [0], [1], [0, 0, 1, 1], [], []>} : vector<8x128xbf16>, vector<128x128xbf16>, vector<8x128xf32> -> vector<8x128xf32>
    %7 = arith.addf %4, %6 : vector<8x128xf32>
    %c0_6 = arith.constant 0 : index
    %c0_7 = arith.constant 0 : index
    %8 = vector.load %arg7[%c0_6, %c0_7] : memref<8x128xf32, #tpu.memory_space<vmem>>, vector<8x128xf32>
    tpu.vector_store %arg7[%c0_6, %c0_7], %7 {strides = array<i32>} : memref<8x128xf32, #tpu.memory_space<vmem>>, vector<8x128xf32>,
    %c0_i32_8 = arith.constant 0 : i32
    %9 = arith.cmpi eq, %arg2, %c0_i32_8 : i32
    %10 = arith.extui %9 : i1 to i32
    %c0_i32_9 = arith.constant 0 : i32
    %11 = arith.cmpi ne, %10, %c0_i32_9 : i32
    scf.if %11 {
      %c0_10 = arith.constant 0 : index
      %c0_11 = arith.constant 0 : index
      %12 = vector.load %arg7[%c0_10, %c0_11] : memref<8x128xf32, #tpu.memory_space<vmem>>, vector<8x128xf32>
      %c0_12 = arith.constant 0 : index
      %c0_13 = arith.constant 0 : index
      %13 = vector.load %arg5[%c0_12, %c0_13] : memref<1x128xf32, #tpu.memory_space<vmem>>, vector<1x128xf32>
      %14 = vector.broadcast %13 : vector<1x128xf32> to vector<8x128xf32>
      %15 = arith.addf %12, %14 : vector<8x128xf32>
      %c0_14 = arith.constant 0 : index
      %c0_15 = arith.constant 0 : index
      %16 = vector.load %arg6[%c0_14, %c0_15] : memref<8x128xf32, #tpu.memory_space<vmem>>, vector<8x128xf32>
      tpu.vector_store %arg6[%c0_14, %c0_15], %15 {strides = array<i32>} : memref<8x128xf32, #tpu.memory_space<vmem>>, vector<8x128xf32>,
    } else {
    }
    return
  }
  func.func @transform_0(%arg0: i32, %arg1: i32, %arg2: i32) -> (i32, i32) {
    %c0_i32 = arith.constant 0 : i32
    return %arg0, %arg2 : i32, i32
  }
  func.func @transform_1(%arg0: i32, %arg1: i32, %arg2: i32) -> (i32, i32) {
    %c0_i32 = arith.constant 0 : i32
    return %arg2, %arg1 : i32, i32
  }
  func.func @transform_2(%arg0: i32, %arg1: i32, %arg2: i32) -> (i32, i32) {
    %c0_i32 = arith.constant 0 : i32
    %c0_i32_0 = arith.constant 0 : i32
    return %c0_i32, %arg1 : i32, i32
  }
  func.func @transform_3(%arg0: i32, %arg1: i32, %arg2: i32) -> (i32, i32) {
    %c0_i32 = arith.constant 0 : i32
    return %arg0, %arg1 : i32, i32
  }
}

module attributes {stable_mosaic.version = 11 : i64} {
  func.func @_linear_kernel(%arg0: i32, %arg1: i32, %arg2: i32, %arg3: memref<8x128xbf16, #tpu.memory_space<vmem>>, %arg4: memref<128x128xbf16, #tpu.memory_space<vmem>>, %arg5: memref<1x128xf32, #tpu.memory_space<vmem>>, %arg6: memref<8x128xf32, #tpu.memory_space<vmem>>, %arg7: memref<8x128xf32, #tpu.memory_space<vmem>>) attributes {dimension_semantics = [#tpu.dimension_semantics<parallel>, #tpu.dimension_semantics<parallel>, #tpu.dimension_semantics<arbitrary>], iteration_bounds = array<i64: 1, 1, 1>, scalar_prefetch = 0 : i64, scratch_operands = 1 : i64, tpu.core_type = #tpu.core_type<tc>, window_params = [{transform_indices = @transform_0, window_bounds = array<i64: 8, 128>}, {transform_indices = @transform_1, window_bounds = array<i64: 128, 128>}, {transform_indices = @transform_2, window_bounds = array<i64: 1, 128>}, {transform_indices = @transform_3, window_bounds = array<i64: 8, 128>}]} {
    %c0_i32 = arith.constant 0 : i32
    %0 = arith.cmpi eq, %arg2, %c0_i32 : i32
    %1 = arith.extui %0 : i1 to i32
    %c0_i32_0 = arith.constant 0 : i32
    %2 = arith.cmpi ne, %1, %c0_i32_0 : i32
    scf.if %2 {
      %cst_10 = arith.constant 0.000000e+00 : f32
      %12 = vector.broadcast %cst_10 : f32 to vector<8x128xf32>
      %c0_11 = arith.constant 0 : index
      %c0_12 = arith.constant 0 : index
      %13 = vector.load %arg7[%c0_11, %c0_12] : memref<8x128xf32, #tpu.memory_space<vmem>>, vector<8x128xf32>
      tpu.vector_store %arg7[%c0_11, %c0_12], %12 {strides = array<i32>} : memref<8x128xf32, #tpu.memory_space<vmem>>, vector<8x128xf32>,
    } else {
    }
    %c0 = arith.constant 0 : index
    %c0_1 = arith.constant 0 : index
    %3 = vector.load %arg3[%c0, %c0_1] : memref<8x128xbf16, #tpu.memory_space<vmem>>, vector<8x128xbf16>
    %c0_2 = arith.constant 0 : index
    %c0_3 = arith.constant 0 : index
    %4 = vector.load %arg7[%c0_2, %c0_3] : memref<8x128xf32, #tpu.memory_space<vmem>>, vector<8x128xf32>
    %c0_4 = arith.constant 0 : index
    %c0_5 = arith.constant 0 : index
    %5 = vector.load %arg4[%c0_4, %c0_5] : memref<128x128xbf16, #tpu.memory_space<vmem>>, vector<128x128xbf16>
    %cst = arith.constant dense<0.000000e+00> : vector<8x128xf32>
    %6 = tpu.matmul %3, %5, %cst {dimension_numbers = #tpu.dot_dimension_numbers<[1], [0], [0], [1], [0, 0, 1, 1], [], []>} : vector<8x128xbf16>, vector<128x128xbf16>, vector<8x128xf32> -> vector<8x128xf32>
    %7 = arith.addf %4, %6 : vector<8x128xf32>
    %c0_6 = arith.constant 0 : index
    %c0_7 = arith.constant 0 : index
    %8 = vector.load %arg7[%c0_6, %c0_7] : memref<8x128xf32, #tpu.memory_space<vmem>>, vector<8x128xf32>
    tpu.vector_store %arg7[%c0_6, %c0_7], %7 {strides = array<i32>} : memref<8x128xf32, #tpu.memory_space<vmem>>, vector<8x128xf32>,
    %c0_i32_8 = arith.constant 0 : i32
    %9 = arith.cmpi eq, %arg2, %c0_i32_8 : i32
    %10 = arith.extui %9 : i1 to i32
    %c0_i32_9 = arith.constant 0 : i32
    %11 = arith.cmpi ne, %10, %c0_i32_9 : i32
    scf.if %11 {
      %c0_10 = arith.constant 0 : index
      %c0_11 = arith.constant 0 : index
      %12 = vector.load %arg7[%c0_10, %c0_11] : memref<8x128xf32, #tpu.memory_space<vmem>>, vector<8x128xf32>
      %c0_12 = arith.constant 0 : index
      %c0_13 = arith.constant 0 : index
      %13 = vector.load %arg5[%c0_12, %c0_13] : memref<1x128xf32, #tpu.memory_space<vmem>>, vector<1x128xf32>
      %14 = vector.broadcast %13 : vector<1x128xf32> to vector<8x128xf32>
      %15 = arith.addf %12, %14 : vector<8x128xf32>
      %16 = arith.negf %15 : vector<8x128xf32>
      %17 = math.exp %16 : vector<8x128xf32>
      %cst_14 = arith.constant 1.000000e+00 : f32
      %18 = vector.broadcast %cst_14 : f32 to vector<8x128xf32>
      %19 = arith.addf %18, %17 : vector<8x128xf32>
      %20 = arith.divf %18, %19 : vector<8x128xf32>
      %21 = arith.mulf %15, %20 : vector<8x128xf32>
      %c0_15 = arith.constant 0 : index
      %c0_16 = arith.constant 0 : index
      %22 = vector.load %arg6[%c0_15, %c0_16] : memref<8x128xf32, #tpu.memory_space<vmem>>, vector<8x128xf32>
      tpu.vector_store %arg6[%c0_15, %c0_16], %21 {strides = array<i32>} : memref<8x128xf32, #tpu.memory_space<vmem>>, vector<8x128xf32>,
    } else {
    }
    return
  }
  func.func @transform_0(%arg0: i32, %arg1: i32, %arg2: i32) -> (i32, i32) {
    %c0_i32 = arith.constant 0 : i32
    return %arg0, %arg2 : i32, i32
  }
  func.func @transform_1(%arg0: i32, %arg1: i32, %arg2: i32) -> (i32, i32) {
    %c0_i32 = arith.constant 0 : i32
    return %arg2, %arg1 : i32, i32
  }
  func.func @transform_2(%arg0: i32, %arg1: i32, %arg2: i32) -> (i32, i32) {
    %c0_i32 = arith.constant 0 : i32
    %c0_i32_0 = arith.constant 0 : i32
    return %c0_i32, %arg1 : i32, i32
  }
  func.func @transform_3(%arg0: i32, %arg1: i32, %arg2: i32) -> (i32, i32) {
    %c0_i32 = arith.constant 0 : i32
    return %arg0, %arg1 : i32, i32
  }
}

module attributes {stable_mosaic.version = 11 : i64} {
  func.func @_linear_kernel(%arg0: i32, %arg1: i32, %arg2: i32, %arg3: memref<8x128xbf16, #tpu.memory_space<vmem>>, %arg4: memref<128x256xbf16, #tpu.memory_space<vmem>>, %arg5: memref<1x256xf32, #tpu.memory_space<vmem>>, %arg6: memref<8x256xf32, #tpu.memory_space<vmem>>, %arg7: memref<8x256xf32, #tpu.memory_space<vmem>>) attributes {dimension_semantics = [#tpu.dimension_semantics<parallel>, #tpu.dimension_semantics<parallel>, #tpu.dimension_semantics<arbitrary>], iteration_bounds = array<i64: 1, 3, 1>, scalar_prefetch = 0 : i64, scratch_operands = 1 : i64, tpu.core_type = #tpu.core_type<tc>, window_params = [{transform_indices = @transform_0, window_bounds = array<i64: 8, 128>}, {transform_indices = @transform_1, window_bounds = array<i64: 128, 256>}, {transform_indices = @transform_2, window_bounds = array<i64: 1, 256>}, {transform_indices = @transform_3, window_bounds = array<i64: 8, 256>}]} {
    %c0_i32 = arith.constant 0 : i32
    %0 = arith.cmpi eq, %arg2, %c0_i32 : i32
    %1 = arith.extui %0 : i1 to i32
    %c0_i32_0 = arith.constant 0 : i32
    %2 = arith.cmpi ne, %1, %c0_i32_0 : i32
    scf.if %2 {
      %cst_11 = arith.constant 0.000000e+00 : f32
      %20 = vector.broadcast %cst_11 : f32 to vector<8x256xf32>
      %c0_12 = arith.constant 0 : index
      %c0_13 = arith.constant 0 : index
      %21 = vector.load %arg7[%c0_12, %c0_13] : memref<8x256xf32, #tpu.memory_space<vmem>>, vector<8x256xf32>
      tpu.vector_store %arg7[%c0_12, %c0_13], %20 {strides = array<i32>} : memref<8x256xf32, #tpu.memory_space<vmem>>, vector<8x256xf32>,
    } else {
    }
    %c0 = arith.constant 0 : index
    %c0_1 = arith.constant 0 : index
    %3 = vector.load %arg3[%c0, %c0_1] : memref<8x128xbf16, #tpu.memory_space<vmem>>, vector<8x128xbf16>
    %4 = arith.extf %3 : vector<8x128xbf16> to vector<8x128xf32>
    %5 = arith.negf %4 : vector<8x128xf32>
    %6 = math.exp %5 : vector<8x128xf32>
    %cst = arith.constant 1.000000e+00 : f32
    %7 = vector.broadcast %cst : f32 to vector<8x128xf32>
    %8 = arith.addf %7, %6 : vector<8x128xf32>
    %9 = arith.divf %7, %8 : vector<8x128xf32>
    %10 = arith.mulf %4, %9 : vector<8x128xf32>
    %11 = arith.truncf %10 : vector<8x128xf32> to vector<8x128xbf16>
    %c0_2 = arith.constant 0 : index
    %c0_3 = arith.constant 0 : index
    %12 = vector.load %arg7[%c0_2, %c0_3] : memref<8x256xf32, #tpu.memory_space<vmem>>, vector<8x256xf32>
    %c0_4 = arith.constant 0 : index
    %c0_5 = arith.constant 0 : index
    %13 = vector.load %arg4[%c0_4, %c0_5] : memref<128x256xbf16, #tpu.memory_space<vmem>>, vector<128x256xbf16>
    %cst_6 = arith.constant dense<0.000000e+00> : vector<8x256xf32>
    %14 = tpu.matmul %11, %13, %cst_6 {dimension_numbers = #tpu.dot_dimension_numbers<[1], [0], [0], [1], [0, 0, 1, 1], [], []>} : vector<8x128xbf16>, vector<128x256xbf16>, vector<8x256xf32> -> vector<8x256xf32>
    %15 = arith.addf %12, %14 : vector<8x256xf32>
    %c0_7 = arith.constant 0 : index
    %c0_8 = arith.constant 0 : index
    %16 = vector.load %arg7[%c0_7, %c0_8] : memref<8x256xf32, #tpu.memory_space<vmem>>, vector<8x256xf32>
    tpu.vector_store %arg7[%c0_7, %c0_8], %15 {strides = array<i32>} : memref<8x256xf32, #tpu.memory_space<vmem>>, vector<8x256xf32>,
    %c0_i32_9 = arith.constant 0 : i32
    %17 = arith.cmpi eq, %arg2, %c0_i32_9 : i32
    %18 = arith.extui %17 : i1 to i32
    %c0_i32_10 = arith.constant 0 : i32
    %19 = arith.cmpi ne, %18, %c0_i32_10 : i32
    scf.if %19 {
      %c0_11 = arith.constant 0 : index
      %c0_12 = arith.constant 0 : index
      %20 = vector.load %arg7[%c0_11, %c0_12] : memref<8x256xf32, #tpu.memory_space<vmem>>, vector<8x256xf32>
      %c0_13 = arith.constant 0 : index
      %c0_14 = arith.constant 0 : index
      %21 = vector.load %arg5[%c0_13, %c0_14] : memref<1x256xf32, #tpu.memory_space<vmem>>, vector<1x256xf32>
      %22 = vector.broadcast %21 : vector<1x256xf32> to vector<8x256xf32>
      %23 = arith.addf %20, %22 : vector<8x256xf32>
      %c0_15 = arith.constant 0 : index
      %c0_16 = arith.constant 0 : index
      %24 = vector.load %arg6[%c0_15, %c0_16] : memref<8x256xf32, #tpu.memory_space<vmem>>, vector<8x256xf32>
      tpu.vector_store %arg6[%c0_15, %c0_16], %23 {strides = array<i32>} : memref<8x256xf32, #tpu.memory_space<vmem>>, vector<8x256xf32>,
    } else {
    }
    return
  }
  func.func @transform_0(%arg0: i32, %arg1: i32, %arg2: i32) -> (i32, i32) {
    %c0_i32 = arith.constant 0 : i32
    return %arg0, %arg2 : i32, i32
  }
  func.func @transform_1(%arg0: i32, %arg1: i32, %arg2: i32) -> (i32, i32) {
    %c0_i32 = arith.constant 0 : i32
    return %arg2, %arg1 : i32, i32
  }
  func.func @transform_2(%arg0: i32, %arg1: i32, %arg2: i32) -> (i32, i32) {
    %c0_i32 = arith.constant 0 : i32
    %c0_i32_0 = arith.constant 0 : i32
    return %c0_i32, %arg1 : i32, i32
  }
  func.func @transform_3(%arg0: i32, %arg1: i32, %arg2: i32) -> (i32, i32) {
    %c0_i32 = arith.constant 0 : i32
    return %arg0, %arg1 : i32, i32
  }
}

module attributes {stable_mosaic.version = 11 : i64} {
  func.func @_ln_mod_kernel(%arg0: i32, %arg1: i32, %arg2: memref<1x8x64xf32, #tpu.memory_space<vmem>>, %arg3: memref<1x1x64xf32, #tpu.memory_space<vmem>>, %arg4: memref<1x1x64xf32, #tpu.memory_space<vmem>>, %arg5: memref<1x8x64xf32, #tpu.memory_space<vmem>>) attributes {dimension_semantics = [#tpu.dimension_semantics<parallel>, #tpu.dimension_semantics<parallel>], iteration_bounds = array<i64: 2, 1>, scalar_prefetch = 0 : i64, scratch_operands = 0 : i64, tpu.core_type = #tpu.core_type<tc>, window_params = [{transform_indices = @transform_0, window_bounds = array<i64: 1, 8, 64>}, {transform_indices = @transform_1, window_bounds = array<i64: 1, 1, 64>}, {transform_indices = @transform_2, window_bounds = array<i64: 1, 1, 64>}, {transform_indices = @transform_3, window_bounds = array<i64: 1, 8, 64>}]} {
    %c0 = arith.constant 0 : index
    %c0_0 = arith.constant 0 : index
    %c0_1 = arith.constant 0 : index
    %0 = vector.load %arg2[%c0, %c0_0, %c0_1] : memref<1x8x64xf32, #tpu.memory_space<vmem>>, vector<1x8x64xf32>
    %1 = vector.shape_cast %0 : vector<1x8x64xf32> to vector<8x64xf32>
    %cst = arith.constant dense<0.000000e+00> : vector<8xf32>
    %2 = vector.multi_reduction <add>, %1, %cst [1] : vector<8x64xf32> to vector<8xf32>
    %3 = vector.shape_cast %2 : vector<8xf32> to vector<8x1xf32>
    %cst_2 = arith.constant 6.400000e+01 : f32
    %4 = vector.broadcast %cst_2 : f32 to vector<8x1xf32>
    %5 = arith.divf %3, %4 : vector<8x1xf32>
    %6 = vector.broadcast %5 : vector<8x1xf32> to vector<8x64xf32>
    %7 = arith.subf %1, %6 : vector<8x64xf32>
    %8 = arith.mulf %7, %7 : vector<8x64xf32>
    %cst_3 = arith.constant dense<0.000000e+00> : vector<8xf32>
    %9 = vector.multi_reduction <add>, %8, %cst_3 [1] : vector<8x64xf32> to vector<8xf32>
    %10 = vector.shape_cast %9 : vector<8xf32> to vector<8x1xf32>
    %cst_4 = arith.constant 6.400000e+01 : f32
    %11 = vector.broadcast %cst_4 : f32 to vector<8x1xf32>
    %12 = arith.divf %10, %11 : vector<8x1xf32>
    %cst_5 = arith.constant 9.99999997E-7 : f32
    %13 = vector.broadcast %cst_5 : f32 to vector<8x1xf32>
    %14 = arith.addf %12, %13 : vector<8x1xf32>
    %15 = math.rsqrt %14 : vector<8x1xf32>
    %16 = vector.broadcast %15 : vector<8x1xf32> to vector<8x64xf32>
    %17 = arith.mulf %7, %16 : vector<8x64xf32>
    %c0_6 = arith.constant 0 : index
    %c0_7 = arith.constant 0 : index
    %c0_8 = arith.constant 0 : index
    %18 = vector.load %arg3[%c0_6, %c0_7, %c0_8] : memref<1x1x64xf32, #tpu.memory_space<vmem>>, vector<1x1x64xf32>
    %19 = vector.shape_cast %18 : vector<1x1x64xf32> to vector<1x64xf32>
    %cst_9 = arith.constant 1.000000e+00 : f32
    %20 = vector.broadcast %cst_9 : f32 to vector<1x64xf32>
    %21 = arith.addf %20, %19 : vector<1x64xf32>
    %22 = vector.broadcast %21 : vector<1x64xf32> to vector<8x64xf32>
    %23 = arith.mulf %22, %17 : vector<8x64xf32>
    %c0_10 = arith.constant 0 : index
    %c0_11 = arith.constant 0 : index
    %c0_12 = arith.constant 0 : index
    %24 = vector.load %arg4[%c0_10, %c0_11, %c0_12] : memref<1x1x64xf32, #tpu.memory_space<vmem>>, vector<1x1x64xf32>
    %25 = vector.shape_cast %24 : vector<1x1x64xf32> to vector<1x64xf32>
    %26 = vector.broadcast %25 : vector<1x64xf32> to vector<8x64xf32>
    %27 = arith.addf %23, %26 : vector<8x64xf32>
    %c0_13 = arith.constant 0 : index
    %c0_14 = arith.constant 0 : index
    %c0_15 = arith.constant 0 : index
    %28 = vector.load %arg5[%c0_13, %c0_14, %c0_15] : memref<1x8x64xf32, #tpu.memory_space<vmem>>, vector<1x8x64xf32>
    %29 = vector.shape_cast %28 : vector<1x8x64xf32> to vector<8x64xf32>
    %30 = vector.shape_cast %27 : vector<8x64xf32> to vector<1x8x64xf32>
    tpu.vector_store %arg5[%c0_13, %c0_14, %c0_15], %30 {strides = array<i32>} : memref<1x8x64xf32, #tpu.memory_space<vmem>>, vector<1x8x64xf32>,
    return
  }
  func.func @transform_0(%arg0: i32, %arg1: i32) -> (i32, i32, i32) {
    %c0_i32 = arith.constant 0 : i32
    %c0_i32_0 = arith.constant 0 : i32
    return %arg0, %arg1, %c0_i32 : i32, i32, i32
  }
  func.func @transform_1(%arg0: i32, %arg1: i32) -> (i32, i32, i32) {
    %c0_i32 = arith.constant 0 : i32
    %c0_i32_0 = arith.constant 0 : i32
    %c0_i32_1 = arith.constant 0 : i32
    return %arg0, %c0_i32, %c0_i32_0 : i32, i32, i32
  }
  func.func @transform_2(%arg0: i32, %arg1: i32) -> (i32, i32, i32) {
    %c0_i32 = arith.constant 0 : i32
    %c0_i32_0 = arith.constant 0 : i32
    %c0_i32_1 = arith.constant 0 : i32
    return %arg0, %c0_i32, %c0_i32_0 : i32, i32, i32
  }
  func.func @transform_3(%arg0: i32, %arg1: i32) -> (i32, i32, i32) {
    %c0_i32 = arith.constant 0 : i32
    %c0_i32_0 = arith.constant 0 : i32
    return %arg0, %arg1, %c0_i32 : i32, i32, i32
  }
}

module attributes {stable_mosaic.version = 11 : i64} {
  func.func @_linear_kernel(%arg0: i32, %arg1: i32, %arg2: i32, %arg3: memref<16x128xbf16, #tpu.memory_space<vmem>>, %arg4: memref<128x256xbf16, #tpu.memory_space<vmem>>, %arg5: memref<1x256xf32, #tpu.memory_space<vmem>>, %arg6: memref<16x256xf32, #tpu.memory_space<vmem>>, %arg7: memref<16x256xf32, #tpu.memory_space<vmem>>) attributes {dimension_semantics = [#tpu.dimension_semantics<parallel>, #tpu.dimension_semantics<parallel>, #tpu.dimension_semantics<arbitrary>], iteration_bounds = array<i64: 1, 1, 1>, scalar_prefetch = 0 : i64, scratch_operands = 1 : i64, tpu.core_type = #tpu.core_type<tc>, window_params = [{transform_indices = @transform_0, window_bounds = array<i64: 16, 128>}, {transform_indices = @transform_1, window_bounds = array<i64: 128, 256>}, {transform_indices = @transform_2, window_bounds = array<i64: 1, 256>}, {transform_indices = @transform_3, window_bounds = array<i64: 16, 256>}]} {
    %c0_i32 = arith.constant 0 : i32
    %0 = arith.cmpi eq, %arg2, %c0_i32 : i32
    %1 = arith.extui %0 : i1 to i32
    %c0_i32_0 = arith.constant 0 : i32
    %2 = arith.cmpi ne, %1, %c0_i32_0 : i32
    scf.if %2 {
      %cst_10 = arith.constant 0.000000e+00 : f32
      %12 = vector.broadcast %cst_10 : f32 to vector<16x256xf32>
      %c0_11 = arith.constant 0 : index
      %c0_12 = arith.constant 0 : index
      %13 = vector.load %arg7[%c0_11, %c0_12] : memref<16x256xf32, #tpu.memory_space<vmem>>, vector<16x256xf32>
      tpu.vector_store %arg7[%c0_11, %c0_12], %12 {strides = array<i32>} : memref<16x256xf32, #tpu.memory_space<vmem>>, vector<16x256xf32>,
    } else {
    }
    %c0 = arith.constant 0 : index
    %c0_1 = arith.constant 0 : index
    %3 = vector.load %arg3[%c0, %c0_1] : memref<16x128xbf16, #tpu.memory_space<vmem>>, vector<16x128xbf16>
    %c0_2 = arith.constant 0 : index
    %c0_3 = arith.constant 0 : index
    %4 = vector.load %arg7[%c0_2, %c0_3] : memref<16x256xf32, #tpu.memory_space<vmem>>, vector<16x256xf32>
    %c0_4 = arith.constant 0 : index
    %c0_5 = arith.constant 0 : index
    %5 = vector.load %arg4[%c0_4, %c0_5] : memref<128x256xbf16, #tpu.memory_space<vmem>>, vector<128x256xbf16>
    %cst = arith.constant dense<0.000000e+00> : vector<16x256xf32>
    %6 = tpu.matmul %3, %5, %cst {dimension_numbers = #tpu.dot_dimension_numbers<[1], [0], [0], [1], [0, 0, 1, 1], [], []>} : vector<16x128xbf16>, vector<128x256xbf16>, vector<16x256xf32> -> vector<16x256xf32>
    %7 = arith.addf %4, %6 : vector<16x256xf32>
    %c0_6 = arith.constant 0 : index
    %c0_7 = arith.constant 0 : index
    %8 = vector.load %arg7[%c0_6, %c0_7] : memref<16x256xf32, #tpu.memory_space<vmem>>, vector<16x256xf32>
    tpu.vector_store %arg7[%c0_6, %c0_7], %7 {strides = array<i32>} : memref<16x256xf32, #tpu.memory_space<vmem>>, vector<16x256xf32>,
    %c0_i32_8 = arith.constant 0 : i32
    %9 = arith.cmpi eq, %arg2, %c0_i32_8 : i32
    %10 = arith.extui %9 : i1 to i32
    %c0_i32_9 = arith.constant 0 : i32
    %11 = arith.cmpi ne, %10, %c0_i32_9 : i32
    scf.if %11 {
      %c0_10 = arith.constant 0 : index
      %c0_11 = arith.constant 0 : index
      %12 = vector.load %arg7[%c0_10, %c0_11] : memref<16x256xf32, #tpu.memory_space<vmem>>, vector<16x256xf32>
      %c0_12 = arith.constant 0 : index
      %c0_13 = arith.constant 0 : index
      %13 = vector.load %arg5[%c0_12, %c0_13] : memref<1x256xf32, #tpu.memory_space<vmem>>, vector<1x256xf32>
      %14 = vector.broadcast %13 : vector<1x256xf32> to vector<16x256xf32>
      %15 = arith.addf %12, %14 : vector<16x256xf32>
      %c0_14 = arith.constant 0 : index
      %c0_15 = arith.constant 0 : index
      %16 = vector.load %arg6[%c0_14, %c0_15] : memref<16x256xf32, #tpu.memory_space<vmem>>, vector<16x256xf32>
      tpu.vector_store %arg6[%c0_14, %c0_15], %15 {strides = array<i32>} : memref<16x256xf32, #tpu.memory_space<vmem>>, vector<16x256xf32>,
    } else {
    }
    return
  }
  func.func @transform_0(%arg0: i32, %arg1: i32, %arg2: i32) -> (i32, i32) {
    %c0_i32 = arith.constant 0 : i32
    return %arg0, %arg2 : i32, i32
  }
  func.func @transform_1(%arg0: i32, %arg1: i32, %arg2: i32) -> (i32, i32) {
    %c0_i32 = arith.constant 0 : i32
    return %arg2, %arg1 : i32, i32
  }
  func.func @transform_2(%arg0: i32, %arg1: i32, %arg2: i32) -> (i32, i32) {
    %c0_i32 = arith.constant 0 : i32
    %c0_i32_0 = arith.constant 0 : i32
    return %c0_i32, %arg1 : i32, i32
  }
  func.func @transform_3(%arg0: i32, %arg1: i32, %arg2: i32) -> (i32, i32) {
    %c0_i32 = arith.constant 0 : i32
    return %arg0, %arg1 : i32, i32
  }
}

module attributes {stable_mosaic.version = 11 : i64} {
  func.func @_linear_kernel(%arg0: i32, %arg1: i32, %arg2: i32, %arg3: memref<16x128xbf16, #tpu.memory_space<vmem>>, %arg4: memref<128x128xbf16, #tpu.memory_space<vmem>>, %arg5: memref<1x128xf32, #tpu.memory_space<vmem>>, %arg6: memref<16x128xf32, #tpu.memory_space<vmem>>, %arg7: memref<16x128xf32, #tpu.memory_space<vmem>>) attributes {dimension_semantics = [#tpu.dimension_semantics<parallel>, #tpu.dimension_semantics<parallel>, #tpu.dimension_semantics<arbitrary>], iteration_bounds = array<i64: 1, 1, 1>, scalar_prefetch = 0 : i64, scratch_operands = 1 : i64, tpu.core_type = #tpu.core_type<tc>, window_params = [{transform_indices = @transform_0, window_bounds = array<i64: 16, 128>}, {transform_indices = @transform_1, window_bounds = array<i64: 128, 128>}, {transform_indices = @transform_2, window_bounds = array<i64: 1, 128>}, {transform_indices = @transform_3, window_bounds = array<i64: 16, 128>}]} {
    %c0_i32 = arith.constant 0 : i32
    %0 = arith.cmpi eq, %arg2, %c0_i32 : i32
    %1 = arith.extui %0 : i1 to i32
    %c0_i32_0 = arith.constant 0 : i32
    %2 = arith.cmpi ne, %1, %c0_i32_0 : i32
    scf.if %2 {
      %cst_10 = arith.constant 0.000000e+00 : f32
      %12 = vector.broadcast %cst_10 : f32 to vector<16x128xf32>
      %c0_11 = arith.constant 0 : index
      %c0_12 = arith.constant 0 : index
      %13 = vector.load %arg7[%c0_11, %c0_12] : memref<16x128xf32, #tpu.memory_space<vmem>>, vector<16x128xf32>
      tpu.vector_store %arg7[%c0_11, %c0_12], %12 {strides = array<i32>} : memref<16x128xf32, #tpu.memory_space<vmem>>, vector<16x128xf32>,
    } else {
    }
    %c0 = arith.constant 0 : index
    %c0_1 = arith.constant 0 : index
    %3 = vector.load %arg3[%c0, %c0_1] : memref<16x128xbf16, #tpu.memory_space<vmem>>, vector<16x128xbf16>
    %c0_2 = arith.constant 0 : index
    %c0_3 = arith.constant 0 : index
    %4 = vector.load %arg7[%c0_2, %c0_3] : memref<16x128xf32, #tpu.memory_space<vmem>>, vector<16x128xf32>
    %c0_4 = arith.constant 0 : index
    %c0_5 = arith.constant 0 : index
    %5 = vector.load %arg4[%c0_4, %c0_5] : memref<128x128xbf16, #tpu.memory_space<vmem>>, vector<128x128xbf16>
    %cst = arith.constant dense<0.000000e+00> : vector<16x128xf32>
    %6 = tpu.matmul %3, %5, %cst {dimension_numbers = #tpu.dot_dimension_numbers<[1], [0], [0], [1], [0, 0, 1, 1], [], []>} : vector<16x128xbf16>, vector<128x128xbf16>, vector<16x128xf32> -> vector<16x128xf32>
    %7 = arith.addf %4, %6 : vector<16x128xf32>
    %c0_6 = arith.constant 0 : index
    %c0_7 = arith.constant 0 : index
    %8 = vector.load %arg7[%c0_6, %c0_7] : memref<16x128xf32, #tpu.memory_space<vmem>>, vector<16x128xf32>
    tpu.vector_store %arg7[%c0_6, %c0_7], %7 {strides = array<i32>} : memref<16x128xf32, #tpu.memory_space<vmem>>, vector<16x128xf32>,
    %c0_i32_8 = arith.constant 0 : i32
    %9 = arith.cmpi eq, %arg2, %c0_i32_8 : i32
    %10 = arith.extui %9 : i1 to i32
    %c0_i32_9 = arith.constant 0 : i32
    %11 = arith.cmpi ne, %10, %c0_i32_9 : i32
    scf.if %11 {
      %c0_10 = arith.constant 0 : index
      %c0_11 = arith.constant 0 : index
      %12 = vector.load %arg7[%c0_10, %c0_11] : memref<16x128xf32, #tpu.memory_space<vmem>>, vector<16x128xf32>
      %c0_12 = arith.constant 0 : index
      %c0_13 = arith.constant 0 : index
      %13 = vector.load %arg5[%c0_12, %c0_13] : memref<1x128xf32, #tpu.memory_space<vmem>>, vector<1x128xf32>
      %14 = vector.broadcast %13 : vector<1x128xf32> to vector<16x128xf32>
      %15 = arith.addf %12, %14 : vector<16x128xf32>
      %c0_14 = arith.constant 0 : index
      %c0_15 = arith.constant 0 : index
      %16 = vector.load %arg6[%c0_14, %c0_15] : memref<16x128xf32, #tpu.memory_space<vmem>>, vector<16x128xf32>
      tpu.vector_store %arg6[%c0_14, %c0_15], %15 {strides = array<i32>} : memref<16x128xf32, #tpu.memory_space<vmem>>, vector<16x128xf32>,
    } else {
    }
    return
  }
  func.func @transform_0(%arg0: i32, %arg1: i32, %arg2: i32) -> (i32, i32) {
    %c0_i32 = arith.constant 0 : i32
    return %arg0, %arg2 : i32, i32
  }
  func.func @transform_1(%arg0: i32, %arg1: i32, %arg2: i32) -> (i32, i32) {
    %c0_i32 = arith.constant 0 : i32
    return %arg2, %arg1 : i32, i32
  }
  func.func @transform_2(%arg0: i32, %arg1: i32, %arg2: i32) -> (i32, i32) {
    %c0_i32 = arith.constant 0 : i32
    %c0_i32_0 = arith.constant 0 : i32
    return %c0_i32, %arg1 : i32, i32
  }
  func.func @transform_3(%arg0: i32, %arg1: i32, %arg2: i32) -> (i32, i32) {
    %c0_i32 = arith.constant 0 : i32
    return %arg0, %arg1 : i32, i32
  }
}

module attributes {stable_mosaic.version = 11 : i64} {
  func.func @_linear_kernel(%arg0: i32, %arg1: i32, %arg2: i32, %arg3: memref<32x128xbf16, #tpu.memory_space<vmem>>, %arg4: memref<128x128xbf16, #tpu.memory_space<vmem>>, %arg5: memref<1x128xf32, #tpu.memory_space<vmem>>, %arg6: memref<32x128xf32, #tpu.memory_space<vmem>>, %arg7: memref<32x128xf32, #tpu.memory_space<vmem>>) attributes {dimension_semantics = [#tpu.dimension_semantics<parallel>, #tpu.dimension_semantics<parallel>, #tpu.dimension_semantics<arbitrary>], iteration_bounds = array<i64: 1, 1, 1>, scalar_prefetch = 0 : i64, scratch_operands = 1 : i64, tpu.core_type = #tpu.core_type<tc>, window_params = [{transform_indices = @transform_0, window_bounds = array<i64: 32, 128>}, {transform_indices = @transform_1, window_bounds = array<i64: 128, 128>}, {transform_indices = @transform_2, window_bounds = array<i64: 1, 128>}, {transform_indices = @transform_3, window_bounds = array<i64: 32, 128>}]} {
    %c0_i32 = arith.constant 0 : i32
    %0 = arith.cmpi eq, %arg2, %c0_i32 : i32
    %1 = arith.extui %0 : i1 to i32
    %c0_i32_0 = arith.constant 0 : i32
    %2 = arith.cmpi ne, %1, %c0_i32_0 : i32
    scf.if %2 {
      %cst_10 = arith.constant 0.000000e+00 : f32
      %12 = vector.broadcast %cst_10 : f32 to vector<32x128xf32>
      %c0_11 = arith.constant 0 : index
      %c0_12 = arith.constant 0 : index
      %13 = vector.load %arg7[%c0_11, %c0_12] : memref<32x128xf32, #tpu.memory_space<vmem>>, vector<32x128xf32>
      tpu.vector_store %arg7[%c0_11, %c0_12], %12 {strides = array<i32>} : memref<32x128xf32, #tpu.memory_space<vmem>>, vector<32x128xf32>,
    } else {
    }
    %c0 = arith.constant 0 : index
    %c0_1 = arith.constant 0 : index
    %3 = vector.load %arg3[%c0, %c0_1] : memref<32x128xbf16, #tpu.memory_space<vmem>>, vector<32x128xbf16>
    %c0_2 = arith.constant 0 : index
    %c0_3 = arith.constant 0 : index
    %4 = vector.load %arg7[%c0_2, %c0_3] : memref<32x128xf32, #tpu.memory_space<vmem>>, vector<32x128xf32>
    %c0_4 = arith.constant 0 : index
    %c0_5 = arith.constant 0 : index
    %5 = vector.load %arg4[%c0_4, %c0_5] : memref<128x128xbf16, #tpu.memory_space<vmem>>, vector<128x128xbf16>
    %cst = arith.constant dense<0.000000e+00> : vector<32x128xf32>
    %6 = tpu.matmul %3, %5, %cst {dimension_numbers = #tpu.dot_dimension_numbers<[1], [0], [0], [1], [0, 0, 1, 1], [], []>} : vector<32x128xbf16>, vector<128x128xbf16>, vector<32x128xf32> -> vector<32x128xf32>
    %7 = arith.addf %4, %6 : vector<32x128xf32>
    %c0_6 = arith.constant 0 : index
    %c0_7 = arith.constant 0 : index
    %8 = vector.load %arg7[%c0_6, %c0_7] : memref<32x128xf32, #tpu.memory_space<vmem>>, vector<32x128xf32>
    tpu.vector_store %arg7[%c0_6, %c0_7], %7 {strides = array<i32>} : memref<32x128xf32, #tpu.memory_space<vmem>>, vector<32x128xf32>,
    %c0_i32_8 = arith.constant 0 : i32
    %9 = arith.cmpi eq, %arg2, %c0_i32_8 : i32
    %10 = arith.extui %9 : i1 to i32
    %c0_i32_9 = arith.constant 0 : i32
    %11 = arith.cmpi ne, %10, %c0_i32_9 : i32
    scf.if %11 {
      %c0_10 = arith.constant 0 : index
      %c0_11 = arith.constant 0 : index
      %12 = vector.load %arg7[%c0_10, %c0_11] : memref<32x128xf32, #tpu.memory_space<vmem>>, vector<32x128xf32>
      %c0_12 = arith.constant 0 : index
      %c0_13 = arith.constant 0 : index
      %13 = vector.load %arg5[%c0_12, %c0_13] : memref<1x128xf32, #tpu.memory_space<vmem>>, vector<1x128xf32>
      %14 = vector.broadcast %13 : vector<1x128xf32> to vector<32x128xf32>
      %15 = arith.addf %12, %14 : vector<32x128xf32>
      %c0_14 = arith.constant 0 : index
      %c0_15 = arith.constant 0 : index
      %16 = vector.load %arg6[%c0_14, %c0_15] : memref<32x128xf32, #tpu.memory_space<vmem>>, vector<32x128xf32>
      tpu.vector_store %arg6[%c0_14, %c0_15], %15 {strides = array<i32>} : memref<32x128xf32, #tpu.memory_space<vmem>>, vector<32x128xf32>,
    } else {
    }
    return
  }
  func.func @transform_0(%arg0: i32, %arg1: i32, %arg2: i32) -> (i32, i32) {
    %c0_i32 = arith.constant 0 : i32
    return %arg0, %arg2 : i32, i32
  }
  func.func @transform_1(%arg0: i32, %arg1: i32, %arg2: i32) -> (i32, i32) {
    %c0_i32 = arith.constant 0 : i32
    return %arg2, %arg1 : i32, i32
  }
  func.func @transform_2(%arg0: i32, %arg1: i32, %arg2: i32) -> (i32, i32) {
    %c0_i32 = arith.constant 0 : i32
    %c0_i32_0 = arith.constant 0 : i32
    return %c0_i32, %arg1 : i32, i32
  }
  func.func @transform_3(%arg0: i32, %arg1: i32, %arg2: i32) -> (i32, i32) {
    %c0_i32 = arith.constant 0 : i32
    return %arg0, %arg1 : i32, i32
  }
}

module attributes {stable_mosaic.version = 11 : i64} {
  func.func @_ln_mod_kernel(%arg0: i32, %arg1: i32, %arg2: memref<1x16x64xf32, #tpu.memory_space<vmem>>, %arg3: memref<1x1x64xf32, #tpu.memory_space<vmem>>, %arg4: memref<1x1x64xf32, #tpu.memory_space<vmem>>, %arg5: memref<1x16x64xf32, #tpu.memory_space<vmem>>) attributes {dimension_semantics = [#tpu.dimension_semantics<parallel>, #tpu.dimension_semantics<parallel>], iteration_bounds = array<i64: 2, 1>, scalar_prefetch = 0 : i64, scratch_operands = 0 : i64, tpu.core_type = #tpu.core_type<tc>, window_params = [{transform_indices = @transform_0, window_bounds = array<i64: 1, 16, 64>}, {transform_indices = @transform_1, window_bounds = array<i64: 1, 1, 64>}, {transform_indices = @transform_2, window_bounds = array<i64: 1, 1, 64>}, {transform_indices = @transform_3, window_bounds = array<i64: 1, 16, 64>}]} {
    %c0 = arith.constant 0 : index
    %c0_0 = arith.constant 0 : index
    %c0_1 = arith.constant 0 : index
    %0 = vector.load %arg2[%c0, %c0_0, %c0_1] : memref<1x16x64xf32, #tpu.memory_space<vmem>>, vector<1x16x64xf32>
    %1 = vector.shape_cast %0 : vector<1x16x64xf32> to vector<16x64xf32>
    %cst = arith.constant dense<0.000000e+00> : vector<16xf32>
    %2 = vector.multi_reduction <add>, %1, %cst [1] : vector<16x64xf32> to vector<16xf32>
    %3 = vector.shape_cast %2 : vector<16xf32> to vector<16x1xf32>
    %cst_2 = arith.constant 6.400000e+01 : f32
    %4 = vector.broadcast %cst_2 : f32 to vector<16x1xf32>
    %5 = arith.divf %3, %4 : vector<16x1xf32>
    %6 = vector.broadcast %5 : vector<16x1xf32> to vector<16x64xf32>
    %7 = arith.subf %1, %6 : vector<16x64xf32>
    %8 = arith.mulf %7, %7 : vector<16x64xf32>
    %cst_3 = arith.constant dense<0.000000e+00> : vector<16xf32>
    %9 = vector.multi_reduction <add>, %8, %cst_3 [1] : vector<16x64xf32> to vector<16xf32>
    %10 = vector.shape_cast %9 : vector<16xf32> to vector<16x1xf32>
    %cst_4 = arith.constant 6.400000e+01 : f32
    %11 = vector.broadcast %cst_4 : f32 to vector<16x1xf32>
    %12 = arith.divf %10, %11 : vector<16x1xf32>
    %cst_5 = arith.constant 9.99999997E-7 : f32
    %13 = vector.broadcast %cst_5 : f32 to vector<16x1xf32>
    %14 = arith.addf %12, %13 : vector<16x1xf32>
    %15 = math.rsqrt %14 : vector<16x1xf32>
    %16 = vector.broadcast %15 : vector<16x1xf32> to vector<16x64xf32>
    %17 = arith.mulf %7, %16 : vector<16x64xf32>
    %c0_6 = arith.constant 0 : index
    %c0_7 = arith.constant 0 : index
    %c0_8 = arith.constant 0 : index
    %18 = vector.load %arg3[%c0_6, %c0_7, %c0_8] : memref<1x1x64xf32, #tpu.memory_space<vmem>>, vector<1x1x64xf32>
    %19 = vector.shape_cast %18 : vector<1x1x64xf32> to vector<1x64xf32>
    %cst_9 = arith.constant 1.000000e+00 : f32
    %20 = vector.broadcast %cst_9 : f32 to vector<1x64xf32>
    %21 = arith.addf %20, %19 : vector<1x64xf32>
    %22 = vector.broadcast %21 : vector<1x64xf32> to vector<16x64xf32>
    %23 = arith.mulf %22, %17 : vector<16x64xf32>
    %c0_10 = arith.constant 0 : index
    %c0_11 = arith.constant 0 : index
    %c0_12 = arith.constant 0 : index
    %24 = vector.load %arg4[%c0_10, %c0_11, %c0_12] : memref<1x1x64xf32, #tpu.memory_space<vmem>>, vector<1x1x64xf32>
    %25 = vector.shape_cast %24 : vector<1x1x64xf32> to vector<1x64xf32>
    %26 = vector.broadcast %25 : vector<1x64xf32> to vector<16x64xf32>
    %27 = arith.addf %23, %26 : vector<16x64xf32>
    %c0_13 = arith.constant 0 : index
    %c0_14 = arith.constant 0 : index
    %c0_15 = arith.constant 0 : index
    %28 = vector.load %arg5[%c0_13, %c0_14, %c0_15] : memref<1x16x64xf32, #tpu.memory_space<vmem>>, vector<1x16x64xf32>
    %29 = vector.shape_cast %28 : vector<1x16x64xf32> to vector<16x64xf32>
    %30 = vector.shape_cast %27 : vector<16x64xf32> to vector<1x16x64xf32>
    tpu.vector_store %arg5[%c0_13, %c0_14, %c0_15], %30 {strides = array<i32>} : memref<1x16x64xf32, #tpu.memory_space<vmem>>, vector<1x16x64xf32>,
    return
  }
  func.func @transform_0(%arg0: i32, %arg1: i32) -> (i32, i32, i32) {
    %c0_i32 = arith.constant 0 : i32
    %c0_i32_0 = arith.constant 0 : i32
    return %arg0, %arg1, %c0_i32 : i32, i32, i32
  }
  func.func @transform_1(%arg0: i32, %arg1: i32) -> (i32, i32, i32) {
    %c0_i32 = arith.constant 0 : i32
    %c0_i32_0 = arith.constant 0 : i32
    %c0_i32_1 = arith.constant 0 : i32
    return %arg0, %c0_i32, %c0_i32_0 : i32, i32, i32
  }
  func.func @transform_2(%arg0: i32, %arg1: i32) -> (i32, i32, i32) {
    %c0_i32 = arith.constant 0 : i32
    %c0_i32_0 = arith.constant 0 : i32
    %c0_i32_1 = arith.constant 0 : i32
    return %arg0, %c0_i32, %c0_i32_0 : i32, i32, i32
  }
  func.func @transform_3(%arg0: i32, %arg1: i32) -> (i32, i32, i32) {
    %c0_i32 = arith.constant 0 : i32
    %c0_i32_0 = arith.constant 0 : i32
    return %arg0, %arg1, %c0_i32 : i32, i32, i32
  }
}

module attributes {stable_mosaic.version = 11 : i64} {
  func.func @_linear_kernel(%arg0: i32, %arg1: i32, %arg2: i32, %arg3: memref<32x128xbf16, #tpu.memory_space<vmem>>, %arg4: memref<128x256xbf16, #tpu.memory_space<vmem>>, %arg5: memref<1x256xf32, #tpu.memory_space<vmem>>, %arg6: memref<32x256xf32, #tpu.memory_space<vmem>>, %arg7: memref<32x256xf32, #tpu.memory_space<vmem>>) attributes {dimension_semantics = [#tpu.dimension_semantics<parallel>, #tpu.dimension_semantics<parallel>, #tpu.dimension_semantics<arbitrary>], iteration_bounds = array<i64: 1, 1, 1>, scalar_prefetch = 0 : i64, scratch_operands = 1 : i64, tpu.core_type = #tpu.core_type<tc>, window_params = [{transform_indices = @transform_0, window_bounds = array<i64: 32, 128>}, {transform_indices = @transform_1, window_bounds = array<i64: 128, 256>}, {transform_indices = @transform_2, window_bounds = array<i64: 1, 256>}, {transform_indices = @transform_3, window_bounds = array<i64: 32, 256>}]} {
    %c0_i32 = arith.constant 0 : i32
    %0 = arith.cmpi eq, %arg2, %c0_i32 : i32
    %1 = arith.extui %0 : i1 to i32
    %c0_i32_0 = arith.constant 0 : i32
    %2 = arith.cmpi ne, %1, %c0_i32_0 : i32
    scf.if %2 {
      %cst_10 = arith.constant 0.000000e+00 : f32
      %12 = vector.broadcast %cst_10 : f32 to vector<32x256xf32>
      %c0_11 = arith.constant 0 : index
      %c0_12 = arith.constant 0 : index
      %13 = vector.load %arg7[%c0_11, %c0_12] : memref<32x256xf32, #tpu.memory_space<vmem>>, vector<32x256xf32>
      tpu.vector_store %arg7[%c0_11, %c0_12], %12 {strides = array<i32>} : memref<32x256xf32, #tpu.memory_space<vmem>>, vector<32x256xf32>,
    } else {
    }
    %c0 = arith.constant 0 : index
    %c0_1 = arith.constant 0 : index
    %3 = vector.load %arg3[%c0, %c0_1] : memref<32x128xbf16, #tpu.memory_space<vmem>>, vector<32x128xbf16>
    %c0_2 = arith.constant 0 : index
    %c0_3 = arith.constant 0 : index
    %4 = vector.load %arg7[%c0_2, %c0_3] : memref<32x256xf32, #tpu.memory_space<vmem>>, vector<32x256xf32>
    %c0_4 = arith.constant 0 : index
    %c0_5 = arith.constant 0 : index
    %5 = vector.load %arg4[%c0_4, %c0_5] : memref<128x256xbf16, #tpu.memory_space<vmem>>, vector<128x256xbf16>
    %cst = arith.constant dense<0.000000e+00> : vector<32x256xf32>
    %6 = tpu.matmul %3, %5, %cst {dimension_numbers = #tpu.dot_dimension_numbers<[1], [0], [0], [1], [0, 0, 1, 1], [], []>} : vector<32x128xbf16>, vector<128x256xbf16>, vector<32x256xf32> -> vector<32x256xf32>
    %7 = arith.addf %4, %6 : vector<32x256xf32>
    %c0_6 = arith.constant 0 : index
    %c0_7 = arith.constant 0 : index
    %8 = vector.load %arg7[%c0_6, %c0_7] : memref<32x256xf32, #tpu.memory_space<vmem>>, vector<32x256xf32>
    tpu.vector_store %arg7[%c0_6, %c0_7], %7 {strides = array<i32>} : memref<32x256xf32, #tpu.memory_space<vmem>>, vector<32x256xf32>,
    %c0_i32_8 = arith.constant 0 : i32
    %9 = arith.cmpi eq, %arg2, %c0_i32_8 : i32
    %10 = arith.extui %9 : i1 to i32
    %c0_i32_9 = arith.constant 0 : i32
    %11 = arith.cmpi ne, %10, %c0_i32_9 : i32
    scf.if %11 {
      %c0_10 = arith.constant 0 : index
      %c0_11 = arith.constant 0 : index
      %12 = vector.load %arg7[%c0_10, %c0_11] : memref<32x256xf32, #tpu.memory_space<vmem>>, vector<32x256xf32>
      %c0_12 = arith.constant 0 : index
      %c0_13 = arith.constant 0 : index
      %13 = vector.load %arg5[%c0_12, %c0_13] : memref<1x256xf32, #tpu.memory_space<vmem>>, vector<1x256xf32>
      %14 = vector.broadcast %13 : vector<1x256xf32> to vector<32x256xf32>
      %15 = arith.addf %12, %14 : vector<32x256xf32>
      %c0_14 = arith.constant 0 : index
      %c0_15 = arith.constant 0 : index
      %16 = vector.load %arg6[%c0_14, %c0_15] : memref<32x256xf32, #tpu.memory_space<vmem>>, vector<32x256xf32>
      tpu.vector_store %arg6[%c0_14, %c0_15], %15 {strides = array<i32>} : memref<32x256xf32, #tpu.memory_space<vmem>>, vector<32x256xf32>,
    } else {
    }
    return
  }
  func.func @transform_0(%arg0: i32, %arg1: i32, %arg2: i32) -> (i32, i32) {
    %c0_i32 = arith.constant 0 : i32
    return %arg0, %arg2 : i32, i32
  }
  func.func @transform_1(%arg0: i32, %arg1: i32, %arg2: i32) -> (i32, i32) {
    %c0_i32 = arith.constant 0 : i32
    return %arg2, %arg1 : i32, i32
  }
  func.func @transform_2(%arg0: i32, %arg1: i32, %arg2: i32) -> (i32, i32) {
    %c0_i32 = arith.constant 0 : i32
    %c0_i32_0 = arith.constant 0 : i32
    return %c0_i32, %arg1 : i32, i32
  }
  func.func @transform_3(%arg0: i32, %arg1: i32, %arg2: i32) -> (i32, i32) {
    %c0_i32 = arith.constant 0 : i32
    return %arg0, %arg1 : i32, i32
  }
}

module attributes {stable_mosaic.version = 11 : i64} {
  func.func @_flash_attn_kernel(%arg0: i32, %arg1: i32, %arg2: i32, %arg3: memref<1x24x32xbf16, #tpu.memory_space<vmem>>, %arg4: memref<1x24x32xbf16, #tpu.memory_space<vmem>>, %arg5: memref<1x24x32xbf16, #tpu.memory_space<vmem>>, %arg6: memref<1x24x32xf32, #tpu.memory_space<vmem>>, %arg7: memref<24x1xf32, #tpu.memory_space<vmem>>, %arg8: memref<24x1xf32, #tpu.memory_space<vmem>>, %arg9: memref<24x32xf32, #tpu.memory_space<vmem>>) attributes {dimension_semantics = [#tpu.dimension_semantics<parallel>, #tpu.dimension_semantics<parallel>, #tpu.dimension_semantics<arbitrary>], iteration_bounds = array<i64: 4, 1, 1>, scalar_prefetch = 0 : i64, scratch_operands = 3 : i64, tpu.core_type = #tpu.core_type<tc>, window_params = [{transform_indices = @transform_0, window_bounds = array<i64: 1, 24, 32>}, {transform_indices = @transform_1, window_bounds = array<i64: 1, 24, 32>}, {transform_indices = @transform_2, window_bounds = array<i64: 1, 24, 32>}, {transform_indices = @transform_3, window_bounds = array<i64: 1, 24, 32>}]} {
    %c0_i32 = arith.constant 0 : i32
    %0 = arith.cmpi eq, %arg2, %c0_i32 : i32
    %1 = arith.extui %0 : i1 to i32
    %c0_i32_0 = arith.constant 0 : i32
    %2 = arith.cmpi ne, %1, %c0_i32_0 : i32
    scf.if %2 {
      %cst_27 = arith.constant -1.000000e+30 : f32
      %38 = vector.broadcast %cst_27 : f32 to vector<24x1xf32>
      %c0_28 = arith.constant 0 : index
      %c0_29 = arith.constant 0 : index
      %39 = vector.load %arg7[%c0_28, %c0_29] : memref<24x1xf32, #tpu.memory_space<vmem>>, vector<24x1xf32>
      tpu.vector_store %arg7[%c0_28, %c0_29], %38 {strides = array<i32>} : memref<24x1xf32, #tpu.memory_space<vmem>>, vector<24x1xf32>,
      %cst_30 = arith.constant 0.000000e+00 : f32
      %40 = vector.broadcast %cst_30 : f32 to vector<24x1xf32>
      %c0_31 = arith.constant 0 : index
      %c0_32 = arith.constant 0 : index
      %41 = vector.load %arg8[%c0_31, %c0_32] : memref<24x1xf32, #tpu.memory_space<vmem>>, vector<24x1xf32>
      tpu.vector_store %arg8[%c0_31, %c0_32], %40 {strides = array<i32>} : memref<24x1xf32, #tpu.memory_space<vmem>>, vector<24x1xf32>,
      %cst_33 = arith.constant 0.000000e+00 : f32
      %42 = vector.broadcast %cst_33 : f32 to vector<24x32xf32>
      %c0_34 = arith.constant 0 : index
      %c0_35 = arith.constant 0 : index
      %43 = vector.load %arg9[%c0_34, %c0_35] : memref<24x32xf32, #tpu.memory_space<vmem>>, vector<24x32xf32>
      tpu.vector_store %arg9[%c0_34, %c0_35], %42 {strides = array<i32>} : memref<24x32xf32, #tpu.memory_space<vmem>>, vector<24x32xf32>,
    } else {
    }
    %c0 = arith.constant 0 : index
    %c0_1 = arith.constant 0 : index
    %c0_2 = arith.constant 0 : index
    %3 = vector.load %arg3[%c0, %c0_1, %c0_2] : memref<1x24x32xbf16, #tpu.memory_space<vmem>>, vector<1x24x32xbf16>
    %4 = vector.shape_cast %3 : vector<1x24x32xbf16> to vector<24x32xbf16>
    %c0_3 = arith.constant 0 : index
    %c0_4 = arith.constant 0 : index
    %c0_5 = arith.constant 0 : index
    %5 = vector.load %arg4[%c0_3, %c0_4, %c0_5] : memref<1x24x32xbf16, #tpu.memory_space<vmem>>, vector<1x24x32xbf16>
    %6 = vector.shape_cast %5 : vector<1x24x32xbf16> to vector<24x32xbf16>
    %c0_6 = arith.constant 0 : index
    %c0_7 = arith.constant 0 : index
    %c0_8 = arith.constant 0 : index
    %7 = vector.load %arg5[%c0_6, %c0_7, %c0_8] : memref<1x24x32xbf16, #tpu.memory_space<vmem>>, vector<1x24x32xbf16>
    %8 = vector.shape_cast %7 : vector<1x24x32xbf16> to vector<24x32xbf16>
    %cst = arith.constant dense<0.000000e+00> : vector<24x24xf32>
    %9 = tpu.matmul %4, %6, %cst {dimension_numbers = #tpu.dot_dimension_numbers<[1], [1], [0], [0], [0, 0, 1, 0], [], []>} : vector<24x32xbf16>, vector<24x32xbf16>, vector<24x24xf32> -> vector<24x24xf32>
    %cst_9 = arith.constant 0.176776692 : f32
    %10 = vector.broadcast %cst_9 : f32 to vector<24x24xf32>
    %11 = arith.mulf %9, %10 : vector<24x24xf32>
    %c0_10 = arith.constant 0 : index
    %c0_11 = arith.constant 0 : index
    %12 = vector.load %arg7[%c0_10, %c0_11] : memref<24x1xf32, #tpu.memory_space<vmem>>, vector<24x1xf32>
    %cst_12 = arith.constant dense<0xFF800000> : vector<24xf32>
    %13 = vector.multi_reduction <maximumf>, %11, %cst_12 [1] : vector<24x24xf32> to vector<24xf32>
    %14 = vector.shape_cast %13 : vector<24xf32> to vector<24x1xf32>
    %15 = arith.maximumf %12, %14 : vector<24x1xf32>
    %16 = arith.subf %12, %15 : vector<24x1xf32>
    %17 = math.exp %16 : vector<24x1xf32>
    %18 = vector.broadcast %15 : vector<24x1xf32> to vector<24x24xf32>
    %19 = arith.subf %11, %18 : vector<24x24xf32>
    %20 = math.exp %19 : vector<24x24xf32>
    %c0_13 = arith.constant 0 : index
    %c0_14 = arith.constant 0 : index
    %21 = vector.load %arg8[%c0_13, %c0_14] : memref<24x1xf32, #tpu.memory_space<vmem>>, vector<24x1xf32>
    %22 = arith.mulf %17, %21 : vector<24x1xf32>
    %cst_15 = arith.constant dense<0.000000e+00> : vector<24xf32>
    %23 = vector.multi_reduction <add>, %20, %cst_15 [1] : vector<24x24xf32> to vector<24xf32>
    %24 = vector.shape_cast %23 : vector<24xf32> to vector<24x1xf32>
    %25 = arith.addf %22, %24 : vector<24x1xf32>
    %c0_16 = arith.constant 0 : index
    %c0_17 = arith.constant 0 : index
    %26 = vector.load %arg8[%c0_16, %c0_17] : memref<24x1xf32, #tpu.memory_space<vmem>>, vector<24x1xf32>
    tpu.vector_store %arg8[%c0_16, %c0_17], %25 {strides = array<i32>} : memref<24x1xf32, #tpu.memory_space<vmem>>, vector<24x1xf32>,
    %c0_18 = arith.constant 0 : index
    %c0_19 = arith.constant 0 : index
    %27 = vector.load %arg9[%c0_18, %c0_19] : memref<24x32xf32, #tpu.memory_space<vmem>>, vector<24x32xf32>
    %28 = vector.broadcast %17 : vector<24x1xf32> to vector<24x32xf32>
    %29 = arith.mulf %28, %27 : vector<24x32xf32>
    %30 = arith.truncf %20 : vector<24x24xf32> to vector<24x24xbf16>
    %cst_20 = arith.constant dense<0.000000e+00> : vector<24x32xf32>
    %31 = tpu.matmul %30, %8, %cst_20 {dimension_numbers = #tpu.dot_dimension_numbers<[1], [0], [0], [1], [0, 0, 1, 1], [], []>} : vector<24x24xbf16>, vector<24x32xbf16>, vector<24x32xf32> -> vector<24x32xf32>
    %32 = arith.addf %29, %31 : vector<24x32xf32>
    %c0_21 = arith.constant 0 : index
    %c0_22 = arith.constant 0 : index
    %33 = vector.load %arg9[%c0_21, %c0_22] : memref<24x32xf32, #tpu.memory_space<vmem>>, vector<24x32xf32>
    tpu.vector_store %arg9[%c0_21, %c0_22], %32 {strides = array<i32>} : memref<24x32xf32, #tpu.memory_space<vmem>>, vector<24x32xf32>,
    %c0_23 = arith.constant 0 : index
    %c0_24 = arith.constant 0 : index
    %34 = vector.load %arg7[%c0_23, %c0_24] : memref<24x1xf32, #tpu.memory_space<vmem>>, vector<24x1xf32>
    tpu.vector_store %arg7[%c0_23, %c0_24], %15 {strides = array<i32>} : memref<24x1xf32, #tpu.memory_space<vmem>>, vector<24x1xf32>,
    %c0_i32_25 = arith.constant 0 : i32
    %35 = arith.cmpi eq, %arg2, %c0_i32_25 : i32
    %36 = arith.extui %35 : i1 to i32
    %c0_i32_26 = arith.constant 0 : i32
    %37 = arith.cmpi ne, %36, %c0_i32_26 : i32
    scf.if %37 {
      %c0_27 = arith.constant 0 : index
      %c0_28 = arith.constant 0 : index
      %38 = vector.load %arg8[%c0_27, %c0_28] : memref<24x1xf32, #tpu.memory_space<vmem>>, vector<24x1xf32>
      %39 = tpu.reciprocal %38 {approx = true} : vector<24x1xf32> -> vector<24x1xf32>
      %c0_29 = arith.constant 0 : index
      %c0_30 = arith.constant 0 : index
      %40 = vector.load %arg9[%c0_29, %c0_30] : memref<24x32xf32, #tpu.memory_space<vmem>>, vector<24x32xf32>
      %41 = vector.broadcast %39 : vector<24x1xf32> to vector<24x32xf32>
      %42 = arith.mulf %40, %41 : vector<24x32xf32>
      %c0_31 = arith.constant 0 : index
      %c0_32 = arith.constant 0 : index
      %c0_33 = arith.constant 0 : index
      %43 = vector.load %arg6[%c0_31, %c0_32, %c0_33] : memref<1x24x32xf32, #tpu.memory_space<vmem>>, vector<1x24x32xf32>
      %44 = vector.shape_cast %43 : vector<1x24x32xf32> to vector<24x32xf32>
      %45 = vector.shape_cast %42 : vector<24x32xf32> to vector<1x24x32xf32>
      tpu.vector_store %arg6[%c0_31, %c0_32, %c0_33], %45 {strides = array<i32>} : memref<1x24x32xf32, #tpu.memory_space<vmem>>, vector<1x24x32xf32>,
    } else {
    }
    return
  }
  func.func @transform_0(%arg0: i32, %arg1: i32, %arg2: i32) -> (i32, i32, i32) {
    %c0_i32 = arith.constant 0 : i32
    %c0_i32_0 = arith.constant 0 : i32
    return %arg0, %arg1, %c0_i32 : i32, i32, i32
  }
  func.func @transform_1(%arg0: i32, %arg1: i32, %arg2: i32) -> (i32, i32, i32) {
    %c0_i32 = arith.constant 0 : i32
    %c0_i32_0 = arith.constant 0 : i32
    return %arg0, %arg2, %c0_i32 : i32, i32, i32
  }
  func.func @transform_2(%arg0: i32, %arg1: i32, %arg2: i32) -> (i32, i32, i32) {
    %c0_i32 = arith.constant 0 : i32
    %c0_i32_0 = arith.constant 0 : i32
    return %arg0, %arg2, %c0_i32 : i32, i32, i32
  }
  func.func @transform_3(%arg0: i32, %arg1: i32, %arg2: i32) -> (i32, i32, i32) {
    %c0_i32 = arith.constant 0 : i32
    %c0_i32_0 = arith.constant 0 : i32
    return %arg0, %arg1, %c0_i32 : i32, i32, i32
  }
}

module attributes {stable_mosaic.version = 11 : i64} {
  func.func @_linear_kernel(%arg0: i32, %arg1: i32, %arg2: i32, %arg3: memref<32x256xbf16, #tpu.memory_space<vmem>>, %arg4: memref<256x128xbf16, #tpu.memory_space<vmem>>, %arg5: memref<1x128xf32, #tpu.memory_space<vmem>>, %arg6: memref<32x128xf32, #tpu.memory_space<vmem>>, %arg7: memref<32x128xf32, #tpu.memory_space<vmem>>) attributes {dimension_semantics = [#tpu.dimension_semantics<parallel>, #tpu.dimension_semantics<parallel>, #tpu.dimension_semantics<arbitrary>], iteration_bounds = array<i64: 1, 1, 1>, scalar_prefetch = 0 : i64, scratch_operands = 1 : i64, tpu.core_type = #tpu.core_type<tc>, window_params = [{transform_indices = @transform_0, window_bounds = array<i64: 32, 256>}, {transform_indices = @transform_1, window_bounds = array<i64: 256, 128>}, {transform_indices = @transform_2, window_bounds = array<i64: 1, 128>}, {transform_indices = @transform_3, window_bounds = array<i64: 32, 128>}]} {
    %c0_i32 = arith.constant 0 : i32
    %0 = arith.cmpi eq, %arg2, %c0_i32 : i32
    %1 = arith.extui %0 : i1 to i32
    %c0_i32_0 = arith.constant 0 : i32
    %2 = arith.cmpi ne, %1, %c0_i32_0 : i32
    scf.if %2 {
      %cst_10 = arith.constant 0.000000e+00 : f32
      %12 = vector.broadcast %cst_10 : f32 to vector<32x128xf32>
      %c0_11 = arith.constant 0 : index
      %c0_12 = arith.constant 0 : index
      %13 = vector.load %arg7[%c0_11, %c0_12] : memref<32x128xf32, #tpu.memory_space<vmem>>, vector<32x128xf32>
      tpu.vector_store %arg7[%c0_11, %c0_12], %12 {strides = array<i32>} : memref<32x128xf32, #tpu.memory_space<vmem>>, vector<32x128xf32>,
    } else {
    }
    %c0 = arith.constant 0 : index
    %c0_1 = arith.constant 0 : index
    %3 = vector.load %arg3[%c0, %c0_1] : memref<32x256xbf16, #tpu.memory_space<vmem>>, vector<32x256xbf16>
    %c0_2 = arith.constant 0 : index
    %c0_3 = arith.constant 0 : index
    %4 = vector.load %arg7[%c0_2, %c0_3] : memref<32x128xf32, #tpu.memory_space<vmem>>, vector<32x128xf32>
    %c0_4 = arith.constant 0 : index
    %c0_5 = arith.constant 0 : index
    %5 = vector.load %arg4[%c0_4, %c0_5] : memref<256x128xbf16, #tpu.memory_space<vmem>>, vector<256x128xbf16>
    %cst = arith.constant dense<0.000000e+00> : vector<32x128xf32>
    %6 = tpu.matmul %3, %5, %cst {dimension_numbers = #tpu.dot_dimension_numbers<[1], [0], [0], [1], [0, 0, 1, 1], [], []>} : vector<32x256xbf16>, vector<256x128xbf16>, vector<32x128xf32> -> vector<32x128xf32>
    %7 = arith.addf %4, %6 : vector<32x128xf32>
    %c0_6 = arith.constant 0 : index
    %c0_7 = arith.constant 0 : index
    %8 = vector.load %arg7[%c0_6, %c0_7] : memref<32x128xf32, #tpu.memory_space<vmem>>, vector<32x128xf32>
    tpu.vector_store %arg7[%c0_6, %c0_7], %7 {strides = array<i32>} : memref<32x128xf32, #tpu.memory_space<vmem>>, vector<32x128xf32>,
    %c0_i32_8 = arith.constant 0 : i32
    %9 = arith.cmpi eq, %arg2, %c0_i32_8 : i32
    %10 = arith.extui %9 : i1 to i32
    %c0_i32_9 = arith.constant 0 : i32
    %11 = arith.cmpi ne, %10, %c0_i32_9 : i32
    scf.if %11 {
      %c0_10 = arith.constant 0 : index
      %c0_11 = arith.constant 0 : index
      %12 = vector.load %arg7[%c0_10, %c0_11] : memref<32x128xf32, #tpu.memory_space<vmem>>, vector<32x128xf32>
      %c0_12 = arith.constant 0 : index
      %c0_13 = arith.constant 0 : index
      %13 = vector.load %arg5[%c0_12, %c0_13] : memref<1x128xf32, #tpu.memory_space<vmem>>, vector<1x128xf32>
      %14 = vector.broadcast %13 : vector<1x128xf32> to vector<32x128xf32>
      %15 = arith.addf %12, %14 : vector<32x128xf32>
      %c0_14 = arith.constant 0 : index
      %c0_15 = arith.constant 0 : index
      %16 = vector.load %arg6[%c0_14, %c0_15] : memref<32x128xf32, #tpu.memory_space<vmem>>, vector<32x128xf32>
      tpu.vector_store %arg6[%c0_14, %c0_15], %15 {strides = array<i32>} : memref<32x128xf32, #tpu.memory_space<vmem>>, vector<32x128xf32>,
    } else {
    }
    return
  }
  func.func @transform_0(%arg0: i32, %arg1: i32, %arg2: i32) -> (i32, i32) {
    %c0_i32 = arith.constant 0 : i32
    return %arg0, %arg2 : i32, i32
  }
  func.func @transform_1(%arg0: i32, %arg1: i32, %arg2: i32) -> (i32, i32) {
    %c0_i32 = arith.constant 0 : i32
    return %arg2, %arg1 : i32, i32
  }
  func.func @transform_2(%arg0: i32, %arg1: i32, %arg2: i32) -> (i32, i32) {
    %c0_i32 = arith.constant 0 : i32
    %c0_i32_0 = arith.constant 0 : i32
    return %c0_i32, %arg1 : i32, i32
  }
  func.func @transform_3(%arg0: i32, %arg1: i32, %arg2: i32) -> (i32, i32) {
    %c0_i32 = arith.constant 0 : i32
    return %arg0, %arg1 : i32, i32
  }
}

module attributes {stable_mosaic.version = 11 : i64} {
  func.func @_linear_kernel(%arg0: i32, %arg1: i32, %arg2: i32, %arg3: memref<32x128xbf16, #tpu.memory_space<vmem>>, %arg4: memref<128x256xbf16, #tpu.memory_space<vmem>>, %arg5: memref<1x256xf32, #tpu.memory_space<vmem>>, %arg6: memref<32x256xbf16, #tpu.memory_space<vmem>>, %arg7: memref<32x256xf32, #tpu.memory_space<vmem>>) attributes {dimension_semantics = [#tpu.dimension_semantics<parallel>, #tpu.dimension_semantics<parallel>, #tpu.dimension_semantics<arbitrary>], iteration_bounds = array<i64: 1, 1, 1>, scalar_prefetch = 0 : i64, scratch_operands = 1 : i64, tpu.core_type = #tpu.core_type<tc>, window_params = [{transform_indices = @transform_0, window_bounds = array<i64: 32, 128>}, {transform_indices = @transform_1, window_bounds = array<i64: 128, 256>}, {transform_indices = @transform_2, window_bounds = array<i64: 1, 256>}, {transform_indices = @transform_3, window_bounds = array<i64: 32, 256>}]} {
    %c0_i32 = arith.constant 0 : i32
    %0 = arith.cmpi eq, %arg2, %c0_i32 : i32
    %1 = arith.extui %0 : i1 to i32
    %c0_i32_0 = arith.constant 0 : i32
    %2 = arith.cmpi ne, %1, %c0_i32_0 : i32
    scf.if %2 {
      %cst_10 = arith.constant 0.000000e+00 : f32
      %12 = vector.broadcast %cst_10 : f32 to vector<32x256xf32>
      %c0_11 = arith.constant 0 : index
      %c0_12 = arith.constant 0 : index
      %13 = vector.load %arg7[%c0_11, %c0_12] : memref<32x256xf32, #tpu.memory_space<vmem>>, vector<32x256xf32>
      tpu.vector_store %arg7[%c0_11, %c0_12], %12 {strides = array<i32>} : memref<32x256xf32, #tpu.memory_space<vmem>>, vector<32x256xf32>,
    } else {
    }
    %c0 = arith.constant 0 : index
    %c0_1 = arith.constant 0 : index
    %3 = vector.load %arg3[%c0, %c0_1] : memref<32x128xbf16, #tpu.memory_space<vmem>>, vector<32x128xbf16>
    %c0_2 = arith.constant 0 : index
    %c0_3 = arith.constant 0 : index
    %4 = vector.load %arg7[%c0_2, %c0_3] : memref<32x256xf32, #tpu.memory_space<vmem>>, vector<32x256xf32>
    %c0_4 = arith.constant 0 : index
    %c0_5 = arith.constant 0 : index
    %5 = vector.load %arg4[%c0_4, %c0_5] : memref<128x256xbf16, #tpu.memory_space<vmem>>, vector<128x256xbf16>
    %cst = arith.constant dense<0.000000e+00> : vector<32x256xf32>
    %6 = tpu.matmul %3, %5, %cst {dimension_numbers = #tpu.dot_dimension_numbers<[1], [0], [0], [1], [0, 0, 1, 1], [], []>} : vector<32x128xbf16>, vector<128x256xbf16>, vector<32x256xf32> -> vector<32x256xf32>
    %7 = arith.addf %4, %6 : vector<32x256xf32>
    %c0_6 = arith.constant 0 : index
    %c0_7 = arith.constant 0 : index
    %8 = vector.load %arg7[%c0_6, %c0_7] : memref<32x256xf32, #tpu.memory_space<vmem>>, vector<32x256xf32>
    tpu.vector_store %arg7[%c0_6, %c0_7], %7 {strides = array<i32>} : memref<32x256xf32, #tpu.memory_space<vmem>>, vector<32x256xf32>,
    %c0_i32_8 = arith.constant 0 : i32
    %9 = arith.cmpi eq, %arg2, %c0_i32_8 : i32
    %10 = arith.extui %9 : i1 to i32
    %c0_i32_9 = arith.constant 0 : i32
    %11 = arith.cmpi ne, %10, %c0_i32_9 : i32
    scf.if %11 {
      %c0_10 = arith.constant 0 : index
      %c0_11 = arith.constant 0 : index
      %12 = vector.load %arg7[%c0_10, %c0_11] : memref<32x256xf32, #tpu.memory_space<vmem>>, vector<32x256xf32>
      %c0_12 = arith.constant 0 : index
      %c0_13 = arith.constant 0 : index
      %13 = vector.load %arg5[%c0_12, %c0_13] : memref<1x256xf32, #tpu.memory_space<vmem>>, vector<1x256xf32>
      %14 = vector.broadcast %13 : vector<1x256xf32> to vector<32x256xf32>
      %15 = arith.addf %12, %14 : vector<32x256xf32>
      %cst_14 = arith.constant 5.000000e-01 : f32
      %16 = vector.broadcast %cst_14 : f32 to vector<32x256xf32>
      %17 = arith.mulf %16, %15 : vector<32x256xf32>
      %18 = arith.mulf %15, %15 : vector<32x256xf32>
      %19 = arith.mulf %15, %18 : vector<32x256xf32>
      %cst_15 = arith.constant 4.471500e-02 : f32
      %20 = vector.broadcast %cst_15 : f32 to vector<32x256xf32>
      %21 = arith.mulf %20, %19 : vector<32x256xf32>
      %22 = arith.addf %15, %21 : vector<32x256xf32>
      %cst_16 = arith.constant 0.797884583 : f32
      %23 = vector.broadcast %cst_16 : f32 to vector<32x256xf32>
      %24 = arith.mulf %23, %22 : vector<32x256xf32>
      %25 = math.tanh %24 : vector<32x256xf32>
      %cst_17 = arith.constant 1.000000e+00 : f32
      %26 = vector.broadcast %cst_17 : f32 to vector<32x256xf32>
      %27 = arith.addf %26, %25 : vector<32x256xf32>
      %28 = arith.mulf %17, %27 : vector<32x256xf32>
      %29 = arith.truncf %28 : vector<32x256xf32> to vector<32x256xbf16>
      %c0_18 = arith.constant 0 : index
      %c0_19 = arith.constant 0 : index
      %30 = vector.load %arg6[%c0_18, %c0_19] : memref<32x256xbf16, #tpu.memory_space<vmem>>, vector<32x256xbf16>
      tpu.vector_store %arg6[%c0_18, %c0_19], %29 {strides = array<i32>} : memref<32x256xbf16, #tpu.memory_space<vmem>>, vector<32x256xbf16>,
    } else {
    }
    return
  }
  func.func @transform_0(%arg0: i32, %arg1: i32, %arg2: i32) -> (i32, i32) {
    %c0_i32 = arith.constant 0 : i32
    return %arg0, %arg2 : i32, i32
  }
  func.func @transform_1(%arg0: i32, %arg1: i32, %arg2: i32) -> (i32, i32) {
    %c0_i32 = arith.constant 0 : i32
    return %arg2, %arg1 : i32, i32
  }
  func.func @transform_2(%arg0: i32, %arg1: i32, %arg2: i32) -> (i32, i32) {
    %c0_i32 = arith.constant 0 : i32
    %c0_i32_0 = arith.constant 0 : i32
    return %c0_i32, %arg1 : i32, i32
  }
  func.func @transform_3(%arg0: i32, %arg1: i32, %arg2: i32) -> (i32, i32) {
    %c0_i32 = arith.constant 0 : i32
    return %arg0, %arg1 : i32, i32
  }
}

module attributes {stable_mosaic.version = 11 : i64} {
  func.func @_linear_kernel(%arg0: i32, %arg1: i32, %arg2: i32, %arg3: memref<16x128xbf16, #tpu.memory_space<vmem>>, %arg4: memref<128x256xbf16, #tpu.memory_space<vmem>>, %arg5: memref<1x256xf32, #tpu.memory_space<vmem>>, %arg6: memref<16x256xbf16, #tpu.memory_space<vmem>>, %arg7: memref<16x256xf32, #tpu.memory_space<vmem>>) attributes {dimension_semantics = [#tpu.dimension_semantics<parallel>, #tpu.dimension_semantics<parallel>, #tpu.dimension_semantics<arbitrary>], iteration_bounds = array<i64: 1, 1, 1>, scalar_prefetch = 0 : i64, scratch_operands = 1 : i64, tpu.core_type = #tpu.core_type<tc>, window_params = [{transform_indices = @transform_0, window_bounds = array<i64: 16, 128>}, {transform_indices = @transform_1, window_bounds = array<i64: 128, 256>}, {transform_indices = @transform_2, window_bounds = array<i64: 1, 256>}, {transform_indices = @transform_3, window_bounds = array<i64: 16, 256>}]} {
    %c0_i32 = arith.constant 0 : i32
    %0 = arith.cmpi eq, %arg2, %c0_i32 : i32
    %1 = arith.extui %0 : i1 to i32
    %c0_i32_0 = arith.constant 0 : i32
    %2 = arith.cmpi ne, %1, %c0_i32_0 : i32
    scf.if %2 {
      %cst_10 = arith.constant 0.000000e+00 : f32
      %12 = vector.broadcast %cst_10 : f32 to vector<16x256xf32>
      %c0_11 = arith.constant 0 : index
      %c0_12 = arith.constant 0 : index
      %13 = vector.load %arg7[%c0_11, %c0_12] : memref<16x256xf32, #tpu.memory_space<vmem>>, vector<16x256xf32>
      tpu.vector_store %arg7[%c0_11, %c0_12], %12 {strides = array<i32>} : memref<16x256xf32, #tpu.memory_space<vmem>>, vector<16x256xf32>,
    } else {
    }
    %c0 = arith.constant 0 : index
    %c0_1 = arith.constant 0 : index
    %3 = vector.load %arg3[%c0, %c0_1] : memref<16x128xbf16, #tpu.memory_space<vmem>>, vector<16x128xbf16>
    %c0_2 = arith.constant 0 : index
    %c0_3 = arith.constant 0 : index
    %4 = vector.load %arg7[%c0_2, %c0_3] : memref<16x256xf32, #tpu.memory_space<vmem>>, vector<16x256xf32>
    %c0_4 = arith.constant 0 : index
    %c0_5 = arith.constant 0 : index
    %5 = vector.load %arg4[%c0_4, %c0_5] : memref<128x256xbf16, #tpu.memory_space<vmem>>, vector<128x256xbf16>
    %cst = arith.constant dense<0.000000e+00> : vector<16x256xf32>
    %6 = tpu.matmul %3, %5, %cst {dimension_numbers = #tpu.dot_dimension_numbers<[1], [0], [0], [1], [0, 0, 1, 1], [], []>} : vector<16x128xbf16>, vector<128x256xbf16>, vector<16x256xf32> -> vector<16x256xf32>
    %7 = arith.addf %4, %6 : vector<16x256xf32>
    %c0_6 = arith.constant 0 : index
    %c0_7 = arith.constant 0 : index
    %8 = vector.load %arg7[%c0_6, %c0_7] : memref<16x256xf32, #tpu.memory_space<vmem>>, vector<16x256xf32>
    tpu.vector_store %arg7[%c0_6, %c0_7], %7 {strides = array<i32>} : memref<16x256xf32, #tpu.memory_space<vmem>>, vector<16x256xf32>,
    %c0_i32_8 = arith.constant 0 : i32
    %9 = arith.cmpi eq, %arg2, %c0_i32_8 : i32
    %10 = arith.extui %9 : i1 to i32
    %c0_i32_9 = arith.constant 0 : i32
    %11 = arith.cmpi ne, %10, %c0_i32_9 : i32
    scf.if %11 {
      %c0_10 = arith.constant 0 : index
      %c0_11 = arith.constant 0 : index
      %12 = vector.load %arg7[%c0_10, %c0_11] : memref<16x256xf32, #tpu.memory_space<vmem>>, vector<16x256xf32>
      %c0_12 = arith.constant 0 : index
      %c0_13 = arith.constant 0 : index
      %13 = vector.load %arg5[%c0_12, %c0_13] : memref<1x256xf32, #tpu.memory_space<vmem>>, vector<1x256xf32>
      %14 = vector.broadcast %13 : vector<1x256xf32> to vector<16x256xf32>
      %15 = arith.addf %12, %14 : vector<16x256xf32>
      %cst_14 = arith.constant 5.000000e-01 : f32
      %16 = vector.broadcast %cst_14 : f32 to vector<16x256xf32>
      %17 = arith.mulf %16, %15 : vector<16x256xf32>
      %18 = arith.mulf %15, %15 : vector<16x256xf32>
      %19 = arith.mulf %15, %18 : vector<16x256xf32>
      %cst_15 = arith.constant 4.471500e-02 : f32
      %20 = vector.broadcast %cst_15 : f32 to vector<16x256xf32>
      %21 = arith.mulf %20, %19 : vector<16x256xf32>
      %22 = arith.addf %15, %21 : vector<16x256xf32>
      %cst_16 = arith.constant 0.797884583 : f32
      %23 = vector.broadcast %cst_16 : f32 to vector<16x256xf32>
      %24 = arith.mulf %23, %22 : vector<16x256xf32>
      %25 = math.tanh %24 : vector<16x256xf32>
      %cst_17 = arith.constant 1.000000e+00 : f32
      %26 = vector.broadcast %cst_17 : f32 to vector<16x256xf32>
      %27 = arith.addf %26, %25 : vector<16x256xf32>
      %28 = arith.mulf %17, %27 : vector<16x256xf32>
      %29 = arith.truncf %28 : vector<16x256xf32> to vector<16x256xbf16>
      %c0_18 = arith.constant 0 : index
      %c0_19 = arith.constant 0 : index
      %30 = vector.load %arg6[%c0_18, %c0_19] : memref<16x256xbf16, #tpu.memory_space<vmem>>, vector<16x256xbf16>
      tpu.vector_store %arg6[%c0_18, %c0_19], %29 {strides = array<i32>} : memref<16x256xbf16, #tpu.memory_space<vmem>>, vector<16x256xbf16>,
    } else {
    }
    return
  }
  func.func @transform_0(%arg0: i32, %arg1: i32, %arg2: i32) -> (i32, i32) {
    %c0_i32 = arith.constant 0 : i32
    return %arg0, %arg2 : i32, i32
  }
  func.func @transform_1(%arg0: i32, %arg1: i32, %arg2: i32) -> (i32, i32) {
    %c0_i32 = arith.constant 0 : i32
    return %arg2, %arg1 : i32, i32
  }
  func.func @transform_2(%arg0: i32, %arg1: i32, %arg2: i32) -> (i32, i32) {
    %c0_i32 = arith.constant 0 : i32
    %c0_i32_0 = arith.constant 0 : i32
    return %c0_i32, %arg1 : i32, i32
  }
  func.func @transform_3(%arg0: i32, %arg1: i32, %arg2: i32) -> (i32, i32) {
    %c0_i32 = arith.constant 0 : i32
    return %arg0, %arg1 : i32, i32
  }
}

module attributes {stable_mosaic.version = 11 : i64} {
  func.func @_linear_kernel(%arg0: i32, %arg1: i32, %arg2: i32, %arg3: memref<16x256xbf16, #tpu.memory_space<vmem>>, %arg4: memref<256x128xbf16, #tpu.memory_space<vmem>>, %arg5: memref<1x128xf32, #tpu.memory_space<vmem>>, %arg6: memref<16x128xf32, #tpu.memory_space<vmem>>, %arg7: memref<16x128xf32, #tpu.memory_space<vmem>>) attributes {dimension_semantics = [#tpu.dimension_semantics<parallel>, #tpu.dimension_semantics<parallel>, #tpu.dimension_semantics<arbitrary>], iteration_bounds = array<i64: 1, 1, 1>, scalar_prefetch = 0 : i64, scratch_operands = 1 : i64, tpu.core_type = #tpu.core_type<tc>, window_params = [{transform_indices = @transform_0, window_bounds = array<i64: 16, 256>}, {transform_indices = @transform_1, window_bounds = array<i64: 256, 128>}, {transform_indices = @transform_2, window_bounds = array<i64: 1, 128>}, {transform_indices = @transform_3, window_bounds = array<i64: 16, 128>}]} {
    %c0_i32 = arith.constant 0 : i32
    %0 = arith.cmpi eq, %arg2, %c0_i32 : i32
    %1 = arith.extui %0 : i1 to i32
    %c0_i32_0 = arith.constant 0 : i32
    %2 = arith.cmpi ne, %1, %c0_i32_0 : i32
    scf.if %2 {
      %cst_10 = arith.constant 0.000000e+00 : f32
      %12 = vector.broadcast %cst_10 : f32 to vector<16x128xf32>
      %c0_11 = arith.constant 0 : index
      %c0_12 = arith.constant 0 : index
      %13 = vector.load %arg7[%c0_11, %c0_12] : memref<16x128xf32, #tpu.memory_space<vmem>>, vector<16x128xf32>
      tpu.vector_store %arg7[%c0_11, %c0_12], %12 {strides = array<i32>} : memref<16x128xf32, #tpu.memory_space<vmem>>, vector<16x128xf32>,
    } else {
    }
    %c0 = arith.constant 0 : index
    %c0_1 = arith.constant 0 : index
    %3 = vector.load %arg3[%c0, %c0_1] : memref<16x256xbf16, #tpu.memory_space<vmem>>, vector<16x256xbf16>
    %c0_2 = arith.constant 0 : index
    %c0_3 = arith.constant 0 : index
    %4 = vector.load %arg7[%c0_2, %c0_3] : memref<16x128xf32, #tpu.memory_space<vmem>>, vector<16x128xf32>
    %c0_4 = arith.constant 0 : index
    %c0_5 = arith.constant 0 : index
    %5 = vector.load %arg4[%c0_4, %c0_5] : memref<256x128xbf16, #tpu.memory_space<vmem>>, vector<256x128xbf16>
    %cst = arith.constant dense<0.000000e+00> : vector<16x128xf32>
    %6 = tpu.matmul %3, %5, %cst {dimension_numbers = #tpu.dot_dimension_numbers<[1], [0], [0], [1], [0, 0, 1, 1], [], []>} : vector<16x256xbf16>, vector<256x128xbf16>, vector<16x128xf32> -> vector<16x128xf32>
    %7 = arith.addf %4, %6 : vector<16x128xf32>
    %c0_6 = arith.constant 0 : index
    %c0_7 = arith.constant 0 : index
    %8 = vector.load %arg7[%c0_6, %c0_7] : memref<16x128xf32, #tpu.memory_space<vmem>>, vector<16x128xf32>
    tpu.vector_store %arg7[%c0_6, %c0_7], %7 {strides = array<i32>} : memref<16x128xf32, #tpu.memory_space<vmem>>, vector<16x128xf32>,
    %c0_i32_8 = arith.constant 0 : i32
    %9 = arith.cmpi eq, %arg2, %c0_i32_8 : i32
    %10 = arith.extui %9 : i1 to i32
    %c0_i32_9 = arith.constant 0 : i32
    %11 = arith.cmpi ne, %10, %c0_i32_9 : i32
    scf.if %11 {
      %c0_10 = arith.constant 0 : index
      %c0_11 = arith.constant 0 : index
      %12 = vector.load %arg7[%c0_10, %c0_11] : memref<16x128xf32, #tpu.memory_space<vmem>>, vector<16x128xf32>
      %c0_12 = arith.constant 0 : index
      %c0_13 = arith.constant 0 : index
      %13 = vector.load %arg5[%c0_12, %c0_13] : memref<1x128xf32, #tpu.memory_space<vmem>>, vector<1x128xf32>
      %14 = vector.broadcast %13 : vector<1x128xf32> to vector<16x128xf32>
      %15 = arith.addf %12, %14 : vector<16x128xf32>
      %c0_14 = arith.constant 0 : index
      %c0_15 = arith.constant 0 : index
      %16 = vector.load %arg6[%c0_14, %c0_15] : memref<16x128xf32, #tpu.memory_space<vmem>>, vector<16x128xf32>
      tpu.vector_store %arg6[%c0_14, %c0_15], %15 {strides = array<i32>} : memref<16x128xf32, #tpu.memory_space<vmem>>, vector<16x128xf32>,
    } else {
    }
    return
  }
  func.func @transform_0(%arg0: i32, %arg1: i32, %arg2: i32) -> (i32, i32) {
    %c0_i32 = arith.constant 0 : i32
    return %arg0, %arg2 : i32, i32
  }
  func.func @transform_1(%arg0: i32, %arg1: i32, %arg2: i32) -> (i32, i32) {
    %c0_i32 = arith.constant 0 : i32
    return %arg2, %arg1 : i32, i32
  }
  func.func @transform_2(%arg0: i32, %arg1: i32, %arg2: i32) -> (i32, i32) {
    %c0_i32 = arith.constant 0 : i32
    %c0_i32_0 = arith.constant 0 : i32
    return %c0_i32, %arg1 : i32, i32
  }
  func.func @transform_3(%arg0: i32, %arg1: i32, %arg2: i32) -> (i32, i32) {
    %c0_i32 = arith.constant 0 : i32
    return %arg0, %arg1 : i32, i32
  }
}

module attributes {stable_mosaic.version = 11 : i64} {
  func.func @_linear_kernel(%arg0: i32, %arg1: i32, %arg2: i32, %arg3: memref<8x128xbf16, #tpu.memory_space<vmem>>, %arg4: memref<128x256xbf16, #tpu.memory_space<vmem>>, %arg5: memref<1x256xf32, #tpu.memory_space<vmem>>, %arg6: memref<8x256xf32, #tpu.memory_space<vmem>>, %arg7: memref<8x256xf32, #tpu.memory_space<vmem>>) attributes {dimension_semantics = [#tpu.dimension_semantics<parallel>, #tpu.dimension_semantics<parallel>, #tpu.dimension_semantics<arbitrary>], iteration_bounds = array<i64: 1, 1, 1>, scalar_prefetch = 0 : i64, scratch_operands = 1 : i64, tpu.core_type = #tpu.core_type<tc>, window_params = [{transform_indices = @transform_0, window_bounds = array<i64: 8, 128>}, {transform_indices = @transform_1, window_bounds = array<i64: 128, 256>}, {transform_indices = @transform_2, window_bounds = array<i64: 1, 256>}, {transform_indices = @transform_3, window_bounds = array<i64: 8, 256>}]} {
    %c0_i32 = arith.constant 0 : i32
    %0 = arith.cmpi eq, %arg2, %c0_i32 : i32
    %1 = arith.extui %0 : i1 to i32
    %c0_i32_0 = arith.constant 0 : i32
    %2 = arith.cmpi ne, %1, %c0_i32_0 : i32
    scf.if %2 {
      %cst_11 = arith.constant 0.000000e+00 : f32
      %20 = vector.broadcast %cst_11 : f32 to vector<8x256xf32>
      %c0_12 = arith.constant 0 : index
      %c0_13 = arith.constant 0 : index
      %21 = vector.load %arg7[%c0_12, %c0_13] : memref<8x256xf32, #tpu.memory_space<vmem>>, vector<8x256xf32>
      tpu.vector_store %arg7[%c0_12, %c0_13], %20 {strides = array<i32>} : memref<8x256xf32, #tpu.memory_space<vmem>>, vector<8x256xf32>,
    } else {
    }
    %c0 = arith.constant 0 : index
    %c0_1 = arith.constant 0 : index
    %3 = vector.load %arg3[%c0, %c0_1] : memref<8x128xbf16, #tpu.memory_space<vmem>>, vector<8x128xbf16>
    %4 = arith.extf %3 : vector<8x128xbf16> to vector<8x128xf32>
    %5 = arith.negf %4 : vector<8x128xf32>
    %6 = math.exp %5 : vector<8x128xf32>
    %cst = arith.constant 1.000000e+00 : f32
    %7 = vector.broadcast %cst : f32 to vector<8x128xf32>
    %8 = arith.addf %7, %6 : vector<8x128xf32>
    %9 = arith.divf %7, %8 : vector<8x128xf32>
    %10 = arith.mulf %4, %9 : vector<8x128xf32>
    %11 = arith.truncf %10 : vector<8x128xf32> to vector<8x128xbf16>
    %c0_2 = arith.constant 0 : index
    %c0_3 = arith.constant 0 : index
    %12 = vector.load %arg7[%c0_2, %c0_3] : memref<8x256xf32, #tpu.memory_space<vmem>>, vector<8x256xf32>
    %c0_4 = arith.constant 0 : index
    %c0_5 = arith.constant 0 : index
    %13 = vector.load %arg4[%c0_4, %c0_5] : memref<128x256xbf16, #tpu.memory_space<vmem>>, vector<128x256xbf16>
    %cst_6 = arith.constant dense<0.000000e+00> : vector<8x256xf32>
    %14 = tpu.matmul %11, %13, %cst_6 {dimension_numbers = #tpu.dot_dimension_numbers<[1], [0], [0], [1], [0, 0, 1, 1], [], []>} : vector<8x128xbf16>, vector<128x256xbf16>, vector<8x256xf32> -> vector<8x256xf32>
    %15 = arith.addf %12, %14 : vector<8x256xf32>
    %c0_7 = arith.constant 0 : index
    %c0_8 = arith.constant 0 : index
    %16 = vector.load %arg7[%c0_7, %c0_8] : memref<8x256xf32, #tpu.memory_space<vmem>>, vector<8x256xf32>
    tpu.vector_store %arg7[%c0_7, %c0_8], %15 {strides = array<i32>} : memref<8x256xf32, #tpu.memory_space<vmem>>, vector<8x256xf32>,
    %c0_i32_9 = arith.constant 0 : i32
    %17 = arith.cmpi eq, %arg2, %c0_i32_9 : i32
    %18 = arith.extui %17 : i1 to i32
    %c0_i32_10 = arith.constant 0 : i32
    %19 = arith.cmpi ne, %18, %c0_i32_10 : i32
    scf.if %19 {
      %c0_11 = arith.constant 0 : index
      %c0_12 = arith.constant 0 : index
      %20 = vector.load %arg7[%c0_11, %c0_12] : memref<8x256xf32, #tpu.memory_space<vmem>>, vector<8x256xf32>
      %c0_13 = arith.constant 0 : index
      %c0_14 = arith.constant 0 : index
      %21 = vector.load %arg5[%c0_13, %c0_14] : memref<1x256xf32, #tpu.memory_space<vmem>>, vector<1x256xf32>
      %22 = vector.broadcast %21 : vector<1x256xf32> to vector<8x256xf32>
      %23 = arith.addf %20, %22 : vector<8x256xf32>
      %c0_15 = arith.constant 0 : index
      %c0_16 = arith.constant 0 : index
      %24 = vector.load %arg6[%c0_15, %c0_16] : memref<8x256xf32, #tpu.memory_space<vmem>>, vector<8x256xf32>
      tpu.vector_store %arg6[%c0_15, %c0_16], %23 {strides = array<i32>} : memref<8x256xf32, #tpu.memory_space<vmem>>, vector<8x256xf32>,
    } else {
    }
    return
  }
  func.func @transform_0(%arg0: i32, %arg1: i32, %arg2: i32) -> (i32, i32) {
    %c0_i32 = arith.constant 0 : i32
    return %arg0, %arg2 : i32, i32
  }
  func.func @transform_1(%arg0: i32, %arg1: i32, %arg2: i32) -> (i32, i32) {
    %c0_i32 = arith.constant 0 : i32
    return %arg2, %arg1 : i32, i32
  }
  func.func @transform_2(%arg0: i32, %arg1: i32, %arg2: i32) -> (i32, i32) {
    %c0_i32 = arith.constant 0 : i32
    %c0_i32_0 = arith.constant 0 : i32
    return %c0_i32, %arg1 : i32, i32
  }
  func.func @transform_3(%arg0: i32, %arg1: i32, %arg2: i32) -> (i32, i32) {
    %c0_i32 = arith.constant 0 : i32
    return %arg0, %arg1 : i32, i32
  }
}

module attributes {stable_mosaic.version = 11 : i64} {
  func.func @_ln_mod_kernel(%arg0: i32, %arg1: i32, %arg2: memref<1x24x64xf32, #tpu.memory_space<vmem>>, %arg3: memref<1x1x64xf32, #tpu.memory_space<vmem>>, %arg4: memref<1x1x64xf32, #tpu.memory_space<vmem>>, %arg5: memref<1x24x64xf32, #tpu.memory_space<vmem>>) attributes {dimension_semantics = [#tpu.dimension_semantics<parallel>, #tpu.dimension_semantics<parallel>], iteration_bounds = array<i64: 2, 1>, scalar_prefetch = 0 : i64, scratch_operands = 0 : i64, tpu.core_type = #tpu.core_type<tc>, window_params = [{transform_indices = @transform_0, window_bounds = array<i64: 1, 24, 64>}, {transform_indices = @transform_1, window_bounds = array<i64: 1, 1, 64>}, {transform_indices = @transform_2, window_bounds = array<i64: 1, 1, 64>}, {transform_indices = @transform_3, window_bounds = array<i64: 1, 24, 64>}]} {
    %c0 = arith.constant 0 : index
    %c0_0 = arith.constant 0 : index
    %c0_1 = arith.constant 0 : index
    %0 = vector.load %arg2[%c0, %c0_0, %c0_1] : memref<1x24x64xf32, #tpu.memory_space<vmem>>, vector<1x24x64xf32>
    %1 = vector.shape_cast %0 : vector<1x24x64xf32> to vector<24x64xf32>
    %cst = arith.constant dense<0.000000e+00> : vector<24xf32>
    %2 = vector.multi_reduction <add>, %1, %cst [1] : vector<24x64xf32> to vector<24xf32>
    %3 = vector.shape_cast %2 : vector<24xf32> to vector<24x1xf32>
    %cst_2 = arith.constant 6.400000e+01 : f32
    %4 = vector.broadcast %cst_2 : f32 to vector<24x1xf32>
    %5 = arith.divf %3, %4 : vector<24x1xf32>
    %6 = vector.broadcast %5 : vector<24x1xf32> to vector<24x64xf32>
    %7 = arith.subf %1, %6 : vector<24x64xf32>
    %8 = arith.mulf %7, %7 : vector<24x64xf32>
    %cst_3 = arith.constant dense<0.000000e+00> : vector<24xf32>
    %9 = vector.multi_reduction <add>, %8, %cst_3 [1] : vector<24x64xf32> to vector<24xf32>
    %10 = vector.shape_cast %9 : vector<24xf32> to vector<24x1xf32>
    %cst_4 = arith.constant 6.400000e+01 : f32
    %11 = vector.broadcast %cst_4 : f32 to vector<24x1xf32>
    %12 = arith.divf %10, %11 : vector<24x1xf32>
    %cst_5 = arith.constant 9.99999997E-7 : f32
    %13 = vector.broadcast %cst_5 : f32 to vector<24x1xf32>
    %14 = arith.addf %12, %13 : vector<24x1xf32>
    %15 = math.rsqrt %14 : vector<24x1xf32>
    %16 = vector.broadcast %15 : vector<24x1xf32> to vector<24x64xf32>
    %17 = arith.mulf %7, %16 : vector<24x64xf32>
    %c0_6 = arith.constant 0 : index
    %c0_7 = arith.constant 0 : index
    %c0_8 = arith.constant 0 : index
    %18 = vector.load %arg3[%c0_6, %c0_7, %c0_8] : memref<1x1x64xf32, #tpu.memory_space<vmem>>, vector<1x1x64xf32>
    %19 = vector.shape_cast %18 : vector<1x1x64xf32> to vector<1x64xf32>
    %cst_9 = arith.constant 1.000000e+00 : f32
    %20 = vector.broadcast %cst_9 : f32 to vector<1x64xf32>
    %21 = arith.addf %20, %19 : vector<1x64xf32>
    %22 = vector.broadcast %21 : vector<1x64xf32> to vector<24x64xf32>
    %23 = arith.mulf %22, %17 : vector<24x64xf32>
    %c0_10 = arith.constant 0 : index
    %c0_11 = arith.constant 0 : index
    %c0_12 = arith.constant 0 : index
    %24 = vector.load %arg4[%c0_10, %c0_11, %c0_12] : memref<1x1x64xf32, #tpu.memory_space<vmem>>, vector<1x1x64xf32>
    %25 = vector.shape_cast %24 : vector<1x1x64xf32> to vector<1x64xf32>
    %26 = vector.broadcast %25 : vector<1x64xf32> to vector<24x64xf32>
    %27 = arith.addf %23, %26 : vector<24x64xf32>
    %c0_13 = arith.constant 0 : index
    %c0_14 = arith.constant 0 : index
    %c0_15 = arith.constant 0 : index
    %28 = vector.load %arg5[%c0_13, %c0_14, %c0_15] : memref<1x24x64xf32, #tpu.memory_space<vmem>>, vector<1x24x64xf32>
    %29 = vector.shape_cast %28 : vector<1x24x64xf32> to vector<24x64xf32>
    %30 = vector.shape_cast %27 : vector<24x64xf32> to vector<1x24x64xf32>
    tpu.vector_store %arg5[%c0_13, %c0_14, %c0_15], %30 {strides = array<i32>} : memref<1x24x64xf32, #tpu.memory_space<vmem>>, vector<1x24x64xf32>,
    return
  }
  func.func @transform_0(%arg0: i32, %arg1: i32) -> (i32, i32, i32) {
    %c0_i32 = arith.constant 0 : i32
    %c0_i32_0 = arith.constant 0 : i32
    return %arg0, %arg1, %c0_i32 : i32, i32, i32
  }
  func.func @transform_1(%arg0: i32, %arg1: i32) -> (i32, i32, i32) {
    %c0_i32 = arith.constant 0 : i32
    %c0_i32_0 = arith.constant 0 : i32
    %c0_i32_1 = arith.constant 0 : i32
    return %arg0, %c0_i32, %c0_i32_0 : i32, i32, i32
  }
  func.func @transform_2(%arg0: i32, %arg1: i32) -> (i32, i32, i32) {
    %c0_i32 = arith.constant 0 : i32
    %c0_i32_0 = arith.constant 0 : i32
    %c0_i32_1 = arith.constant 0 : i32
    return %arg0, %c0_i32, %c0_i32_0 : i32, i32, i32
  }
  func.func @transform_3(%arg0: i32, %arg1: i32) -> (i32, i32, i32) {
    %c0_i32 = arith.constant 0 : i32
    %c0_i32_0 = arith.constant 0 : i32
    return %arg0, %arg1, %c0_i32 : i32, i32, i32
  }
}

module attributes {stable_mosaic.version = 11 : i64} {
  func.func @_linear_kernel(%arg0: i32, %arg1: i32, %arg2: i32, %arg3: memref<48x128xbf16, #tpu.memory_space<vmem>>, %arg4: memref<128x256xbf16, #tpu.memory_space<vmem>>, %arg5: memref<1x256xf32, #tpu.memory_space<vmem>>, %arg6: memref<48x256xf32, #tpu.memory_space<vmem>>, %arg7: memref<48x256xf32, #tpu.memory_space<vmem>>) attributes {dimension_semantics = [#tpu.dimension_semantics<parallel>, #tpu.dimension_semantics<parallel>, #tpu.dimension_semantics<arbitrary>], iteration_bounds = array<i64: 1, 2, 1>, scalar_prefetch = 0 : i64, scratch_operands = 1 : i64, tpu.core_type = #tpu.core_type<tc>, window_params = [{transform_indices = @transform_0, window_bounds = array<i64: 48, 128>}, {transform_indices = @transform_1, window_bounds = array<i64: 128, 256>}, {transform_indices = @transform_2, window_bounds = array<i64: 1, 256>}, {transform_indices = @transform_3, window_bounds = array<i64: 48, 256>}]} {
    %c0_i32 = arith.constant 0 : i32
    %0 = arith.cmpi eq, %arg2, %c0_i32 : i32
    %1 = arith.extui %0 : i1 to i32
    %c0_i32_0 = arith.constant 0 : i32
    %2 = arith.cmpi ne, %1, %c0_i32_0 : i32
    scf.if %2 {
      %cst_10 = arith.constant 0.000000e+00 : f32
      %12 = vector.broadcast %cst_10 : f32 to vector<48x256xf32>
      %c0_11 = arith.constant 0 : index
      %c0_12 = arith.constant 0 : index
      %13 = vector.load %arg7[%c0_11, %c0_12] : memref<48x256xf32, #tpu.memory_space<vmem>>, vector<48x256xf32>
      tpu.vector_store %arg7[%c0_11, %c0_12], %12 {strides = array<i32>} : memref<48x256xf32, #tpu.memory_space<vmem>>, vector<48x256xf32>,
    } else {
    }
    %c0 = arith.constant 0 : index
    %c0_1 = arith.constant 0 : index
    %3 = vector.load %arg3[%c0, %c0_1] : memref<48x128xbf16, #tpu.memory_space<vmem>>, vector<48x128xbf16>
    %c0_2 = arith.constant 0 : index
    %c0_3 = arith.constant 0 : index
    %4 = vector.load %arg7[%c0_2, %c0_3] : memref<48x256xf32, #tpu.memory_space<vmem>>, vector<48x256xf32>
    %c0_4 = arith.constant 0 : index
    %c0_5 = arith.constant 0 : index
    %5 = vector.load %arg4[%c0_4, %c0_5] : memref<128x256xbf16, #tpu.memory_space<vmem>>, vector<128x256xbf16>
    %cst = arith.constant dense<0.000000e+00> : vector<48x256xf32>
    %6 = tpu.matmul %3, %5, %cst {dimension_numbers = #tpu.dot_dimension_numbers<[1], [0], [0], [1], [0, 0, 1, 1], [], []>} : vector<48x128xbf16>, vector<128x256xbf16>, vector<48x256xf32> -> vector<48x256xf32>
    %7 = arith.addf %4, %6 : vector<48x256xf32>
    %c0_6 = arith.constant 0 : index
    %c0_7 = arith.constant 0 : index
    %8 = vector.load %arg7[%c0_6, %c0_7] : memref<48x256xf32, #tpu.memory_space<vmem>>, vector<48x256xf32>
    tpu.vector_store %arg7[%c0_6, %c0_7], %7 {strides = array<i32>} : memref<48x256xf32, #tpu.memory_space<vmem>>, vector<48x256xf32>,
    %c0_i32_8 = arith.constant 0 : i32
    %9 = arith.cmpi eq, %arg2, %c0_i32_8 : i32
    %10 = arith.extui %9 : i1 to i32
    %c0_i32_9 = arith.constant 0 : i32
    %11 = arith.cmpi ne, %10, %c0_i32_9 : i32
    scf.if %11 {
      %c0_10 = arith.constant 0 : index
      %c0_11 = arith.constant 0 : index
      %12 = vector.load %arg7[%c0_10, %c0_11] : memref<48x256xf32, #tpu.memory_space<vmem>>, vector<48x256xf32>
      %c0_12 = arith.constant 0 : index
      %c0_13 = arith.constant 0 : index
      %13 = vector.load %arg5[%c0_12, %c0_13] : memref<1x256xf32, #tpu.memory_space<vmem>>, vector<1x256xf32>
      %14 = vector.broadcast %13 : vector<1x256xf32> to vector<48x256xf32>
      %15 = arith.addf %12, %14 : vector<48x256xf32>
      %c0_14 = arith.constant 0 : index
      %c0_15 = arith.constant 0 : index
      %16 = vector.load %arg6[%c0_14, %c0_15] : memref<48x256xf32, #tpu.memory_space<vmem>>, vector<48x256xf32>
      tpu.vector_store %arg6[%c0_14, %c0_15], %15 {strides = array<i32>} : memref<48x256xf32, #tpu.memory_space<vmem>>, vector<48x256xf32>,
    } else {
    }
    return
  }
  func.func @transform_0(%arg0: i32, %arg1: i32, %arg2: i32) -> (i32, i32) {
    %c0_i32 = arith.constant 0 : i32
    return %arg0, %arg2 : i32, i32
  }
  func.func @transform_1(%arg0: i32, %arg1: i32, %arg2: i32) -> (i32, i32) {
    %c0_i32 = arith.constant 0 : i32
    return %arg2, %arg1 : i32, i32
  }
  func.func @transform_2(%arg0: i32, %arg1: i32, %arg2: i32) -> (i32, i32) {
    %c0_i32 = arith.constant 0 : i32
    %c0_i32_0 = arith.constant 0 : i32
    return %c0_i32, %arg1 : i32, i32
  }
  func.func @transform_3(%arg0: i32, %arg1: i32, %arg2: i32) -> (i32, i32) {
    %c0_i32 = arith.constant 0 : i32
    return %arg0, %arg1 : i32, i32
  }
}

module attributes {stable_mosaic.version = 11 : i64} {
  func.func @_linear_kernel(%arg0: i32, %arg1: i32, %arg2: i32, %arg3: memref<48x384xbf16, #tpu.memory_space<vmem>>, %arg4: memref<384x128xbf16, #tpu.memory_space<vmem>>, %arg5: memref<1x128xf32, #tpu.memory_space<vmem>>, %arg6: memref<48x128xf32, #tpu.memory_space<vmem>>, %arg7: memref<48x128xf32, #tpu.memory_space<vmem>>) attributes {dimension_semantics = [#tpu.dimension_semantics<parallel>, #tpu.dimension_semantics<parallel>, #tpu.dimension_semantics<arbitrary>], iteration_bounds = array<i64: 1, 1, 1>, scalar_prefetch = 0 : i64, scratch_operands = 1 : i64, tpu.core_type = #tpu.core_type<tc>, window_params = [{transform_indices = @transform_0, window_bounds = array<i64: 48, 384>}, {transform_indices = @transform_1, window_bounds = array<i64: 384, 128>}, {transform_indices = @transform_2, window_bounds = array<i64: 1, 128>}, {transform_indices = @transform_3, window_bounds = array<i64: 48, 128>}]} {
    %c0_i32 = arith.constant 0 : i32
    %0 = arith.cmpi eq, %arg2, %c0_i32 : i32
    %1 = arith.extui %0 : i1 to i32
    %c0_i32_0 = arith.constant 0 : i32
    %2 = arith.cmpi ne, %1, %c0_i32_0 : i32
    scf.if %2 {
      %cst_10 = arith.constant 0.000000e+00 : f32
      %12 = vector.broadcast %cst_10 : f32 to vector<48x128xf32>
      %c0_11 = arith.constant 0 : index
      %c0_12 = arith.constant 0 : index
      %13 = vector.load %arg7[%c0_11, %c0_12] : memref<48x128xf32, #tpu.memory_space<vmem>>, vector<48x128xf32>
      tpu.vector_store %arg7[%c0_11, %c0_12], %12 {strides = array<i32>} : memref<48x128xf32, #tpu.memory_space<vmem>>, vector<48x128xf32>,
    } else {
    }
    %c0 = arith.constant 0 : index
    %c0_1 = arith.constant 0 : index
    %3 = vector.load %arg3[%c0, %c0_1] : memref<48x384xbf16, #tpu.memory_space<vmem>>, vector<48x384xbf16>
    %c0_2 = arith.constant 0 : index
    %c0_3 = arith.constant 0 : index
    %4 = vector.load %arg7[%c0_2, %c0_3] : memref<48x128xf32, #tpu.memory_space<vmem>>, vector<48x128xf32>
    %c0_4 = arith.constant 0 : index
    %c0_5 = arith.constant 0 : index
    %5 = vector.load %arg4[%c0_4, %c0_5] : memref<384x128xbf16, #tpu.memory_space<vmem>>, vector<384x128xbf16>
    %cst = arith.constant dense<0.000000e+00> : vector<48x128xf32>
    %6 = tpu.matmul %3, %5, %cst {dimension_numbers = #tpu.dot_dimension_numbers<[1], [0], [0], [1], [0, 0, 1, 1], [], []>} : vector<48x384xbf16>, vector<384x128xbf16>, vector<48x128xf32> -> vector<48x128xf32>
    %7 = arith.addf %4, %6 : vector<48x128xf32>
    %c0_6 = arith.constant 0 : index
    %c0_7 = arith.constant 0 : index
    %8 = vector.load %arg7[%c0_6, %c0_7] : memref<48x128xf32, #tpu.memory_space<vmem>>, vector<48x128xf32>
    tpu.vector_store %arg7[%c0_6, %c0_7], %7 {strides = array<i32>} : memref<48x128xf32, #tpu.memory_space<vmem>>, vector<48x128xf32>,
    %c0_i32_8 = arith.constant 0 : i32
    %9 = arith.cmpi eq, %arg2, %c0_i32_8 : i32
    %10 = arith.extui %9 : i1 to i32
    %c0_i32_9 = arith.constant 0 : i32
    %11 = arith.cmpi ne, %10, %c0_i32_9 : i32
    scf.if %11 {
      %c0_10 = arith.constant 0 : index
      %c0_11 = arith.constant 0 : index
      %12 = vector.load %arg7[%c0_10, %c0_11] : memref<48x128xf32, #tpu.memory_space<vmem>>, vector<48x128xf32>
      %c0_12 = arith.constant 0 : index
      %c0_13 = arith.constant 0 : index
      %13 = vector.load %arg5[%c0_12, %c0_13] : memref<1x128xf32, #tpu.memory_space<vmem>>, vector<1x128xf32>
      %14 = vector.broadcast %13 : vector<1x128xf32> to vector<48x128xf32>
      %15 = arith.addf %12, %14 : vector<48x128xf32>
      %c0_14 = arith.constant 0 : index
      %c0_15 = arith.constant 0 : index
      %16 = vector.load %arg6[%c0_14, %c0_15] : memref<48x128xf32, #tpu.memory_space<vmem>>, vector<48x128xf32>
      tpu.vector_store %arg6[%c0_14, %c0_15], %15 {strides = array<i32>} : memref<48x128xf32, #tpu.memory_space<vmem>>, vector<48x128xf32>,
    } else {
    }
    return
  }
  func.func @transform_0(%arg0: i32, %arg1: i32, %arg2: i32) -> (i32, i32) {
    %c0_i32 = arith.constant 0 : i32
    return %arg0, %arg2 : i32, i32
  }
  func.func @transform_1(%arg0: i32, %arg1: i32, %arg2: i32) -> (i32, i32) {
    %c0_i32 = arith.constant 0 : i32
    return %arg2, %arg1 : i32, i32
  }
  func.func @transform_2(%arg0: i32, %arg1: i32, %arg2: i32) -> (i32, i32) {
    %c0_i32 = arith.constant 0 : i32
    %c0_i32_0 = arith.constant 0 : i32
    return %c0_i32, %arg1 : i32, i32
  }
  func.func @transform_3(%arg0: i32, %arg1: i32, %arg2: i32) -> (i32, i32) {
    %c0_i32 = arith.constant 0 : i32
    return %arg0, %arg1 : i32, i32
  }
}

module attributes {stable_mosaic.version = 11 : i64} {
  func.func @_linear_kernel(%arg0: i32, %arg1: i32, %arg2: i32, %arg3: memref<8x128xbf16, #tpu.memory_space<vmem>>, %arg4: memref<128x128xbf16, #tpu.memory_space<vmem>>, %arg5: memref<1x128xf32, #tpu.memory_space<vmem>>, %arg6: memref<8x128xf32, #tpu.memory_space<vmem>>, %arg7: memref<8x128xf32, #tpu.memory_space<vmem>>) attributes {dimension_semantics = [#tpu.dimension_semantics<parallel>, #tpu.dimension_semantics<parallel>, #tpu.dimension_semantics<arbitrary>], iteration_bounds = array<i64: 1, 1, 1>, scalar_prefetch = 0 : i64, scratch_operands = 1 : i64, tpu.core_type = #tpu.core_type<tc>, window_params = [{transform_indices = @transform_0, window_bounds = array<i64: 8, 128>}, {transform_indices = @transform_1, window_bounds = array<i64: 128, 128>}, {transform_indices = @transform_2, window_bounds = array<i64: 1, 128>}, {transform_indices = @transform_3, window_bounds = array<i64: 8, 128>}]} {
    %c0_i32 = arith.constant 0 : i32
    %0 = arith.cmpi eq, %arg2, %c0_i32 : i32
    %1 = arith.extui %0 : i1 to i32
    %c0_i32_0 = arith.constant 0 : i32
    %2 = arith.cmpi ne, %1, %c0_i32_0 : i32
    scf.if %2 {
      %cst_11 = arith.constant 0.000000e+00 : f32
      %20 = vector.broadcast %cst_11 : f32 to vector<8x128xf32>
      %c0_12 = arith.constant 0 : index
      %c0_13 = arith.constant 0 : index
      %21 = vector.load %arg7[%c0_12, %c0_13] : memref<8x128xf32, #tpu.memory_space<vmem>>, vector<8x128xf32>
      tpu.vector_store %arg7[%c0_12, %c0_13], %20 {strides = array<i32>} : memref<8x128xf32, #tpu.memory_space<vmem>>, vector<8x128xf32>,
    } else {
    }
    %c0 = arith.constant 0 : index
    %c0_1 = arith.constant 0 : index
    %3 = vector.load %arg3[%c0, %c0_1] : memref<8x128xbf16, #tpu.memory_space<vmem>>, vector<8x128xbf16>
    %4 = arith.extf %3 : vector<8x128xbf16> to vector<8x128xf32>
    %5 = arith.negf %4 : vector<8x128xf32>
    %6 = math.exp %5 : vector<8x128xf32>
    %cst = arith.constant 1.000000e+00 : f32
    %7 = vector.broadcast %cst : f32 to vector<8x128xf32>
    %8 = arith.addf %7, %6 : vector<8x128xf32>
    %9 = arith.divf %7, %8 : vector<8x128xf32>
    %10 = arith.mulf %4, %9 : vector<8x128xf32>
    %11 = arith.truncf %10 : vector<8x128xf32> to vector<8x128xbf16>
    %c0_2 = arith.constant 0 : index
    %c0_3 = arith.constant 0 : index
    %12 = vector.load %arg7[%c0_2, %c0_3] : memref<8x128xf32, #tpu.memory_space<vmem>>, vector<8x128xf32>
    %c0_4 = arith.constant 0 : index
    %c0_5 = arith.constant 0 : index
    %13 = vector.load %arg4[%c0_4, %c0_5] : memref<128x128xbf16, #tpu.memory_space<vmem>>, vector<128x128xbf16>
    %cst_6 = arith.constant dense<0.000000e+00> : vector<8x128xf32>
    %14 = tpu.matmul %11, %13, %cst_6 {dimension_numbers = #tpu.dot_dimension_numbers<[1], [0], [0], [1], [0, 0, 1, 1], [], []>} : vector<8x128xbf16>, vector<128x128xbf16>, vector<8x128xf32> -> vector<8x128xf32>
    %15 = arith.addf %12, %14 : vector<8x128xf32>
    %c0_7 = arith.constant 0 : index
    %c0_8 = arith.constant 0 : index
    %16 = vector.load %arg7[%c0_7, %c0_8] : memref<8x128xf32, #tpu.memory_space<vmem>>, vector<8x128xf32>
    tpu.vector_store %arg7[%c0_7, %c0_8], %15 {strides = array<i32>} : memref<8x128xf32, #tpu.memory_space<vmem>>, vector<8x128xf32>,
    %c0_i32_9 = arith.constant 0 : i32
    %17 = arith.cmpi eq, %arg2, %c0_i32_9 : i32
    %18 = arith.extui %17 : i1 to i32
    %c0_i32_10 = arith.constant 0 : i32
    %19 = arith.cmpi ne, %18, %c0_i32_10 : i32
    scf.if %19 {
      %c0_11 = arith.constant 0 : index
      %c0_12 = arith.constant 0 : index
      %20 = vector.load %arg7[%c0_11, %c0_12] : memref<8x128xf32, #tpu.memory_space<vmem>>, vector<8x128xf32>
      %c0_13 = arith.constant 0 : index
      %c0_14 = arith.constant 0 : index
      %21 = vector.load %arg5[%c0_13, %c0_14] : memref<1x128xf32, #tpu.memory_space<vmem>>, vector<1x128xf32>
      %22 = vector.broadcast %21 : vector<1x128xf32> to vector<8x128xf32>
      %23 = arith.addf %20, %22 : vector<8x128xf32>
      %c0_15 = arith.constant 0 : index
      %c0_16 = arith.constant 0 : index
      %24 = vector.load %arg6[%c0_15, %c0_16] : memref<8x128xf32, #tpu.memory_space<vmem>>, vector<8x128xf32>
      tpu.vector_store %arg6[%c0_15, %c0_16], %23 {strides = array<i32>} : memref<8x128xf32, #tpu.memory_space<vmem>>, vector<8x128xf32>,
    } else {
    }
    return
  }
  func.func @transform_0(%arg0: i32, %arg1: i32, %arg2: i32) -> (i32, i32) {
    %c0_i32 = arith.constant 0 : i32
    return %arg0, %arg2 : i32, i32
  }
  func.func @transform_1(%arg0: i32, %arg1: i32, %arg2: i32) -> (i32, i32) {
    %c0_i32 = arith.constant 0 : i32
    return %arg2, %arg1 : i32, i32
  }
  func.func @transform_2(%arg0: i32, %arg1: i32, %arg2: i32) -> (i32, i32) {
    %c0_i32 = arith.constant 0 : i32
    %c0_i32_0 = arith.constant 0 : i32
    return %c0_i32, %arg1 : i32, i32
  }
  func.func @transform_3(%arg0: i32, %arg1: i32, %arg2: i32) -> (i32, i32) {
    %c0_i32 = arith.constant 0 : i32
    return %arg0, %arg1 : i32, i32
  }
}

module attributes {stable_mosaic.version = 11 : i64} {
  func.func @_linear_kernel(%arg0: i32, %arg1: i32, %arg2: i32, %arg3: memref<32x128xbf16, #tpu.memory_space<vmem>>, %arg4: memref<128x128xbf16, #tpu.memory_space<vmem>>, %arg5: memref<1x128xf32, #tpu.memory_space<vmem>>, %arg6: memref<32x128xf32, #tpu.memory_space<vmem>>, %arg7: memref<32x128xf32, #tpu.memory_space<vmem>>) attributes {dimension_semantics = [#tpu.dimension_semantics<parallel>, #tpu.dimension_semantics<parallel>, #tpu.dimension_semantics<arbitrary>], iteration_bounds = array<i64: 1, 1, 1>, scalar_prefetch = 0 : i64, scratch_operands = 1 : i64, tpu.core_type = #tpu.core_type<tc>, window_params = [{transform_indices = @transform_0, window_bounds = array<i64: 32, 128>}, {transform_indices = @transform_1, window_bounds = array<i64: 128, 128>}, {transform_indices = @transform_2, window_bounds = array<i64: 1, 128>}, {transform_indices = @transform_3, window_bounds = array<i64: 32, 128>}]} {
    %c0_i32 = arith.constant 0 : i32
    %0 = arith.cmpi eq, %arg2, %c0_i32 : i32
    %1 = arith.extui %0 : i1 to i32
    %c0_i32_0 = arith.constant 0 : i32
    %2 = arith.cmpi ne, %1, %c0_i32_0 : i32
    scf.if %2 {
      %cst_10 = arith.constant 0.000000e+00 : f32
      %12 = vector.broadcast %cst_10 : f32 to vector<32x128xf32>
      %c0_11 = arith.constant 0 : index
      %c0_12 = arith.constant 0 : index
      %13 = vector.load %arg7[%c0_11, %c0_12] : memref<32x128xf32, #tpu.memory_space<vmem>>, vector<32x128xf32>
      tpu.vector_store %arg7[%c0_11, %c0_12], %12 {strides = array<i32>} : memref<32x128xf32, #tpu.memory_space<vmem>>, vector<32x128xf32>,
    } else {
    }
    %c0 = arith.constant 0 : index
    %c0_1 = arith.constant 0 : index
    %3 = vector.load %arg3[%c0, %c0_1] : memref<32x128xbf16, #tpu.memory_space<vmem>>, vector<32x128xbf16>
    %c0_2 = arith.constant 0 : index
    %c0_3 = arith.constant 0 : index
    %4 = vector.load %arg7[%c0_2, %c0_3] : memref<32x128xf32, #tpu.memory_space<vmem>>, vector<32x128xf32>
    %c0_4 = arith.constant 0 : index
    %c0_5 = arith.constant 0 : index
    %5 = vector.load %arg4[%c0_4, %c0_5] : memref<128x128xbf16, #tpu.memory_space<vmem>>, vector<128x128xbf16>
    %cst = arith.constant dense<0.000000e+00> : vector<32x128xf32>
    %6 = tpu.matmul %3, %5, %cst {dimension_numbers = #tpu.dot_dimension_numbers<[1], [0], [0], [1], [0, 0, 1, 1], [], []>} : vector<32x128xbf16>, vector<128x128xbf16>, vector<32x128xf32> -> vector<32x128xf32>
    %7 = arith.addf %4, %6 : vector<32x128xf32>
    %c0_6 = arith.constant 0 : index
    %c0_7 = arith.constant 0 : index
    %8 = vector.load %arg7[%c0_6, %c0_7] : memref<32x128xf32, #tpu.memory_space<vmem>>, vector<32x128xf32>
    tpu.vector_store %arg7[%c0_6, %c0_7], %7 {strides = array<i32>} : memref<32x128xf32, #tpu.memory_space<vmem>>, vector<32x128xf32>,
    %c0_i32_8 = arith.constant 0 : i32
    %9 = arith.cmpi eq, %arg2, %c0_i32_8 : i32
    %10 = arith.extui %9 : i1 to i32
    %c0_i32_9 = arith.constant 0 : i32
    %11 = arith.cmpi ne, %10, %c0_i32_9 : i32
    scf.if %11 {
      %c0_10 = arith.constant 0 : index
      %c0_11 = arith.constant 0 : index
      %12 = vector.load %arg7[%c0_10, %c0_11] : memref<32x128xf32, #tpu.memory_space<vmem>>, vector<32x128xf32>
      %c0_12 = arith.constant 0 : index
      %c0_13 = arith.constant 0 : index
      %13 = vector.load %arg5[%c0_12, %c0_13] : memref<1x128xf32, #tpu.memory_space<vmem>>, vector<1x128xf32>
      %14 = vector.broadcast %13 : vector<1x128xf32> to vector<32x128xf32>
      %15 = arith.addf %12, %14 : vector<32x128xf32>
      %c0_14 = arith.constant 0 : index
      %c0_15 = arith.constant 0 : index
      %16 = vector.load %arg6[%c0_14, %c0_15] : memref<32x128xf32, #tpu.memory_space<vmem>>, vector<32x128xf32>
      tpu.vector_store %arg6[%c0_14, %c0_15], %15 {strides = array<i32>} : memref<32x128xf32, #tpu.memory_space<vmem>>, vector<32x128xf32>,
    } else {
    }
    return
  }
  func.func @transform_0(%arg0: i32, %arg1: i32, %arg2: i32) -> (i32, i32) {
    %c0_i32 = arith.constant 0 : i32
    return %arg0, %arg2 : i32, i32
  }
  func.func @transform_1(%arg0: i32, %arg1: i32, %arg2: i32) -> (i32, i32) {
    %c0_i32 = arith.constant 0 : i32
    return %arg2, %arg1 : i32, i32
  }
  func.func @transform_2(%arg0: i32, %arg1: i32, %arg2: i32) -> (i32, i32) {
    %c0_i32 = arith.constant 0 : i32
    %c0_i32_0 = arith.constant 0 : i32
    return %c0_i32, %arg1 : i32, i32
  }
  func.func @transform_3(%arg0: i32, %arg1: i32, %arg2: i32) -> (i32, i32) {
    %c0_i32 = arith.constant 0 : i32
    return %arg0, %arg1 : i32, i32
  }
}

</mosaic_0001>

<bundles_post_ra>
// kernel: _lambda_.48
= control target key start
LH: loop header
LB: loop body
LE: loop exit
PB: predicated region body
PF: predicated region fallthrough
CT: control target
= control target key end

     0   :  { %s364_s1 = inlined_call_operand.vmem [shape: bf16[256,128], index: 1, kind: input, shape index: {}]   ;;  %s365_s0 = inlined_call_operand.vmem [shape: bf16[8,256], index: 0, kind: input, shape index: {}]   ;;  %s366_s2 = inlined_call_operand.vmem [shape: f32[1,128], index: 2, kind: input, shape index: {}]   ;;  %s367_s3 = inlined_call_operand.vmem [shape: f32[8,128], index: 3, kind: output, shape index: {}]  }
   0x1   :  { %v265_v0 = vld [vmem:[%s364_s1 + $0x40] sm:$0xff]   ;;  %v267_v2 = vld [vmem:[%s364_s1 + $0x48] sm:$0xff]   ;;  %v269_v4 = vld [vmem:[%s364_s1 + $0x50] sm:$0xff]  }
   0x2   :  { %v266_v1 = vld [vmem:[%s364_s1] sm:$0xff]   ;;  %243 = vmatprep.subr.bf16.mxu0 %v265_v0  ;;  %v268_v3 = vld [vmem:[%s364_s1 + $0x8] sm:$0xff]   ;;  %v270_v5 = vld [vmem:[%s364_s1 + $0x10] sm:$0xff]  }
   0x3   :  { %244 = vmatpush3.bf16.msra.mxu0 %v266_v1  ;;  %v271_v6 = vld [vmem:[%s364_s1 + $0x58] sm:$0xff]   ;;  %v273_v8 = vld [vmem:[%s364_s1 + $0x60] sm:$0xff]   ;;  %v275_v10 = vld [vmem:[%s364_s1 + $0x68] sm:$0xff]  }
   0x4   :  { %245 = vmatprep.subr.bf16.mxu0 %v267_v2  ;;  %v272_v7 = vld [vmem:[%s364_s1 + $0x18] sm:$0xff]   ;;  %v274_v9 = vld [vmem:[%s364_s1 + $0x20] sm:$0xff]   ;;  %v276_v13 = vld [vmem:[%s364_s1 + $0x28] sm:$0xff]  }
   0x5   :  { %v20_v11 = vld [vmem:[%s365_s0] sm:$0xff]  ;;  %v277_v14 = vld [vmem:[%s364_s1 + $0x70] sm:$0xff]   ;;  %v279_v16 = vld [vmem:[%s364_s1 + $0x78] sm:$0xff]  }
   0x6   :  { %v224_v12 = vcombine.high %v20_v11, %v20_v11  ;;  %v278_v15 = vld [vmem:[%s364_s1 + $0x30] sm:$0xff]   ;;  %v280_v17 = vld [vmem:[%s364_s1 + $0x38] sm:$0xff]   ;;  %v223_v18 = vcombine.low %v20_v11, %v20_v11  ;;  %v241_v21 = vld [vmem:[%s366_s2] ss:$0 sm:$0xff] }
   0x7   :  { %246 = vmatpush3.bf16.msra.mxu0 %v268_v3 }
   0x8   :  { %247 = vmatprep.subr.bf16.mxu0 %v269_v4  ;;  %189 = vmatprep.mubr.bf16.mxu0 %v224_v12 }
   0xb   :  { %248 = vmatpush3.bf16.msra.mxu0 %v270_v5 }
   0xc   :  { %249 = vmatprep.subr.bf16.mxu0 %v271_v6 }
   0xf   :  { %250 = vmatpush3.bf16.msra.mxu0 %v272_v7 }
  0x10   :  { %251 = vmatprep.subr.bf16.mxu0 %v273_v8 }
  0x13   :  { %252 = vmatpush3.bf16.msra.mxu0 %v274_v9 }
  0x14   :  { %253 = vmatprep.subr.bf16.mxu0 %v275_v10 }
  0x17   :  { %254 = vmatpush3.bf16.msra.mxu0 %v276_v13 }
  0x18   :  { %255 = vmatprep.subr.bf16.mxu0 %v277_v14 }
  0x1b   :  { %256 = vmatpush3.bf16.msra.mxu0 %v278_v15 }
  0x1c   :  { %257 = vmatprep.subr.bf16.mxu0 %v279_v16 }
  0x1f   :  { %258 = vmatpush3.bf16.msra.mxu0 %v280_v17 }
  0x22   :  { %190 = vmatmul.mubr.bf16.vlgmr.msra.gmra.mrb[0].mxu0 %v223_v18 }
  0xf5   :  { %v259_v19 = vpop.f32.mrb[0].mxu0 }
  0xf6   :  { %v260_v20 = vpop.f32.mrb[1].mxu0 }
  0xf7   :  { %v261_v22 = vadd.f32 %v260_v20, %v259_v19  ;;  %v262_v23 = vpop.f32.mrb[2].mxu0 }
  0xf8   :  { %v263_v24 = vpop.f32.mrb[3].mxu0 }
  0xf9   :  { %v210_v25 = vadd.f32 %v261_v22, %v241_v21 }
  0xfb   :  { %v242_v26 = vmul.f32 -1.442695, %v210_v25 }
  0xfd   :  { %283 = vpow2.f32 %v242_v26 }
 0x107   :  { %v284_v27 = vpop.eup %283 }
 0x108   :  { %v214_v28 = vadd.f32 1.0, %v284_v27 }
 0x10a   :  { %285 = vrcp.f32 %v214_v28 }
 0x114   :  { %v286_v29 = vpop.eup %285 }
 0x115   :  { %v217_v30 = vmul.f32 %v286_v29, %v210_v25 }
 0x117   :  { %218 = vst [vmem:[%s367_s3] sm:$0xff] %v217_v30 }

// kernel: _lambda_.49
= control target key start
LH: loop header
LB: loop body
LE: loop exit
PB: predicated region body
PF: predicated region fallthrough
CT: control target
= control target key end

     0   :  { %v193_v0 = vmov 0.0   ;;  %vm194_vm0 = vmmov 0   ;;  %s248_s1 = inlined_call_operand.vmem [shape: bf16[128,128], index: 1, kind: input, shape index: {}]   ;;  %s249_s0 = inlined_call_operand.vmem [shape: bf16[8,128], index: 0, kind: input, shape index: {}]   ;;  %s250_s2 = inlined_call_operand.vmem [shape: f32[1,128], index: 2, kind: input, shape index: {}]   ;;  %s251_s3 = inlined_call_operand.vmem [shape: f32[8,128], index: 3, kind: output, shape index: {}]  }
   0x1   :  { %163 = vmatprep.subr.bf16.mxu0 %v193_v0  ;;  %v185_v1 = vld [vmem:[%s248_s1] sm:$0xff]   ;;  %179 = vmatprep.mubr.msk.bf16.mxu0 %vm194_vm0, %v193_v0  ;;  %v186_v2 = vld [vmem:[%s248_s1 + $0x8] sm:$0xff]   ;;  %v187_v3 = vld [vmem:[%s248_s1 + $0x10] sm:$0xff]  }
   0x2   :  { %164 = vmatpush3.bf16.msra.mxu0 %v185_v1  ;;  %v188_v4 = vld [vmem:[%s248_s1 + $0x18] sm:$0xff]   ;;  %v189_v5 = vld [vmem:[%s248_s1 + $0x20] sm:$0xff]   ;;  %v190_v6 = vld [vmem:[%s248_s1 + $0x28] sm:$0xff]  }
   0x3   :  { %165 = vmatprep.subr.bf16.mxu0 %v193_v0  ;;  %v191_v7 = vld [vmem:[%s248_s1 + $0x30] sm:$0xff]   ;;  %v192_v8 = vld [vmem:[%s248_s1 + $0x38] sm:$0xff]   ;;  %v20_v9 = vld [vmem:[%s249_s0] sm:$0xf] }
   0x4   :  { %v153_v10 = vld [vmem:[%s250_s2] ss:$0 sm:$0xff] }
   0x6   :  { %166 = vmatpush3.bf16.msra.mxu0 %v186_v2 }
   0x7   :  { %167 = vmatprep.subr.bf16.mxu0 %v193_v0 }
   0xa   :  { %168 = vmatpush3.bf16.msra.mxu0 %v187_v3 }
   0xb   :  { %169 = vmatprep.subr.bf16.mxu0 %v193_v0 }
   0xe   :  { %170 = vmatpush3.bf16.msra.mxu0 %v188_v4 }
   0xf   :  { %171 = vmatprep.subr.bf16.mxu0 %v193_v0 }
  0x12   :  { %172 = vmatpush3.bf16.msra.mxu0 %v189_v5 }
  0x13   :  { %173 = vmatprep.subr.bf16.mxu0 %v193_v0 }
  0x16   :  { %174 = vmatpush3.bf16.msra.mxu0 %v190_v6 }
  0x17   :  { %175 = vmatprep.subr.bf16.mxu0 %v193_v0 }
  0x1a   :  { %176 = vmatpush3.bf16.msra.mxu0 %v191_v7 }
  0x1b   :  { %177 = vmatprep.subr.bf16.mxu0 %v193_v0 }
  0x1e   :  { %178 = vmatpush3.bf16.msra.mxu0 %v192_v8 }
  0x21   :  { %180 = vmatmul.mubr.bf16.vlgmr.msra.gmra.mrb[0].mxu0 %v20_v9 }
  0xf4   :  { %v120_v11 = vpop.f32.mrb[0].mxu0 }
  0xf5   :  { %v139_v12 = vadd.f32 %v153_v10, %v120_v11  ;;  %v181_v13 = vpop.f32.mrb[1].mxu0 }
  0xf6   :  { %v123_v14 = vpop.f32.mrb[2].mxu0 }
  0xf7   :  { %140 = vst [vmem:[%s251_s3] sm:$0xff] %v139_v12  ;;  %v182_v15 = vpop.f32.mrb[3].mxu0 }

// kernel: _lambda_.50
= control target key start
LH: loop header
LB: loop body
LE: loop exit
PB: predicated region body
PF: predicated region fallthrough
CT: control target
= control target key end

     0   :  { %v205_v0 = vmov 0.0   ;;  %vm206_vm0 = vmmov 0   ;;  %s260_s1 = inlined_call_operand.vmem [shape: bf16[128,128], index: 1, kind: input, shape index: {}]   ;;  %s261_s0 = inlined_call_operand.vmem [shape: bf16[8,128], index: 0, kind: input, shape index: {}]   ;;  %s262_s2 = inlined_call_operand.vmem [shape: f32[1,128], index: 2, kind: input, shape index: {}]   ;;  %s263_s3 = inlined_call_operand.vmem [shape: f32[8,128], index: 3, kind: output, shape index: {}]  }
   0x1   :  { %171 = vmatprep.subr.bf16.mxu0 %v205_v0  ;;  %v193_v1 = vld [vmem:[%s260_s1] sm:$0xff]   ;;  %187 = vmatprep.mubr.msk.bf16.mxu0 %vm206_vm0, %v205_v0  ;;  %v194_v2 = vld [vmem:[%s260_s1 + $0x8] sm:$0xff]   ;;  %v195_v3 = vld [vmem:[%s260_s1 + $0x10] sm:$0xff]  }
   0x2   :  { %172 = vmatpush3.bf16.msra.mxu0 %v193_v1  ;;  %v196_v4 = vld [vmem:[%s260_s1 + $0x18] sm:$0xff]   ;;  %v197_v5 = vld [vmem:[%s260_s1 + $0x20] sm:$0xff]   ;;  %v198_v6 = vld [vmem:[%s260_s1 + $0x28] sm:$0xff]  }
   0x3   :  { %173 = vmatprep.subr.bf16.mxu0 %v205_v0  ;;  %v199_v7 = vld [vmem:[%s260_s1 + $0x30] sm:$0xff]   ;;  %v200_v8 = vld [vmem:[%s260_s1 + $0x38] sm:$0xff]   ;;  %v20_v9 = vld [vmem:[%s261_s0] sm:$0xf] }
   0x4   :  { %v160_v10 = vld [vmem:[%s262_s2] ss:$0 sm:$0xff] }
   0x6   :  { %174 = vmatpush3.bf16.msra.mxu0 %v194_v2 }
   0x7   :  { %175 = vmatprep.subr.bf16.mxu0 %v205_v0 }
   0xa   :  { %176 = vmatpush3.bf16.msra.mxu0 %v195_v3 }
   0xb   :  { %177 = vmatprep.subr.bf16.mxu0 %v205_v0 }
   0xe   :  { %178 = vmatpush3.bf16.msra.mxu0 %v196_v4 }
   0xf   :  { %179 = vmatprep.subr.bf16.mxu0 %v205_v0 }
  0x12   :  { %180 = vmatpush3.bf16.msra.mxu0 %v197_v5 }
  0x13   :  { %181 = vmatprep.subr.bf16.mxu0 %v205_v0 }
  0x16   :  { %182 = vmatpush3.bf16.msra.mxu0 %v198_v6 }
  0x17   :  { %183 = vmatprep.subr.bf16.mxu0 %v205_v0 }
  0x1a   :  { %184 = vmatpush3.bf16.msra.mxu0 %v199_v7 }
  0x1b   :  { %185 = vmatprep.subr.bf16.mxu0 %v205_v0 }
  0x1e   :  { %186 = vmatpush3.bf16.msra.mxu0 %v200_v8 }
  0x21   :  { %188 = vmatmul.mubr.bf16.vlgmr.msra.gmra.mrb[0].mxu0 %v20_v9 }
  0xf4   :  { %v120_v11 = vpop.f32.mrb[0].mxu0 }
  0xf5   :  { %v139_v12 = vadd.f32 %v160_v10, %v120_v11  ;;  %v189_v13 = vpop.f32.mrb[1].mxu0 }
  0xf6   :  { %v123_v14 = vpop.f32.mrb[2].mxu0 }
  0xf7   :  { %v161_v15 = vmul.f32 -1.442695, %v139_v12  ;;  %v190_v16 = vpop.f32.mrb[3].mxu0 }
  0xf9   :  { %201 = vpow2.f32 %v161_v15 }
 0x103   :  { %v202_v17 = vpop.eup %201 }
 0x104   :  { %v143_v18 = vadd.f32 1.0, %v202_v17 }
 0x106   :  { %203 = vrcp.f32 %v143_v18 }
 0x110   :  { %v204_v19 = vpop.eup %203 }
 0x111   :  { %v146_v20 = vmul.f32 %v204_v19, %v139_v12 }
 0x113   :  { %147 = vst [vmem:[%s263_s3] sm:$0xff] %v146_v20 }

// kernel: _lambda_.53
= control target key start
LH: loop header
LB: loop body
LE: loop exit
PB: predicated region body
PF: predicated region fallthrough
CT: control target
= control target key end

     0   :  { %s814_s12 = smov 0   ;;  %s816_s13 = smov 0   ;;  %s921_s0 = inlined_call_operand.vmem [shape: bf16[8,128], index: 0, kind: input, shape index: {}]   ;;  %s922_s1 = inlined_call_operand.vmem [shape: bf16[128,768], index: 1, kind: input, shape index: {}]   ;;  %s923_s2 = inlined_call_operand.vmem [shape: f32[1,768], index: 2, kind: input, shape index: {}]   ;;  %s924_s3 = inlined_call_operand.vmem [shape: f32[8,768], index: 3, kind: output, shape index: {}]  }
   0x1   :  { %s818_s14 = smov 0   ;;  %s820_s15 = smov 0  }
   0x2   :  { %s822_s16 = smov 0  }
   0x3 LB: > { %s28_s17 = sadd.s32 1, %s787_s15  ;;  %p76_p1 = scmp.ne.s32.totalorder %s779_s13, %s775_s12  ;;  %s791_s16 = sphi %s822_s16, %s13_s16   ;;  %s787_s15 = sphi %s820_s15, %s928_s15   ;;  %s783_s14 = sphi %s818_s14, %s927_s14   ;;  %s779_s13 = sphi %s816_s13, %s926_s13   ;;  %s775_s12 = sphi %s814_s12, %s925_s12  }
   0x4   : > { %p30_p0 = scmp.ge.s32.totalorder %s28_s17, 3  ;;  %p77_p2 = scmp.eq.s32.totalorder %s791_s16, 0 }
   0x5   : > { %s69_s19 = sadd.s32 1, %s779_s13  ;;  %p655_p5 = scmp.ge.s32.totalorder %s791_s16, 3 }
   0x6   : > { %s930_s17 = smov (%p30_p0, %s28_s17), 0  ;;  %p78_p3 = por %p77_p2, %p76_p1 }
   0x7   : > { %s65_s18 = ssub.s32 %s787_s15, %s930_s17  ;;  %166 = sbr.rel (%p655_p5) target bundleno = 26 (0x1a), region = 20 }
   0x8   : > { %p67_p4 = scmp.eq.s32.totalorder %s65_s18, 0 }
   0xa   : > { %s849_s20 = scalar_select %p67_p4, %s779_s13, %s69_s19  }
   0xe   : > { %169 = sbr.rel (!%p78_p3) target bundleno = 26 (0x1a), region = 24  ;;  %s171_s21 = sand.u32 (%p78_p3), 1, %s779_s13  }
   0xf   : > { %s683_s22 = sshll.u32 (%p78_p3), %s787_s15, 3  ;;  %s656_s23 = sshll.u32 (%p78_p3), %s171_s21, 7 }
  0x10   : > { %s857_s26 = scalar_lea.vmem (%p78_p3), %s922_s1, %s683_s22  ;;  %s173_s27 = scalar_lea.vmem (%p78_p3), [#allocation3], %s656_s23 }
  0x11   : > { %v237_v0 = vld [vmem:[%s857_s26] sm:$0xff] (%p78_p3)  ;;  %v239_v1 = vld [vmem:[%s857_s26 + $0x18] sm:$0xff] (%p78_p3)  ;;  %v241_v2 = vld [vmem:[%s857_s26 + $0x30] sm:$0xff] (%p78_p3) }
  0x12   : > { %238 = vst [vmem:[%s173_s27] sm:$0xff] (%p78_p3), %v237_v0  ;;  %240 = vst [vmem:[%s173_s27 + $0x8] sm:$0xff] (%p78_p3), %v239_v1  ;;  %v243_v3 = vld [vmem:[%s857_s26 + $0x48] sm:$0xff] (%p78_p3)  ;;  %v245_v4 = vld [vmem:[%s857_s26 + $0x60] sm:$0xff] (%p78_p3) }
  0x13   : > { %242 = vst [vmem:[%s173_s27 + $0x10] sm:$0xff] (%p78_p3), %v241_v2  ;;  %v247_v5 = vld [vmem:[%s857_s26 + $0x78] sm:$0xff] (%p78_p3)  ;;  %244 = vst [vmem:[%s173_s27 + $0x18] sm:$0xff] (%p78_p3), %v243_v3  ;;  %v249_v6 = vld [vmem:[%s857_s26 + $0x90] sm:$0xff] (%p78_p3) }
  0x14   : > { %246 = vst [vmem:[%s173_s27 + $0x20] sm:$0xff] (%p78_p3), %v245_v4  ;;  %248 = vst [vmem:[%s173_s27 + $0x28] sm:$0xff] (%p78_p3), %v247_v5  ;;  %v251_v7 = vld [vmem:[%s857_s26 + $0xa8] sm:$0xff] (%p78_p3)  ;;  %v253_v8 = vld [vmem:[%s857_s26 + $0xc0] sm:$0xff] (%p78_p3) }
  0x15   : > { %250 = vst [vmem:[%s173_s27 + $0x30] sm:$0xff] %v249_v6  ;;  %252 = vst [vmem:[%s173_s27 + $0x38] sm:$0xff] %v251_v7  ;;  %v255_v9 = vld [vmem:[%s857_s26 + $0xd8] sm:$0xff]  ;;  %v257_v10 = vld [vmem:[%s857_s26 + $0xf0] sm:$0xff] }
  0x16   : > { %254 = vst [vmem:[%s173_s27 + $0x40] sm:$0xff] %v253_v8  ;;  %v259_v11 = vld [vmem:[%s857_s26 + $0x108] sm:$0xff]  ;;  %256 = vst [vmem:[%s173_s27 + $0x48] sm:$0xff] %v255_v9  ;;  %v261_v12 = vld [vmem:[%s857_s26 + $0x120] sm:$0xff] }
  0x17   : > { %258 = vst [vmem:[%s173_s27 + $0x50] sm:$0xff] %v257_v10  ;;  %260 = vst [vmem:[%s173_s27 + $0x58] sm:$0xff] %v259_v11  ;;  %v263_v13 = vld [vmem:[%s857_s26 + $0x138] sm:$0xff]  ;;  %v265_v14 = vld [vmem:[%s857_s26 + $0x150] sm:$0xff] }
  0x18   : > { %262 = vst [vmem:[%s173_s27 + $0x60] sm:$0xff] %v261_v12  ;;  %264 = vst [vmem:[%s173_s27 + $0x68] sm:$0xff] %v263_v13  ;;  %v267_v15 = vld [vmem:[%s857_s26 + $0x168] sm:$0xff] }
  0x19   : > { %266 = vst [vmem:[%s173_s27 + $0x70] sm:$0xff] %v265_v14  ;;  %268 = vst [vmem:[%s173_s27 + $0x78] sm:$0xff] %v267_v15 }
  0x1a PF: > { %p659_p6 = scmp.ge.s32.totalorder %s791_s16, 1  ;;  %p281_p7 = scmp.lt.s32.totalorder %s791_s16, 4 }
  0x1c   : > { %p282_p8 = pnand %p659_p6, %p281_p7 }
  0x1d   : > { %s288_s28 = sand.u32 (!%p282_p8), 1, %s775_s12   ;;  %v357_v16 = vld [vmem:[%s921_s0] sm:$0xf] (!%p282_p8)  ;;  %v793_v17 = vmov (!%p282_p8), 0   ;;  %s661_s6 = sshll.u32 (!%p282_p8), %s783_s14, 1  ;;  %v517_v41 = vlaneseq (!%p282_p8) }
  0x1e   : > { %285 = sbr.rel (%p282_p8) target bundleno = 281 (0x119), region = 66  ;;  %s660_s4 = sshll.u32 (!%p282_p8), %s288_s28, 7  ;;  %497 = vmatprep.mubr.bf16.mxu0 (!%p282_p8), %v793_v17  ;;  %v358_v18 = vunpack.c.l.bf16 (!%p282_p8), %v357_v16 }
  0x1f   : > { %s881_s5 = scalar_lea.vmem (!%p282_p8), [#allocation3], %s660_s4  ;;  %p336_p9 = scmp.lt.s32.totalorder (!%p282_p8), %s661_s6, 5  ;;  %v518_v42 = vshrl.u32 (!%p282_p8), %v517_v41, 7 }
  0x20   : > { %v725_v19 = vld [vmem:[%s881_s5 + $0x4] ss:$8 sps:$4 sm:$0xff] (!%p282_p8)   ;;  %v664_v20 = vmul.f32 (!%p282_p8), -1.442695, %v358_v18  ;;  %v727_v21 = vld [vmem:[%s881_s5] ss:$8 sps:$4 sm:$0xff] (!%p282_p8)  }
  0x21   : > { %465 = vmatprep.subr.bf16.mxu0 (!%p282_p8), %v725_v19  ;;  %v728_v22 = vld [vmem:[%s881_s5 + $0x14] ss:$8 sps:$4 sm:$0xff] (!%p282_p8)   ;;  %v730_v23 = vld [vmem:[%s881_s5 + $0x10] ss:$8 sps:$4 sm:$0xff] (!%p282_p8)   ;;  %v731_v24 = vld [vmem:[%s881_s5 + $0x24] ss:$8 sps:$4 sm:$0xff] (!%p282_p8)  }
  0x22   : > { %749 = vpow2.f32 (!%p282_p8), %v664_v20  ;;  %466 = vmatpush1.bf16.msra.mxu0 (!%p282_p8), %v727_v21  ;;  %v733_v25 = vld [vmem:[%s881_s5 + $0x20] ss:$8 sps:$4 sm:$0xff] (!%p282_p8)   ;;  %v734_v26 = vld [vmem:[%s881_s5 + $0x34] ss:$8 sps:$4 sm:$0xff] (!%p282_p8)   ;;  %v736_v27 = vld [vmem:[%s881_s5 + $0x30] ss:$8 sps:$4 sm:$0xff] (!%p282_p8)  }
  0x23   : > { %467 = vmatprep.subr.bf16.mxu0 (!%p282_p8), %v728_v22  ;;  %v737_v29 = vld [vmem:[%s881_s5 + $0x44] ss:$8 sps:$4 sm:$0xff] (!%p282_p8)   ;;  %v739_v31 = vld [vmem:[%s881_s5 + $0x40] ss:$8 sps:$4 sm:$0xff] (!%p282_p8)   ;;  %v740_v32 = vld [vmem:[%s881_s5 + $0x54] ss:$8 sps:$4 sm:$0xff] (!%p282_p8)  }
  0x24   : > { %v742_v33 = vld [vmem:[%s881_s5 + $0x50] ss:$8 sps:$4 sm:$0xff] (!%p282_p8)   ;;  %v743_v34 = vld [vmem:[%s881_s5 + $0x64] ss:$8 sps:$4 sm:$0xff] (!%p282_p8)   ;;  %v745_v35 = vld [vmem:[%s881_s5 + $0x60] ss:$8 sps:$4 sm:$0xff] (!%p282_p8)  }
  0x25   : > { %v746_v36 = vld [vmem:[%s881_s5 + $0x74] ss:$8 sps:$4 sm:$0xff]   ;;  %v748_v39 = vld [vmem:[%s881_s5 + $0x70] ss:$8 sps:$4 sm:$0xff]   ;;  %s932_s6 = smov (!%p336_p9, %s661_s6), 5  ;;  %v519_v43 = vsub.s32 0, %v518_v42 }
  0x26   : > { %468 = vmatpush1.bf16.msra.mxu0 %v730_v23  ;;  %s338_s9 = scalar_lea.vmem %s923_s2, %s932_s6  ;;  %v523_v45 = vsub.s32 1, %v518_v42  ;;  %s663_s10 = sshll.u32 %s932_s6, 3 }
  0x27   : > { %469 = vmatprep.subr.bf16.mxu0 %v731_v24  ;;  %v515_v44 = vld [vmem:[%s338_s9] sm:$0x3]  ;;  %s348_s18 = scalar_lea.vmem %s924_s3, %s663_s10 }
  0x28   : > { %v520_v46 = vrot.slane %v515_v44, %v519_v43  ;;  %v524_v47 = vrot.slane %v515_v44, %v523_v45 }
  0x2a   : > { %470 = vmatpush1.bf16.msra.mxu0 %v733_v25 }
  0x2b   : > { %471 = vmatprep.subr.bf16.mxu0 %v734_v26 }
  0x2c   : > { %v750_v28 = vpop.eup %749 }
  0x2d   : > { %v362_v30 = vadd.f32 1.0, %v750_v28 }
  0x2e   : > { %472 = vmatpush1.bf16.msra.mxu0 %v736_v27 }
  0x2f   : > { %751 = vrcp.f32 %v362_v30  ;;  %473 = vmatprep.subr.bf16.mxu0 %v737_v29 }
  0x32   : > { %474 = vmatpush1.bf16.msra.mxu0 %v739_v31 }
  0x33   : > { %475 = vmatprep.subr.bf16.mxu0 %v740_v32 }
  0x36   : > { %476 = vmatpush1.bf16.msra.mxu0 %v742_v33 }
  0x37   : > { %477 = vmatprep.subr.bf16.mxu0 %v743_v34 }
  0x39   : > { %v752_v37 = vpop.eup %751 }
  0x3a   : > { %v365_v38 = vmul.f32 %v752_v37, %v358_v18  ;;  %478 = vmatpush1.bf16.msra.mxu0 %v745_v35 }
  0x3b   : > { %479 = vmatprep.subr.bf16.mxu0 %v746_v36 }
  0x3c   : > { %v366_v40 = vpack.c.bf16 %v365_v38, %v365_v38 }
  0x3e   : > { %480 = vmatpush1.bf16.msra.mxu0 %v748_v39 }
  0x41   : > { %498 = vmatmul.mubr.bf16.vlgmr.msra.gmra.mrb[0].mxu0 %v366_v40 }
 0x114   : > { %v499_v48 = vpop.f32.mrb[0].mxu0 }
 0x115   : > { %v527_v49 = vadd.f32 %v520_v46, %v499_v48  ;;  %v501_v50 = vpop.f32.mrb[1].mxu0 }
 0x116   : > { %v528_v51 = vadd.f32 %v524_v47, %v501_v50  ;;  %v503_v52 = vpop.f32.mrb[2].mxu0 }
 0x117   : > { %529 = vst [vmem:[%s348_s18] sm:$0xff] %v527_v49  ;;  %v504_v53 = vpop.f32.mrb[3].mxu0 }
 0x118   : > { %530 = vst [vmem:[%s348_s18 + $0x8] sm:$0xff] %v528_v51 }
 0x119 PF: > { %s13_s16 = sadd.s32 1, %s791_s16   ;;  %s925_s12 = smov %s779_s13 }
 0x11a   : > { %p10_p10 = scmp.ge.s32.totalorder %s13_s16, 5   ;;  %s926_s13 = smov %s849_s20 }
 0x11b   : > { %s927_s14 = smov %s787_s15  ;;  %s928_s15 = smov %s930_s17 }
 0x11c   :  { %12 = sbr.rel (!%p10_p10) target bundleno = 3 (0x3), region = 119 }

// kernel: _lambda_.56
= control target key start
LH: loop header
LB: loop body
LE: loop exit
PB: predicated region body
PF: predicated region fallthrough
CT: control target
= control target key end

     0   :  { %s431_s12 = smov 0   ;;  %s433_s13 = smov 0   ;;  %s478_s0 = inlined_call_operand.vmem [shape: f32[2,8,64], index: 0, kind: input, shape index: {}]   ;;  %s479_s1 = inlined_call_operand.vmem [shape: f32[2,1,64], index: 1, kind: input, shape index: {}]   ;;  %s480_s2 = inlined_call_operand.vmem [shape: f32[2,1,64], index: 2, kind: input, shape index: {}]   ;;  %s481_s3 = inlined_call_operand.vmem [shape: f32[2,8,64], index: 3, kind: output, shape index: {}]  }
   0x1   :  { %s435_s14 = smov 0  }
   0x2 LB: > { %s25_s15 = sadd.s32 1, %s405_s13  ;;  %p355_p0 = scmp.ge.s32.totalorder %s409_s14, 1  ;;  %s409_s14 = sphi %s435_s14, %s13_s14   ;;  %s405_s13 = sphi %s433_s13, %s483_s13   ;;  %s401_s12 = sphi %s431_s12, %s482_s12  }
   0x3   : > { %p27_p1 = scmp.ge.s32.totalorder %s25_s15, 2  ;;  %p171_p2 = scmp.lt.s32.totalorder %s409_s14, 3 }
   0x5   : > { %s485_s15 = smov (%p27_p1, %s25_s15), 0  ;;  %p172_p3 = pnand %p355_p0, %p171_p2 }
   0x6   : > { %p205_p4 = scmp.lt.s32.totalorder (!%p172_p3), %s401_s12, 1  ;;  %vm226_vm0 = vcmask (!%p172_p3), 523264   ;;  %v244_v9 = vlaneseq (!%p172_p3) }
   0x7   : > { %175 = sbr.rel (%p172_p3) target bundleno = 332 (0x14c), region = 32 }
   0x8   : > { %v245_v11 = vshrl.u32 (!%p172_p3), %v244_v9, 7 }
   0xa   : > { %v246_v14 = vsub.s32 (!%p172_p3), 0, %v245_v11 }
   0xe   : > { %s487_s12 = smov (!%p205_p4, %s401_s12), 1 }
   0xf   : > { %s356_s16 = sshll.u32 %s487_s12, 3  ;;  %s214_s22 = scalar_lea.vmem %s479_s1, %s487_s12 }
  0x10   : > { %s211_s19 = scalar_lea.vmem %s478_s0, %s356_s16  ;;  %v241_v12 = vld [vmem:[%s214_s22] sm:$0x1]  ;;  %s217_s25 = scalar_lea.vmem %s480_s2, %s487_s12 }
  0x11   : > { %v225_v0 = vld [vmem:[%s211_s19] sm:$0xff]  ;;  %v242_v13 = vadd.f32 1.0, %v241_v12  ;;  %s224_s28 = scalar_lea.vmem %s481_s3, %s356_s16 }
  0x12   : > { %v227_v1 = vsel %vm226_vm0, %v225_v0, 0.0  ;;  %v358_v18 = vld [vmem:[%s217_s25] ss:$0 sm:$0xff] }
  0x13   : > { %228 = vadd.xlane.f32.xlu0 %v227_v1  ;;  %v247_v15 = vrot.slane %v242_v13, %v246_v14 }
  0xa0   : > { %v229_v2 = vpop.xlane.xlu0 %228 }
  0xa1   : > { %v231_v3 = vmul.f32 0.015625, %v229_v2 }
  0xa3   : > { %v232_v4 = vsub.f32 %v225_v0, %v231_v3 }
  0xa5   : > { %v233_v5 = vmul.f32 %v232_v4, %v232_v4 }
  0xa7   : > { %v234_v6 = vsel %vm226_vm0, %v233_v5, 0.0 }
  0xa8   : > { %235 = vadd.xlane.f32.xlu0 %v234_v6 }
 0x135   : > { %v236_v7 = vpop.xlane.xlu0 %235 }
 0x136   : > { %v237_v8 = vmul.f32 0.015625, %v236_v7 }
 0x138   : > { %v238_v10 = vadd.f32 1e-06, %v237_v8 }
 0x13a   : > { %385 = vrsqrt.f32 %v238_v10 }
 0x144   : > { %v386_v16 = vpop.eup %385 }
 0x145   : > { %v240_v17 = vmul.f32 %v386_v16, %v232_v4 }
 0x147   : > { %v249_v19 = vmul.f32 %v247_v15, %v240_v17 }
 0x149   : > { %v257_v20 = vadd.f32 %v358_v18, %v249_v19 }
 0x14b   : > { %258 = vst.msk [vmem:[%s224_s28] sm:$0xff] %vm226_vm0, %v257_v20 }
 0x14c PF: > { %s13_s14 = sadd.s32 1, %s409_s14   ;;  %s482_s12 = smov %s405_s13 }
 0x14d   : > { %p10_p5 = scmp.ge.s32.totalorder %s13_s14, 4   ;;  %s483_s13 = smov %s485_s15 }
 0x14f   :  { %12 = sbr.rel (!%p10_p5) target bundleno = 2 (0x2), region = 68 }

// kernel: _lambda_.57
= control target key start
LH: loop header
LB: loop body
LE: loop exit
PB: predicated region body
PF: predicated region fallthrough
CT: control target
= control target key end

     0   :  { %v256_v1 = vmov 0   ;;  %v191_v18 = vlaneseq  ;;  %s343_s1 = inlined_call_operand.vmem [shape: bf16[128,256], index: 1, kind: input, shape index: {}]   ;;  %s344_s0 = inlined_call_operand.vmem [shape: bf16[16,128], index: 0, kind: input, shape index: {}]   ;;  %s345_s2 = inlined_call_operand.vmem [shape: f32[1,256], index: 2, kind: input, shape index: {}]   ;;  %s346_s3 = inlined_call_operand.vmem [shape: f32[16,256], index: 3, kind: output, shape index: {}]  }
   0x1   :  { %v231_v0 = vld [vmem:[%s343_s1 + $0x4] ss:$8 sps:$4 sm:$0xff]   ;;  %163 = vmatprep.mubr.bf16.mxu0 %v256_v1  ;;  %v233_v2 = vld [vmem:[%s343_s1] ss:$8 sps:$4 sm:$0xff]   ;;  %v234_v3 = vld [vmem:[%s343_s1 + $0x14] ss:$8 sps:$4 sm:$0xff]  }
   0x2   :  { %131 = vmatprep.subr.bf16.mxu0 %v231_v0  ;;  %v236_v4 = vld [vmem:[%s343_s1 + $0x10] ss:$8 sps:$4 sm:$0xff]   ;;  %v237_v5 = vld [vmem:[%s343_s1 + $0x24] ss:$8 sps:$4 sm:$0xff]   ;;  %v239_v6 = vld [vmem:[%s343_s1 + $0x20] ss:$8 sps:$4 sm:$0xff]  }
   0x3   :  { %132 = vmatpush1.bf16.msra.mxu0 %v233_v2  ;;  %v240_v7 = vld [vmem:[%s343_s1 + $0x34] ss:$8 sps:$4 sm:$0xff]   ;;  %v242_v8 = vld [vmem:[%s343_s1 + $0x30] ss:$8 sps:$4 sm:$0xff]   ;;  %v243_v9 = vld [vmem:[%s343_s1 + $0x44] ss:$8 sps:$4 sm:$0xff]  }
   0x4   :  { %133 = vmatprep.subr.bf16.mxu0 %v234_v3  ;;  %v245_v10 = vld [vmem:[%s343_s1 + $0x40] ss:$8 sps:$4 sm:$0xff]   ;;  %v246_v11 = vld [vmem:[%s343_s1 + $0x54] ss:$8 sps:$4 sm:$0xff]   ;;  %v248_v12 = vld [vmem:[%s343_s1 + $0x50] ss:$8 sps:$4 sm:$0xff]  }
   0x5   :  { %v249_v13 = vld [vmem:[%s343_s1 + $0x64] ss:$8 sps:$4 sm:$0xff]   ;;  %v251_v14 = vld [vmem:[%s343_s1 + $0x60] ss:$8 sps:$4 sm:$0xff]   ;;  %v252_v15 = vld [vmem:[%s343_s1 + $0x74] ss:$8 sps:$4 sm:$0xff]  }
   0x6   :  { %v254_v16 = vld [vmem:[%s343_s1 + $0x70] ss:$8 sps:$4 sm:$0xff]   ;;  %v255_v17 = vld [vmem:[%s344_s0] sm:$0xff]   ;;  %v192_v19 = vshrl.u32 %v191_v18, 7 }
   0x7   :  { %134 = vmatpush1.bf16.msra.mxu0 %v236_v4  ;;  %v189_v21 = vld [vmem:[%s345_s2] sm:$0x3] }
   0x8   :  { %135 = vmatprep.subr.bf16.mxu0 %v237_v5  ;;  %v193_v20 = vsub.s32 0, %v192_v19  ;;  %v197_v22 = vsub.s32 1, %v192_v19 }
   0xa   :  { %v194_v23 = vrot.slane %v189_v21, %v193_v20  ;;  %v198_v24 = vrot.slane %v189_v21, %v197_v22 }
   0xb   :  { %136 = vmatpush1.bf16.msra.mxu0 %v239_v6 }
   0xc   :  { %137 = vmatprep.subr.bf16.mxu0 %v240_v7 }
   0xf   :  { %138 = vmatpush1.bf16.msra.mxu0 %v242_v8 }
  0x10   :  { %139 = vmatprep.subr.bf16.mxu0 %v243_v9 }
  0x13   :  { %140 = vmatpush1.bf16.msra.mxu0 %v245_v10 }
  0x14   :  { %141 = vmatprep.subr.bf16.mxu0 %v246_v11 }
  0x17   :  { %142 = vmatpush1.bf16.msra.mxu0 %v248_v12 }
  0x18   :  { %143 = vmatprep.subr.bf16.mxu0 %v249_v13 }
  0x1b   :  { %144 = vmatpush1.bf16.msra.mxu0 %v251_v14 }
  0x1c   :  { %145 = vmatprep.subr.bf16.mxu0 %v252_v15 }
  0x1f   :  { %146 = vmatpush1.bf16.msra.mxu0 %v254_v16 }
  0x22   :  { %164 = vmatmul.mubr.bf16.vlgmr.msra.gmra.mrb[0].mxu0 %v255_v17 }
  0xf5   :  { %v165_v25 = vpop.f32.mrb[0].mxu0 }
  0xf6   :  { %v201_v26 = vadd.f32 %v194_v23, %v165_v25  ;;  %v167_v27 = vpop.f32.mrb[1].mxu0 }
  0xf7   :  { %v202_v28 = vadd.f32 %v198_v24, %v167_v27  ;;  %v169_v29 = vpop.f32.mrb[2].mxu0 }
  0xf8   :  { %205 = vst [vmem:[%s346_s3] sm:$0xff] %v201_v26  ;;  %v203_v30 = vadd.f32 %v194_v23, %v169_v29  ;;  %v171_v31 = vpop.f32.mrb[3].mxu0 }
  0xf9   :  { %206 = vst [vmem:[%s346_s3 + $0x8] sm:$0xff] %v202_v28  ;;  %v204_v32 = vadd.f32 %v198_v24, %v171_v31 }
  0xfa   :  { %207 = vst [vmem:[%s346_s3 + $0x10] sm:$0xff] %v203_v30 }
  0xfb   :  { %208 = vst [vmem:[%s346_s3 + $0x18] sm:$0xff] %v204_v32 }

// kernel: _lambda_.52
= control target key start
LH: loop header
LB: loop body
LE: loop exit
PB: predicated region body
PF: predicated region fallthrough
CT: control target
= control target key end

     0   :  { %v210_v0 = vmov 0.0   ;;  %vm211_vm0 = vmmov 0   ;;  %s268_s1 = inlined_call_operand.vmem [shape: bf16[128,128], index: 1, kind: input, shape index: {}]   ;;  %s269_s0 = inlined_call_operand.vmem [shape: bf16[16,128], index: 0, kind: input, shape index: {}]   ;;  %s270_s2 = inlined_call_operand.vmem [shape: f32[1,128], index: 2, kind: input, shape index: {}]   ;;  %s271_s3 = inlined_call_operand.vmem [shape: f32[16,128], index: 3, kind: output, shape index: {}]  }
   0x1   :  { %179 = vmatprep.subr.bf16.mxu0 %v210_v0  ;;  %v201_v1 = vld [vmem:[%s268_s1] sm:$0xff]   ;;  %195 = vmatprep.mubr.msk.bf16.mxu0 %vm211_vm0, %v210_v0  ;;  %v202_v2 = vld [vmem:[%s268_s1 + $0x8] sm:$0xff]   ;;  %v203_v3 = vld [vmem:[%s268_s1 + $0x10] sm:$0xff]  }
   0x2   :  { %180 = vmatpush3.bf16.msra.mxu0 %v201_v1  ;;  %v204_v4 = vld [vmem:[%s268_s1 + $0x18] sm:$0xff]   ;;  %v205_v5 = vld [vmem:[%s268_s1 + $0x20] sm:$0xff]   ;;  %v206_v6 = vld [vmem:[%s268_s1 + $0x28] sm:$0xff]  }
   0x3   :  { %181 = vmatprep.subr.bf16.mxu0 %v210_v0  ;;  %v207_v7 = vld [vmem:[%s268_s1 + $0x30] sm:$0xff]   ;;  %v208_v8 = vld [vmem:[%s268_s1 + $0x38] sm:$0xff]   ;;  %v209_v9 = vld [vmem:[%s269_s0] sm:$0xff]  }
   0x4   :  { %v169_v10 = vld [vmem:[%s270_s2] ss:$0 sm:$0xff] }
   0x6   :  { %182 = vmatpush3.bf16.msra.mxu0 %v202_v2 }
   0x7   :  { %183 = vmatprep.subr.bf16.mxu0 %v210_v0 }
   0xa   :  { %184 = vmatpush3.bf16.msra.mxu0 %v203_v3 }
   0xb   :  { %185 = vmatprep.subr.bf16.mxu0 %v210_v0 }
   0xe   :  { %186 = vmatpush3.bf16.msra.mxu0 %v204_v4 }
   0xf   :  { %187 = vmatprep.subr.bf16.mxu0 %v210_v0 }
  0x12   :  { %188 = vmatpush3.bf16.msra.mxu0 %v205_v5 }
  0x13   :  { %189 = vmatprep.subr.bf16.mxu0 %v210_v0 }
  0x16   :  { %190 = vmatpush3.bf16.msra.mxu0 %v206_v6 }
  0x17   :  { %191 = vmatprep.subr.bf16.mxu0 %v210_v0 }
  0x1a   :  { %192 = vmatpush3.bf16.msra.mxu0 %v207_v7 }
  0x1b   :  { %193 = vmatprep.subr.bf16.mxu0 %v210_v0 }
  0x1e   :  { %194 = vmatpush3.bf16.msra.mxu0 %v208_v8 }
  0x21   :  { %196 = vmatmul.mubr.bf16.vlgmr.msra.gmra.mrb[0].mxu0 %v209_v9 }
  0xf4   :  { %v129_v11 = vpop.f32.mrb[0].mxu0 }
  0xf5   :  { %v152_v12 = vadd.f32 %v169_v10, %v129_v11  ;;  %v197_v13 = vpop.f32.mrb[1].mxu0 }
  0xf6   :  { %v132_v14 = vpop.f32.mrb[2].mxu0 }
  0xf7   :  { %154 = vst [vmem:[%s271_s3] sm:$0xff] %v152_v12  ;;  %v153_v15 = vadd.f32 %v169_v10, %v132_v14  ;;  %v198_v16 = vpop.f32.mrb[3].mxu0 }
  0xf9   :  { %155 = vst [vmem:[%s271_s3 + $0x8] sm:$0xff] %v153_v15 }

// kernel: _lambda_.47
= control target key start
LH: loop header
LB: loop body
LE: loop exit
PB: predicated region body
PF: predicated region fallthrough
CT: control target
= control target key end

     0   :  { %s306_s1 = inlined_call_operand.vmem [shape: bf16[128,128], index: 1, kind: input, shape index: {}]   ;;  %s307_s0 = inlined_call_operand.vmem [shape: bf16[32,128], index: 0, kind: input, shape index: {}]   ;;  %s308_s2 = inlined_call_operand.vmem [shape: f32[1,128], index: 2, kind: input, shape index: {}]   ;;  %s309_s3 = inlined_call_operand.vmem [shape: f32[32,128], index: 3, kind: output, shape index: {}]  }
   0x1   :  { %v231_v0 = vld [vmem:[%s306_s1] sm:$0xff]   ;;  %v232_v1 = vld [vmem:[%s306_s1 + $0x8] sm:$0xff]   ;;  %v233_v2 = vld [vmem:[%s306_s1 + $0x10] sm:$0xff]  }
   0x2   :  { %211 = vmatprep.subr.bf16.mxu0 %v231_v0  ;;  %v234_v3 = vld [vmem:[%s306_s1 + $0x18] sm:$0xff]   ;;  %v239_v4 = vld [vmem:[%s307_s0] sm:$0xff]   ;;  %v236_v6 = vld [vmem:[%s306_s1 + $0x28] sm:$0xff]  }
   0x3   :  { %212 = vmatpush3.bf16.msra.mxu0 %v231_v0  ;;  %227 = vmatprep.mubr.bf16.mxu0 %v239_v4  ;;  %v235_v5 = vld [vmem:[%s306_s1 + $0x20] sm:$0xff]   ;;  %v237_v7 = vld [vmem:[%s306_s1 + $0x30] sm:$0xff]   ;;  %v238_v8 = vld [vmem:[%s306_s1 + $0x38] sm:$0xff]  }
   0x4   :  { %213 = vmatprep.subr.bf16.mxu0 %v232_v1  ;;  %v240_v9 = vld [vmem:[%s307_s0 + $0x8] sm:$0xff]   ;;  %v200_v10 = vld [vmem:[%s308_s2] ss:$0 sm:$0xff] }
   0x7   :  { %214 = vmatpush3.bf16.msra.mxu0 %v232_v1 }
   0x8   :  { %215 = vmatprep.subr.bf16.mxu0 %v233_v2 }
   0xb   :  { %216 = vmatpush3.bf16.msra.mxu0 %v233_v2 }
   0xc   :  { %217 = vmatprep.subr.bf16.mxu0 %v234_v3 }
   0xf   :  { %218 = vmatpush3.bf16.msra.mxu0 %v234_v3 }
  0x10   :  { %219 = vmatprep.subr.bf16.mxu0 %v235_v5 }
  0x13   :  { %220 = vmatpush3.bf16.msra.mxu0 %v235_v5 }
  0x14   :  { %221 = vmatprep.subr.bf16.mxu0 %v236_v6 }
  0x17   :  { %222 = vmatpush3.bf16.msra.mxu0 %v236_v6 }
  0x18   :  { %223 = vmatprep.subr.bf16.mxu0 %v237_v7 }
  0x1b   :  { %224 = vmatpush3.bf16.msra.mxu0 %v237_v7 }
  0x1c   :  { %225 = vmatprep.subr.bf16.mxu0 %v238_v8 }
  0x1f   :  { %226 = vmatpush3.bf16.msra.mxu0 %v238_v8 }
  0x22   :  { %228 = vmatmul.mubr.bf16.vlgmr.msra.gmra.mrb[0].mxu0 %v240_v9 }
  0xf5   :  { %v229_v11 = vpop.f32.mrb[0].mxu0 }
  0xf6   :  { %v180_v12 = vadd.f32 %v229_v11, %v200_v10  ;;  %v141_v13 = vpop.f32.mrb[1].mxu0 }
  0xf7   :  { %v178_v14 = vadd.f32 %v200_v10, %v141_v13  ;;  %v230_v15 = vpop.f32.mrb[2].mxu0 }
  0xf8   :  { %184 = vst [vmem:[%s309_s3 + $0x10] sm:$0xff] %v180_v12  ;;  %v181_v16 = vadd.f32 %v230_v15, %v200_v10  ;;  %v144_v17 = vpop.f32.mrb[3].mxu0 }
  0xf9   :  { %182 = vst [vmem:[%s309_s3] sm:$0xff] %v178_v14  ;;  %v179_v18 = vadd.f32 %v200_v10, %v144_v17 }
  0xfa   :  { %185 = vst [vmem:[%s309_s3 + $0x18] sm:$0xff] %v181_v16 }
  0xfb   :  { %183 = vst [vmem:[%s309_s3 + $0x8] sm:$0xff] %v179_v18 }

// kernel: _lambda_.54
= control target key start
LH: loop header
LB: loop body
LE: loop exit
PB: predicated region body
PF: predicated region fallthrough
CT: control target
= control target key end

     0   :  { %s480_s12 = smov 0   ;;  %s482_s13 = smov 0   ;;  %s534_s0 = inlined_call_operand.vmem [shape: f32[2,16,64], index: 0, kind: input, shape index: {}]   ;;  %s535_s1 = inlined_call_operand.vmem [shape: f32[2,1,64], index: 1, kind: input, shape index: {}]   ;;  %s536_s2 = inlined_call_operand.vmem [shape: f32[2,1,64], index: 2, kind: input, shape index: {}]   ;;  %s537_s3 = inlined_call_operand.vmem [shape: f32[2,16,64], index: 3, kind: output, shape index: {}]  }
   0x1   :  { %s484_s14 = smov 0  }
   0x2 LB: > { %s25_s15 = sadd.s32 1, %s454_s13  ;;  %p398_p0 = scmp.ge.s32.totalorder %s458_s14, 1  ;;  %s458_s14 = sphi %s484_s14, %s13_s14   ;;  %s454_s13 = sphi %s482_s13, %s539_s13   ;;  %s450_s12 = sphi %s480_s12, %s538_s12  }
   0x3   : > { %p27_p1 = scmp.ge.s32.totalorder %s25_s15, 2  ;;  %p174_p2 = scmp.lt.s32.totalorder %s458_s14, 3 }
   0x5   : > { %s541_s15 = smov (%p27_p1, %s25_s15), 0  ;;  %p175_p3 = pnand %p398_p0, %p174_p2 }
   0x6   : > { %p213_p4 = scmp.lt.s32.totalorder (!%p175_p3), %s450_s12, 1  ;;  %vm240_vm0 = vcmask (!%p175_p3), 523264   ;;  %v271_v16 = vlaneseq (!%p175_p3) }
   0x7   : > { %178 = sbr.rel (%p175_p3) target bundleno = 336 (0x150), region = 32 }
   0x8   : > { %v272_v20 = vshrl.u32 (!%p175_p3), %v271_v16, 7 }
   0xa   : > { %v273_v24 = vsub.s32 (!%p175_p3), 0, %v272_v20 }
   0xe   : > { %s543_s12 = smov (!%p213_p4, %s450_s12), 1 }
   0xf   : > { %s406_s16 = sshll.u32 %s543_s12, 4  ;;  %s224_s22 = scalar_lea.vmem %s535_s1, %s543_s12 }
  0x10   : > { %s220_s19 = scalar_lea.vmem %s534_s0, %s406_s16  ;;  %v268_v21 = vld [vmem:[%s224_s22] sm:$0x1]  ;;  %s227_s25 = scalar_lea.vmem %s536_s2, %s543_s12 }
  0x11   : > { %v238_v0 = vld [vmem:[%s220_s19] sm:$0xff]  ;;  %v239_v1 = vld [vmem:[%s220_s19 + $0x8] sm:$0xff]  ;;  %v269_v23 = vadd.f32 1.0, %v268_v21  ;;  %s236_s28 = scalar_lea.vmem %s537_s3, %s406_s16 }
  0x12   : > { %v241_v2 = vsel %vm240_vm0, %v238_v0, 0.0  ;;  %v244_v3 = vsel %vm240_vm0, %v239_v1, 0.0  ;;  %v403_v28 = vld [vmem:[%s227_s25] ss:$0 sm:$0xff] }
  0x13   : > { %242 = vadd.xlane.f32.xlu0 %v241_v2  ;;  %v274_v25 = vrot.slane %v269_v23, %v273_v24 }
  0x17   : > { %245 = vadd.xlane.f32.xlu0 %v244_v3 }
  0xa0   : > { %v243_v4 = vpop.xlane.xlu0 %242 }
  0xa1   : > { %v248_v5 = vmul.f32 0.015625, %v243_v4 }
  0xa3   : > { %v250_v6 = vsub.f32 %v238_v0, %v248_v5 }
  0xa4   : > { %v246_v7 = vpop.xlane.xlu0 %245 }
  0xa5   : > { %v249_v8 = vmul.f32 0.015625, %v246_v7  ;;  %v252_v9 = vmul.f32 %v250_v6, %v250_v6 }
  0xa7   : > { %v251_v10 = vsub.f32 %v239_v1, %v249_v8  ;;  %v254_v11 = vsel %vm240_vm0, %v252_v9, 0.0 }
  0xa8   : > { %255 = vadd.xlane.f32.xlu1 %v254_v11 }
  0xa9   : > { %v253_v12 = vmul.f32 %v251_v10, %v251_v10 }
  0xab   : > { %v257_v13 = vsel %vm240_vm0, %v253_v12, 0.0 }
  0xac   : > { %258 = vadd.xlane.f32.xlu1 %v257_v13 }
 0x135   : > { %v256_v14 = vpop.xlane.xlu1 %255 }
 0x136   : > { %v260_v15 = vmul.f32 0.015625, %v256_v14 }
 0x138   : > { %v262_v17 = vadd.f32 1e-06, %v260_v15 }
 0x139   : > { %v259_v18 = vpop.xlane.xlu1 %258 }
 0x13a   : > { %432 = vrsqrt.f32 %v262_v17  ;;  %v261_v19 = vmul.f32 0.015625, %v259_v18 }
 0x13c   : > { %v263_v22 = vadd.f32 1e-06, %v261_v19 }
 0x13e   : > { %434 = vrsqrt.f32 %v263_v22 }
 0x144   : > { %v433_v26 = vpop.eup %432 }
 0x145   : > { %v266_v27 = vmul.f32 %v433_v26, %v250_v6 }
 0x147   : > { %v276_v29 = vmul.f32 %v274_v25, %v266_v27 }
 0x148   : > { %v435_v30 = vpop.eup %434 }
 0x149   : > { %v285_v31 = vadd.f32 %v403_v28, %v276_v29  ;;  %v267_v32 = vmul.f32 %v435_v30, %v251_v10 }
 0x14b   : > { %287 = vst.msk [vmem:[%s236_s28] sm:$0xff] %vm240_vm0, %v285_v31  ;;  %v277_v33 = vmul.f32 %v274_v25, %v267_v32 }
 0x14d   : > { %v286_v34 = vadd.f32 %v403_v28, %v277_v33 }
 0x14f   : > { %288 = vst.msk [vmem:[%s236_s28 + $0x8] sm:$0xff] %vm240_vm0, %v286_v34 }
 0x150 PF: > { %s13_s14 = sadd.s32 1, %s458_s14   ;;  %s538_s12 = smov %s454_s13 }
 0x151   : > { %p10_p5 = scmp.ge.s32.totalorder %s13_s14, 4   ;;  %s539_s13 = smov %s541_s15 }
 0x153   :  { %12 = sbr.rel (!%p10_p5) target bundleno = 2 (0x2), region = 68 }

// kernel: _lambda_.55
= control target key start
LH: loop header
LB: loop body
LE: loop exit
PB: predicated region body
PF: predicated region fallthrough
CT: control target
= control target key end

     0   :  { %v320_v1 = vmov 0   ;;  %v229_v19 = vlaneseq  ;;  %s422_s1 = inlined_call_operand.vmem [shape: bf16[128,256], index: 1, kind: input, shape index: {}]   ;;  %s423_s0 = inlined_call_operand.vmem [shape: bf16[32,128], index: 0, kind: input, shape index: {}]   ;;  %s424_s2 = inlined_call_operand.vmem [shape: f32[1,256], index: 2, kind: input, shape index: {}]   ;;  %s425_s3 = inlined_call_operand.vmem [shape: f32[32,256], index: 3, kind: output, shape index: {}]  }
   0x1   :  { %v294_v0 = vld [vmem:[%s422_s1 + $0x4] ss:$8 sps:$4 sm:$0xff]   ;;  %179 = vmatprep.mubr.bf16.mxu0 %v320_v1  ;;  %189 = vmatprep.mubr.bf16.mxu1 %v320_v1  ;;  %v296_v2 = vld [vmem:[%s422_s1] ss:$8 sps:$4 sm:$0xff]   ;;  %v297_v3 = vld [vmem:[%s422_s1 + $0x14] ss:$8 sps:$4 sm:$0xff]  }
   0x2   :  { %147 = vmatprep.subr.bf16.mxu0 %v294_v0  ;;  %277 = vmatprep.subr.bf16.mxu1 %v294_v0  ;;  %v299_v4 = vld [vmem:[%s422_s1 + $0x10] ss:$8 sps:$4 sm:$0xff]   ;;  %v300_v5 = vld [vmem:[%s422_s1 + $0x24] ss:$8 sps:$4 sm:$0xff]   ;;  %v302_v6 = vld [vmem:[%s422_s1 + $0x20] ss:$8 sps:$4 sm:$0xff]  }
   0x3   :  { %148 = vmatpush1.bf16.msra.mxu0 %v296_v2  ;;  %285 = vmatpush1.bf16.msra.mxu1 %v296_v2  ;;  %v303_v7 = vld [vmem:[%s422_s1 + $0x34] ss:$8 sps:$4 sm:$0xff]   ;;  %v305_v8 = vld [vmem:[%s422_s1 + $0x30] ss:$8 sps:$4 sm:$0xff]   ;;  %v306_v9 = vld [vmem:[%s422_s1 + $0x44] ss:$8 sps:$4 sm:$0xff]  }
   0x4   :  { %149 = vmatprep.subr.bf16.mxu0 %v297_v3  ;;  %278 = vmatprep.subr.bf16.mxu1 %v297_v3  ;;  %v308_v10 = vld [vmem:[%s422_s1 + $0x40] ss:$8 sps:$4 sm:$0xff]   ;;  %v309_v11 = vld [vmem:[%s422_s1 + $0x54] ss:$8 sps:$4 sm:$0xff]   ;;  %v311_v12 = vld [vmem:[%s422_s1 + $0x50] ss:$8 sps:$4 sm:$0xff]  }
   0x5   :  { %v312_v13 = vld [vmem:[%s422_s1 + $0x64] ss:$8 sps:$4 sm:$0xff]   ;;  %v314_v14 = vld [vmem:[%s422_s1 + $0x60] ss:$8 sps:$4 sm:$0xff]   ;;  %v315_v15 = vld [vmem:[%s422_s1 + $0x74] ss:$8 sps:$4 sm:$0xff]  }
   0x6   :  { %v317_v16 = vld [vmem:[%s422_s1 + $0x70] ss:$8 sps:$4 sm:$0xff]   ;;  %v318_v17 = vld [vmem:[%s423_s0] sm:$0xff]   ;;  %v319_v18 = vld [vmem:[%s423_s0 + $0x8] sm:$0xff]   ;;  %v230_v20 = vshrl.u32 %v229_v19, 7 }
   0x7   :  { %150 = vmatpush1.bf16.msra.mxu0 %v299_v4  ;;  %286 = vmatpush1.bf16.msra.mxu1 %v299_v4  ;;  %v227_v22 = vld [vmem:[%s424_s2] sm:$0x3] }
   0x8   :  { %151 = vmatprep.subr.bf16.mxu0 %v300_v5  ;;  %279 = vmatprep.subr.bf16.mxu1 %v300_v5  ;;  %v231_v21 = vsub.s32 0, %v230_v20  ;;  %v235_v23 = vsub.s32 1, %v230_v20 }
   0xa   :  { %v232_v24 = vrot.slane %v227_v22, %v231_v21  ;;  %v236_v25 = vrot.slane %v227_v22, %v235_v23 }
   0xb   :  { %152 = vmatpush1.bf16.msra.mxu0 %v302_v6  ;;  %287 = vmatpush1.bf16.msra.mxu1 %v302_v6 }
   0xc   :  { %153 = vmatprep.subr.bf16.mxu0 %v303_v7  ;;  %280 = vmatprep.subr.bf16.mxu1 %v303_v7 }
   0xf   :  { %154 = vmatpush1.bf16.msra.mxu0 %v305_v8  ;;  %288 = vmatpush1.bf16.msra.mxu1 %v305_v8 }
  0x10   :  { %155 = vmatprep.subr.bf16.mxu0 %v306_v9  ;;  %281 = vmatprep.subr.bf16.mxu1 %v306_v9 }
  0x13   :  { %156 = vmatpush1.bf16.msra.mxu0 %v308_v10  ;;  %289 = vmatpush1.bf16.msra.mxu1 %v308_v10 }
  0x14   :  { %157 = vmatprep.subr.bf16.mxu0 %v309_v11  ;;  %282 = vmatprep.subr.bf16.mxu1 %v309_v11 }
  0x17   :  { %158 = vmatpush1.bf16.msra.mxu0 %v311_v12  ;;  %290 = vmatpush1.bf16.msra.mxu1 %v311_v12 }
  0x18   :  { %159 = vmatprep.subr.bf16.mxu0 %v312_v13  ;;  %283 = vmatprep.subr.bf16.mxu1 %v312_v13 }
  0x1b   :  { %160 = vmatpush1.bf16.msra.mxu0 %v314_v14  ;;  %291 = vmatpush1.bf16.msra.mxu1 %v314_v14 }
  0x1c   :  { %161 = vmatprep.subr.bf16.mxu0 %v315_v15  ;;  %284 = vmatprep.subr.bf16.mxu1 %v315_v15 }
  0x1f   :  { %162 = vmatpush1.bf16.msra.mxu0 %v317_v16  ;;  %292 = vmatpush1.bf16.msra.mxu1 %v317_v16 }
  0x22   :  { %180 = vmatmul.mubr.bf16.vlgmr.msra.gmra.mrb[0].mxu0 %v318_v17  ;;  %190 = vmatmul.mubr.bf16.vlgmr.msra.gmra.mrb[0].mxu1 %v319_v18 }
  0xf5   :  { %v181_v26 = vpop.f32.mrb[0].mxu0  ;;  %v191_v27 = vpop.f32.mrb[0].mxu1 }
  0xf6   :  { %v239_v28 = vadd.f32 %v232_v24, %v181_v26  ;;  %v243_v29 = vadd.f32 %v232_v24, %v191_v27  ;;  %v183_v30 = vpop.f32.mrb[1].mxu0  ;;  %v193_v31 = vpop.f32.mrb[1].mxu1 }
  0xf7   :  { %v240_v32 = vadd.f32 %v236_v25, %v183_v30  ;;  %v244_v33 = vadd.f32 %v236_v25, %v193_v31  ;;  %v185_v34 = vpop.f32.mrb[2].mxu0  ;;  %v195_v35 = vpop.f32.mrb[2].mxu1 }
  0xf8   :  { %247 = vst [vmem:[%s425_s3] sm:$0xff] %v239_v28  ;;  %251 = vst [vmem:[%s425_s3 + $0x20] sm:$0xff] %v243_v29  ;;  %v241_v36 = vadd.f32 %v232_v24, %v185_v34  ;;  %v245_v37 = vadd.f32 %v232_v24, %v195_v35  ;;  %v187_v38 = vpop.f32.mrb[3].mxu0  ;;  %v197_v39 = vpop.f32.mrb[3].mxu1 }
  0xf9   :  { %248 = vst [vmem:[%s425_s3 + $0x8] sm:$0xff] %v240_v32  ;;  %252 = vst [vmem:[%s425_s3 + $0x28] sm:$0xff] %v244_v33  ;;  %v242_v40 = vadd.f32 %v236_v25, %v187_v38  ;;  %v246_v41 = vadd.f32 %v236_v25, %v197_v39 }
  0xfa   :  { %249 = vst [vmem:[%s425_s3 + $0x10] sm:$0xff] %v241_v36  ;;  %253 = vst [vmem:[%s425_s3 + $0x30] sm:$0xff] %v245_v37 }
  0xfb   :  { %250 = vst [vmem:[%s425_s3 + $0x18] sm:$0xff] %v242_v40  ;;  %254 = vst [vmem:[%s425_s3 + $0x38] sm:$0xff] %v246_v41 }

// kernel: _lambda_.58
= control target key start
LH: loop header
LB: loop body
LE: loop exit
PB: predicated region body
PF: predicated region fallthrough
CT: control target
= control target key end

     0   :  { %s873_s12 = smov 0   ;;  %s875_s13 = smov 0   ;;  %s956_s0 = inlined_call_operand.vmem [shape: bf16[4,24,32], index: 0, kind: input, shape index: {}]   ;;  %s957_s1 = inlined_call_operand.vmem [shape: bf16[4,24,32], index: 1, kind: input, shape index: {}]   ;;  %s958_s2 = inlined_call_operand.vmem [shape: bf16[4,24,32], index: 2, kind: input, shape index: {}]   ;;  %s959_s3 = inlined_call_operand.vmem [shape: f32[4,24,32], index: 3, kind: output, shape index: {}]  }
   0x1   :  { %s877_s14 = smov 0  }
   0x2 LB: > { %s32_s15 = sadd.s32 1, %s844_s13  ;;  %p727_p0 = scmp.ge.s32.totalorder %s848_s14, 1  ;;  %s848_s14 = sphi %s877_s14, %s13_s14   ;;  %s844_s13 = sphi %s875_s13, %s961_s13   ;;  %s840_s12 = sphi %s873_s12, %s960_s12  }
   0x3   : > { %p34_p1 = scmp.ge.s32.totalorder %s32_s15, 4  ;;  %p199_p2 = scmp.lt.s32.totalorder %s848_s14, 5 }
   0x5   : > { %s963_s15 = smov (%p34_p1, %s32_s15), 0  ;;  %p200_p3 = pnand %p727_p0, %p199_p2 }
   0x6   : > { %p250_p4 = scmp.lt.s32.totalorder (!%p200_p3), %s840_s12, 3  ;;  %vm301_vm0 = vcmask (!%p200_p3), 261120   ;;  %vm294_vm1 = vcmask (!%p200_p3), 7168   ;;  %v850_v6 = vmov (!%p200_p3), -1e+30   ;;  %vm397_vm2 = vcmask (!%p200_p3), 195584  }
   0x7   : > { %203 = sbr.rel (%p200_p3) target bundleno = 842 (0x34a), region = 32  ;;  %297 = vst.msk [vmem:[#allocation2 + $0x10] sm:$0xff] (!%p200_p3), %vm294_vm1, %v850_v6  ;;  %295 = vst.msk [vmem:[#allocation2] sm:$0xff] (!%p200_p3), %vm294_vm1, %v850_v6  ;;  %v851_v17 = vmov (!%p200_p3), 0   ;;  %v852_v18 = vmov (!%p200_p3), 0.0   ;;  %vm503_vm3 = vcmask (!%p200_p3), 1043456  }
   0x8   : > { %296 = vst.msk [vmem:[#allocation2 + $0x8] sm:$0xff] (!%p200_p3), %vm294_vm1, %v850_v6  ;;  %800 = vset.pattern.permute.xlu1 (!%p200_p3), %v851_v17  ;;  %801 = vset.pattern.permute.xlu0 (!%p200_p3), %v851_v17  ;;  %298 = vst.msk [vmem:[#allocation3] sm:$0xff] (!%p200_p3), %vm294_vm1, %v852_v18 }
   0x9   : > { %302 = vst.msk [vmem:[#allocation4] sm:$0xff] (!%p200_p3), %vm301_vm0, %v852_v18  ;;  %303 = vst.msk [vmem:[#allocation4 + $0x8] sm:$0xff] (!%p200_p3), %vm301_vm0, %v852_v18 }
   0xa   : > { %304 = vst.msk [vmem:[#allocation4 + $0x10] sm:$0xff] (!%p200_p3), %vm301_vm0, %v852_v18 }
   0xb   : > { %299 = vst.msk [vmem:[#allocation3 + $0x8] sm:$0xff] (!%p200_p3), %vm294_vm1, %v852_v18  ;;  %300 = vst.msk [vmem:[#allocation3 + $0x10] sm:$0xff] (!%p200_p3), %vm294_vm1, %v852_v18 }
   0xe   : > { %s965_s12 = smov (!%p250_p4, %s840_s12), 3  ;;  %v396_v19 = vld [vmem:[#allocation2 + $0x10] sm:$0xff]  ;;  %v394_v20 = vld [vmem:[#allocation2] sm:$0xff] }
   0xf   : > { %s894_s16 = smul.u32 12, %s965_s12  ;;  %v395_v26 = vld [vmem:[#allocation2 + $0x8] sm:$0xff]  ;;  %v443_v57 = vld [vmem:[#allocation3] sm:$0xff] }
  0x10   : > { %s772_s26 = smul.u32 24, %s965_s12 }
  0x11   : > { %s267_s19 = scalar_lea.vmem %s957_s1, %s894_s16  ;;  %s257_s22 = scalar_lea.vmem %s956_s0, %s894_s16 }
  0x12   : > { %v802_v0 = vld [vmem:[%s267_s19] sm:$0xff]   ;;  %v803_v1 = vld [vmem:[%s267_s19 + $0x8] ss:$0 sps:$4 sm:$0xff]   ;;  %s277_s25 = scalar_lea.vmem %s958_s2, %s894_s16  ;;  %s287_s29 = scalar_lea.vmem %s959_s3, %s772_s26 }
  0x13   : > { %v804_v2 = vld [vmem:[%s257_s22] sm:$0xff]   ;;  %768 = vmatprep.subr.msk.bf16.mxu0 %vm301_vm0, %v802_v0  ;;  %v338_v3 = vsel %vm301_vm0, %v802_v0, 0  ;;  %v341_v4 = vsel %vm301_vm0, %v803_v1, 0  ;;  %v805_v5 = vld [vmem:[%s257_s22 + $0x8] ss:$0 sps:$4 sm:$0xff]  }
  0x14   : > { %753 = vmatpush3.bf16.xpose.msra.mxu0 %v338_v3  ;;  %756 = vmatprep.mubr.msk.bf16.mxu0 %vm301_vm0, %v804_v2  ;;  %v806_v31 = vld [vmem:[%s277_s25] sm:$0xff]   ;;  %v807_v32 = vld [vmem:[%s277_s25 + $0x8] ss:$0 sps:$4 sm:$0xff]  }
  0x15   : > { %769 = vmatprep.subr.msk.bf16.mxu0 %vm301_vm0, %v803_v1  ;;  %760 = vmatprep.subr.bf16.mxu1 %v806_v31  ;;  %v505_v33 = vsel %vm503_vm3, %v807_v32, 0  ;;  %v445_v60 = vld [vmem:[#allocation3 + $0x10] sm:$0xff]  ;;  %v444_v62 = vld [vmem:[#allocation3 + $0x8] sm:$0xff] }
  0x16   : > { %761 = vmatpush3.bf16.msra.mxu1 %v806_v31 }
  0x17   : > { %770 = vmatprep.subr.msk.bf16.mxu1 %vm503_vm3, %v807_v32 }
  0x1a   : > { %763 = vmatpush3.bf16.msra.mxu1 %v505_v33 }
  0x1c   : > { %755 = vmatpush3.bf16.xpose.msra.mxu0 %v341_v4 }
  0x23   : > { %757 = vmatmul.mubr.msk.bf16.vlgmr.msra.gmra.mrb[0].mxu0 %vm301_vm0, %v805_v5 }
  0xf6   : > { %v758_v7 = vpop.f32.mrb[0].mxu0 }
  0xf7   : > { %v393_v8 = vmul.f32 0.17677669, %v758_v7  ;;  %v377_v9 = vpop.f32.mrb[1].mxu0 }
  0xf8   : > { %v391_v10 = vmul.f32 0.17677669, %v377_v9  ;;  %v759_v11 = vpop.f32.mrb[2].mxu0 }
  0xf9   : > { %v380_v12 = vpop.f32.mrb[3].mxu0  ;;  %v404_v13 = vsel %vm397_vm2, %v393_v8, -inf }
  0xfa   : > { %v392_v14 = vmul.f32 0.17677669, %v380_v12  ;;  %405 = vmax.xlane.f32.xlu1 %v404_v13  ;;  %v398_v15 = vsel %vm397_vm2, %v391_v10, -inf  ;;  %v467_v12 = vld [vmem:[#allocation4 + $0x10] sm:$0xff] }
  0xfb   : > { %399 = vmax.xlane.f32.xlu0 %v398_v15 }
  0xfc   : > { %v401_v16 = vsel %vm397_vm2, %v392_v14, -inf }
  0xff   : > { %402 = vmax.xlane.f32.xlu0 %v401_v16  ;;  %v466_v16 = vld [vmem:[#allocation4 + $0x8] sm:$0xff] }
 0x187   : > { %v406_v21 = vpop.xlane.xlu1 %405 }
 0x188   : > { %v409_v22 = vmax.f32 %v396_v19, %v406_v21  ;;  %v400_v23 = vpop.xlane.xlu0 %399 }
 0x189   : > { %v407_v24 = vmax.f32 %v394_v20, %v400_v23 }
 0x18a   : > { %v412_v25 = vsub.f32 %v396_v19, %v409_v22  ;;  %563 = vst.msk [vmem:[#allocation2 + $0x10] sm:$0xff] %vm294_vm1, %v409_v22 }
 0x18b   : > { %v410_v27 = vsub.f32 %v394_v20, %v407_v24  ;;  %561 = vst.msk [vmem:[#allocation2] sm:$0xff] %vm294_vm1, %v407_v24  ;;  %421 = vperm.xlu1 %800, %v407_v24  }
 0x18c   : > { %v403_v28 = vpop.xlane.xlu0 %402  ;;  %v417_v53 = vmul.f32 1.442695, %v412_v25 }
 0x18d   : > { %v408_v29 = vmax.f32 %v395_v26, %v403_v28  ;;  %v413_v51 = vmul.f32 1.442695, %v410_v27 }
 0x18f   : > { %v411_v30 = vsub.f32 %v395_v26, %v408_v29  ;;  %562 = vst.msk [vmem:[#allocation2 + $0x8] sm:$0xff] %vm294_vm1, %v408_v29  ;;  %431 = vperm.xlu1 %800, %v409_v22   ;;  %426 = vperm.xlu0 %801, %v408_v29  }
 0x191   : > { %v415_v52 = vmul.f32 1.442695, %v411_v30 }
 0x20a   : > { %v422_v34 = vpop.permute.xlu1 %421 }
 0x20b   : > { %v434_v35 = vsub.f32 %v391_v10, %v422_v34 }
 0x20d   : > { %v437_v36 = vmul.f32 1.442695, %v434_v35 }
 0x20e   : > { %v432_v37 = vpop.permute.xlu1 %431  ;;  %v427_v38 = vpop.permute.xlu0 %426 }
 0x20f   : > { %808 = vpow2.f32 %v437_v36  ;;  %v436_v39 = vsub.f32 %v393_v8, %v432_v37  ;;  %v435_v40 = vsub.f32 %v392_v14, %v427_v38  ;;  %v465_v14 = vld [vmem:[#allocation4] sm:$0xff] }
 0x211   : > { %v441_v41 = vmul.f32 1.442695, %v436_v39  ;;  %v439_v42 = vmul.f32 1.442695, %v435_v40 }
 0x213   : > { %810 = vpow2.f32 %v441_v41 }
 0x214   : > { %812 = vpow2.f32 %v439_v42 }
 0x215   : > { %814 = vpow2.f32 %v413_v51 }
 0x216   : > { %816 = vpow2.f32 %v415_v52 }
 0x217   : > { %818 = vpow2.f32 %v417_v53 }
 0x219   : > { %v809_v43 = vpop.eup %808 }
 0x21a   : > { %v449_v44 = vsel %vm397_vm2, %v809_v43, 0.0 }
 0x21b   : > { %450 = vadd.xlane.f32.xlu1 %v449_v44 }
 0x21d   : > { %v811_v45 = vpop.eup %810 }
 0x21e   : > { %v813_v46 = vpop.eup %812  ;;  %v455_v47 = vsel %vm397_vm2, %v811_v45, 0.0  ;;  %v487_v48 = vpack.c.bf16 %v811_v45, %v811_v45 }
 0x21f   : > { %456 = vadd.xlane.f32.xlu1 %v455_v47  ;;  %v452_v49 = vsel %vm397_vm2, %v813_v46, 0.0  ;;  %v486_v50 = vpack.c.bf16 %v813_v46, %v809_v43  ;;  %v815_v54 = vpop.eup %814 }
 0x220   : > { %453 = vadd.xlane.f32.xlu0 %v452_v49  ;;  %v817_v55 = vpop.eup %816  ;;  %v446_v58 = vmul.f32 %v815_v54, %v443_v57 }
 0x221   : > { %764 = vmatprep.mubr.msk.bf16.mxu1 %vm397_vm2, %v486_v50  ;;  %v819_v56 = vpop.eup %818  ;;  %v447_v1 = vmul.f32 %v817_v55, %v444_v62 }
 0x222   : > { %765 = vmatmul.mubr.msk.bf16.vlgmr.msra.gmra.mrb[0].mxu1 %vm397_vm2, %v487_v48  ;;  %v448_v63 = vmul.f32 %v819_v56, %v445_v60 }
 0x230   : > { %470 = vperm.xlu1 %800, %v815_v54  }
 0x234   : > { %475 = vperm.xlu1 %800, %v817_v55  }
 0x236   : > { %480 = vperm.xlu0 %801, %v819_v56  }
 0x2a8   : > { %v451_v59 = vpop.xlane.xlu1 %450 }
 0x2a9   : > { %v458_v61 = vadd.f32 %v451_v59, %v446_v58 }
 0x2ab   : > { %462 = vst.msk [vmem:[#allocation3] sm:$0xff] %vm294_vm1, %v458_v61 }
 0x2ac   : > { %v457_v0 = vpop.xlane.xlu1 %456 }
 0x2ad   : > { %v460_v2 = vadd.f32 %v457_v0, %v448_v63  ;;  %v454_v3 = vpop.xlane.xlu0 %453 }
 0x2ae   : > { %v459_v4 = vadd.f32 %v454_v3, %v447_v1 }
 0x2af   : > { %464 = vst.msk [vmem:[#allocation3 + $0x10] sm:$0xff] %vm294_vm1, %v460_v2 }
 0x2b0   : > { %463 = vst.msk [vmem:[#allocation3 + $0x8] sm:$0xff] %vm294_vm1, %v459_v4  ;;  %v471_v11 = vpop.permute.xlu1 %470 }
 0x2b1   : > { %v483_v18 = vmul.f32 %v471_v11, %v465_v14 }
 0x2b2   : > { %v567_v5 = vld [vmem:[#allocation3] sm:$0xff] }
 0x2b3   : > { %820 = vrcp.f32 %v567_v5 }
 0x2b4   : > { %v476_v17 = vpop.permute.xlu1 %475 }
 0x2b5   : > { %v481_v13 = vpop.permute.xlu0 %480  ;;  %v484_v22 = vmul.f32 %v476_v17, %v466_v16 }
 0x2b6   : > { %v569_v7 = vld [vmem:[#allocation3 + $0x10] sm:$0xff]  ;;  %v485_v15 = vmul.f32 %v481_v13, %v467_v12 }
 0x2b7   : > { %v568_v6 = vld [vmem:[#allocation3 + $0x8] sm:$0xff] }
 0x2b8   : > { %822 = vrcp.f32 %v568_v6 }
 0x2b9   : > { %824 = vrcp.f32 %v569_v7 }
 0x2bd   : > { %v821_v8 = vpop.eup %820 }
 0x2be   : > { %578 = vperm.xlu1 %800, %v821_v8  }
 0x2c2   : > { %v823_v9 = vpop.eup %822 }
 0x2c3   : > { %583 = vperm.xlu1 %800, %v823_v9   ;;  %v825_v10 = vpop.eup %824 }
 0x2c7   : > { %588 = vperm.xlu1 %800, %v825_v10  }
 0x2f5   : > { %v766_v19 = vpop.f32.mrb[0].mxu1 }
 0x2f6   : > { %v557_v20 = vadd.f32 %v766_v19, %v485_v15  ;;  %v541_v21 = vpop.f32.mrb[1].mxu1 }
 0x2f7   : > { %v555_v23 = vadd.f32 %v541_v21, %v483_v18  ;;  %v767_v24 = vpop.f32.mrb[2].mxu1 }
 0x2f8   : > { %560 = vst.msk [vmem:[#allocation4 + $0x10] sm:$0xff] %vm301_vm0, %v557_v20  ;;  %v544_v25 = vpop.f32.mrb[3].mxu1 }
 0x2f9   : > { %558 = vst.msk [vmem:[#allocation4] sm:$0xff] %vm301_vm0, %v555_v23  ;;  %v556_v26 = vadd.f32 %v544_v25, %v484_v22 }
 0x2fb   : > { %559 = vst.msk [vmem:[#allocation4 + $0x8] sm:$0xff] %vm301_vm0, %v556_v26 }
 0x2ff   : > { %v575_v33 = vld [vmem:[#allocation4 + $0x10] sm:$0xff] }
 0x300   : > { %v573_v27 = vld [vmem:[#allocation4] sm:$0xff] }
 0x302   : > { %v574_v30 = vld [vmem:[#allocation4 + $0x8] sm:$0xff] }
 0x33d   : > { %v579_v28 = vpop.permute.xlu1 %578 }
 0x33e   : > { %v591_v29 = vmul.f32 %v579_v28, %v573_v27 }
 0x340   : > { %594 = vst.msk [vmem:[%s287_s29] sm:$0xff] %vm301_vm0, %v591_v29 }
 0x342   : > { %v584_v31 = vpop.permute.xlu1 %583 }
 0x343   : > { %v592_v32 = vmul.f32 %v584_v31, %v574_v30 }
 0x345   : > { %595 = vst.msk [vmem:[%s287_s29 + $0x8] sm:$0xff] %vm301_vm0, %v592_v32 }
 0x346   : > { %v589_v34 = vpop.permute.xlu1 %588 }
 0x347   : > { %v593_v35 = vmul.f32 %v589_v34, %v575_v33 }
 0x349   : > { %596 = vst.msk [vmem:[%s287_s29 + $0x10] sm:$0xff] %vm301_vm0, %v593_v35 }
 0x34a PF: > { %s13_s14 = sadd.s32 1, %s848_s14   ;;  %s960_s12 = smov %s844_s13 }
 0x34b   : > { %p10_p5 = scmp.ge.s32.totalorder %s13_s14, 6   ;;  %s961_s13 = smov %s963_s15 }
 0x34d   :  { %12 = sbr.rel (!%p10_p5) target bundleno = 2 (0x2), region = 76 }

// kernel: _lambda_.62
= control target key start
LH: loop header
LB: loop body
LE: loop exit
PB: predicated region body
PF: predicated region fallthrough
CT: control target
= control target key end

     0   :  { %s444_s1 = inlined_call_operand.vmem [shape: bf16[256,128], index: 1, kind: input, shape index: {}]   ;;  %s445_s0 = inlined_call_operand.vmem [shape: bf16[32,256], index: 0, kind: input, shape index: {}]   ;;  %s446_s2 = inlined_call_operand.vmem [shape: f32[1,128], index: 2, kind: input, shape index: {}]   ;;  %s447_s3 = inlined_call_operand.vmem [shape: f32[32,128], index: 3, kind: output, shape index: {}]  }
   0x1   :  { %v327_v0 = vld [vmem:[%s444_s1 + $0x40] sm:$0xff]   ;;  %v329_v2 = vld [vmem:[%s444_s1 + $0x48] sm:$0xff]   ;;  %v331_v4 = vld [vmem:[%s444_s1 + $0x50] sm:$0xff]  }
   0x2   :  { %v328_v1 = vld [vmem:[%s444_s1] sm:$0xff]   ;;  %283 = vmatprep.subr.bf16.mxu0 %v327_v0  ;;  %311 = vmatprep.subr.bf16.mxu1 %v327_v0  ;;  %v330_v3 = vld [vmem:[%s444_s1 + $0x8] sm:$0xff]   ;;  %v332_v5 = vld [vmem:[%s444_s1 + $0x10] sm:$0xff]  }
   0x3   :  { %284 = vmatpush3.bf16.msra.mxu0 %v328_v1  ;;  %319 = vmatpush3.bf16.msra.mxu1 %v328_v1  ;;  %v333_v6 = vld [vmem:[%s444_s1 + $0x58] sm:$0xff]   ;;  %v335_v8 = vld [vmem:[%s444_s1 + $0x60] sm:$0xff]   ;;  %v337_v10 = vld [vmem:[%s444_s1 + $0x68] sm:$0xff]  }
   0x4   :  { %285 = vmatprep.subr.bf16.mxu0 %v329_v2  ;;  %312 = vmatprep.subr.bf16.mxu1 %v329_v2  ;;  %v334_v7 = vld [vmem:[%s444_s1 + $0x18] sm:$0xff]   ;;  %v336_v9 = vld [vmem:[%s444_s1 + $0x20] sm:$0xff]   ;;  %v338_v13 = vld [vmem:[%s444_s1 + $0x28] sm:$0xff]  }
   0x5   :  { %v345_v11 = vld [vmem:[%s445_s0 + $0x4] ss:$8 sps:$4 sm:$0xff]   ;;  %v348_v12 = vld [vmem:[%s445_s0 + $0x14] ss:$8 sps:$4 sm:$0xff]   ;;  %v343_v18 = vld [vmem:[%s445_s0] ss:$8 sps:$4 sm:$0xff]  }
   0x6   :  { %v339_v14 = vld [vmem:[%s444_s1 + $0x70] sm:$0xff]   ;;  %211 = vmatprep.mubr.bf16.mxu0 %v345_v11  ;;  %219 = vmatprep.mubr.bf16.mxu1 %v348_v12  ;;  %v341_v16 = vld [vmem:[%s444_s1 + $0x78] sm:$0xff]   ;;  %v282_v23 = vld [vmem:[%s446_s2] ss:$0 sm:$0xff] }
   0x7   :  { %286 = vmatpush3.bf16.msra.mxu0 %v330_v3  ;;  %320 = vmatpush3.bf16.msra.mxu1 %v330_v3  ;;  %v340_v15 = vld [vmem:[%s444_s1 + $0x30] sm:$0xff]   ;;  %v342_v17 = vld [vmem:[%s444_s1 + $0x38] sm:$0xff]  }
   0x8   :  { %287 = vmatprep.subr.bf16.mxu0 %v331_v4  ;;  %313 = vmatprep.subr.bf16.mxu1 %v331_v4  ;;  %v346_v19 = vld [vmem:[%s445_s0 + $0x10] ss:$8 sps:$4 sm:$0xff]  }
   0xb   :  { %288 = vmatpush3.bf16.msra.mxu0 %v332_v5  ;;  %321 = vmatpush3.bf16.msra.mxu1 %v332_v5 }
   0xc   :  { %289 = vmatprep.subr.bf16.mxu0 %v333_v6  ;;  %314 = vmatprep.subr.bf16.mxu1 %v333_v6 }
   0xf   :  { %290 = vmatpush3.bf16.msra.mxu0 %v334_v7  ;;  %322 = vmatpush3.bf16.msra.mxu1 %v334_v7 }
  0x10   :  { %291 = vmatprep.subr.bf16.mxu0 %v335_v8  ;;  %315 = vmatprep.subr.bf16.mxu1 %v335_v8 }
  0x13   :  { %292 = vmatpush3.bf16.msra.mxu0 %v336_v9  ;;  %323 = vmatpush3.bf16.msra.mxu1 %v336_v9 }
  0x14   :  { %293 = vmatprep.subr.bf16.mxu0 %v337_v10  ;;  %316 = vmatprep.subr.bf16.mxu1 %v337_v10 }
  0x17   :  { %294 = vmatpush3.bf16.msra.mxu0 %v338_v13  ;;  %324 = vmatpush3.bf16.msra.mxu1 %v338_v13 }
  0x18   :  { %295 = vmatprep.subr.bf16.mxu0 %v339_v14  ;;  %317 = vmatprep.subr.bf16.mxu1 %v339_v14 }
  0x1b   :  { %296 = vmatpush3.bf16.msra.mxu0 %v340_v15  ;;  %325 = vmatpush3.bf16.msra.mxu1 %v340_v15 }
  0x1c   :  { %297 = vmatprep.subr.bf16.mxu0 %v341_v16  ;;  %318 = vmatprep.subr.bf16.mxu1 %v341_v16 }
  0x1f   :  { %298 = vmatpush3.bf16.msra.mxu0 %v342_v17  ;;  %326 = vmatpush3.bf16.msra.mxu1 %v342_v17 }
  0x22   :  { %212 = vmatmul.mubr.bf16.vlgmr.msra.gmra.mrb[0].mxu0 %v343_v18  ;;  %220 = vmatmul.mubr.bf16.vlgmr.msra.gmra.mrb[0].mxu1 %v346_v19 }
  0xf5   :  { %v299_v20 = vpop.f32.mrb[0].mxu0  ;;  %v305_v21 = vpop.f32.mrb[0].mxu1 }
  0xf6   :  { %v300_v22 = vpop.f32.mrb[1].mxu0  ;;  %v306_v24 = vpop.f32.mrb[1].mxu1 }
  0xf7   :  { %v301_v25 = vadd.f32 %v300_v22, %v299_v20  ;;  %v307_v26 = vadd.f32 %v306_v24, %v305_v21  ;;  %v302_v27 = vpop.f32.mrb[2].mxu0  ;;  %v308_v28 = vpop.f32.mrb[2].mxu1 }
  0xf8   :  { %v303_v29 = vpop.f32.mrb[3].mxu0  ;;  %v309_v30 = vpop.f32.mrb[3].mxu1 }
  0xf9   :  { %v250_v31 = vadd.f32 %v301_v25, %v282_v23  ;;  %v252_v32 = vadd.f32 %v307_v26, %v282_v23  ;;  %v304_v33 = vadd.f32 %v303_v29, %v302_v27  ;;  %v310_v34 = vadd.f32 %v309_v30, %v308_v28 }
  0xfb   :  { %254 = vst [vmem:[%s447_s3] sm:$0xff] %v250_v31  ;;  %256 = vst [vmem:[%s447_s3 + $0x10] sm:$0xff] %v252_v32  ;;  %v251_v35 = vadd.f32 %v304_v33, %v282_v23  ;;  %v253_v36 = vadd.f32 %v310_v34, %v282_v23 }
  0xfd   :  { %255 = vst [vmem:[%s447_s3 + $0x8] sm:$0xff] %v251_v35  ;;  %257 = vst [vmem:[%s447_s3 + $0x18] sm:$0xff] %v253_v36 }

// kernel: _lambda_.61
= control target key start
LH: loop header
LB: loop body
LE: loop exit
PB: predicated region body
PF: predicated region fallthrough
CT: control target
= control target key end

     0   :  { %v436_v1 = vmov 0   ;;  %v229_v19 = vlaneseq  ;;  %s582_s1 = inlined_call_operand.vmem [shape: bf16[128,256], index: 1, kind: input, shape index: {}]   ;;  %s583_s0 = inlined_call_operand.vmem [shape: bf16[32,128], index: 0, kind: input, shape index: {}]   ;;  %s584_s2 = inlined_call_operand.vmem [shape: f32[1,256], index: 2, kind: input, shape index: {}]   ;;  %s585_s3 = inlined_call_operand.vmem [shape: bf16[32,256], index: 3, kind: output, shape index: {}]  }
   0x1   :  { %v394_v0 = vld [vmem:[%s582_s1 + $0x4] ss:$8 sps:$4 sm:$0xff]   ;;  %179 = vmatprep.mubr.bf16.mxu0 %v436_v1  ;;  %189 = vmatprep.mubr.bf16.mxu1 %v436_v1  ;;  %v396_v2 = vld [vmem:[%s582_s1] ss:$8 sps:$4 sm:$0xff]   ;;  %v397_v3 = vld [vmem:[%s582_s1 + $0x14] ss:$8 sps:$4 sm:$0xff]  }
   0x2   :  { %147 = vmatprep.subr.bf16.mxu0 %v394_v0  ;;  %377 = vmatprep.subr.bf16.mxu1 %v394_v0  ;;  %v399_v4 = vld [vmem:[%s582_s1 + $0x10] ss:$8 sps:$4 sm:$0xff]   ;;  %v400_v5 = vld [vmem:[%s582_s1 + $0x24] ss:$8 sps:$4 sm:$0xff]   ;;  %v402_v6 = vld [vmem:[%s582_s1 + $0x20] ss:$8 sps:$4 sm:$0xff]  }
   0x3   :  { %148 = vmatpush1.bf16.msra.mxu0 %v396_v2  ;;  %385 = vmatpush1.bf16.msra.mxu1 %v396_v2  ;;  %v403_v7 = vld [vmem:[%s582_s1 + $0x34] ss:$8 sps:$4 sm:$0xff]   ;;  %v405_v8 = vld [vmem:[%s582_s1 + $0x30] ss:$8 sps:$4 sm:$0xff]   ;;  %v406_v9 = vld [vmem:[%s582_s1 + $0x44] ss:$8 sps:$4 sm:$0xff]  }
   0x4   :  { %149 = vmatprep.subr.bf16.mxu0 %v397_v3  ;;  %378 = vmatprep.subr.bf16.mxu1 %v397_v3  ;;  %v408_v10 = vld [vmem:[%s582_s1 + $0x40] ss:$8 sps:$4 sm:$0xff]   ;;  %v409_v11 = vld [vmem:[%s582_s1 + $0x54] ss:$8 sps:$4 sm:$0xff]   ;;  %v411_v12 = vld [vmem:[%s582_s1 + $0x50] ss:$8 sps:$4 sm:$0xff]  }
   0x5   :  { %v412_v13 = vld [vmem:[%s582_s1 + $0x64] ss:$8 sps:$4 sm:$0xff]   ;;  %v414_v14 = vld [vmem:[%s582_s1 + $0x60] ss:$8 sps:$4 sm:$0xff]   ;;  %v415_v15 = vld [vmem:[%s582_s1 + $0x74] ss:$8 sps:$4 sm:$0xff]  }
   0x6   :  { %v417_v16 = vld [vmem:[%s582_s1 + $0x70] ss:$8 sps:$4 sm:$0xff]   ;;  %v418_v17 = vld [vmem:[%s583_s0] sm:$0xff]   ;;  %v419_v18 = vld [vmem:[%s583_s0 + $0x8] sm:$0xff]   ;;  %v230_v20 = vshrl.u32 %v229_v19, 7 }
   0x7   :  { %150 = vmatpush1.bf16.msra.mxu0 %v399_v4  ;;  %386 = vmatpush1.bf16.msra.mxu1 %v399_v4  ;;  %v227_v22 = vld [vmem:[%s584_s2] sm:$0x3] }
   0x8   :  { %151 = vmatprep.subr.bf16.mxu0 %v400_v5  ;;  %379 = vmatprep.subr.bf16.mxu1 %v400_v5  ;;  %v231_v21 = vsub.s32 0, %v230_v20  ;;  %v235_v23 = vsub.s32 1, %v230_v20 }
   0xa   :  { %v232_v24 = vrot.slane %v227_v22, %v231_v21  ;;  %v236_v25 = vrot.slane %v227_v22, %v235_v23 }
   0xb   :  { %152 = vmatpush1.bf16.msra.mxu0 %v402_v6  ;;  %387 = vmatpush1.bf16.msra.mxu1 %v402_v6 }
   0xc   :  { %153 = vmatprep.subr.bf16.mxu0 %v403_v7  ;;  %380 = vmatprep.subr.bf16.mxu1 %v403_v7 }
   0xf   :  { %154 = vmatpush1.bf16.msra.mxu0 %v405_v8  ;;  %388 = vmatpush1.bf16.msra.mxu1 %v405_v8 }
  0x10   :  { %155 = vmatprep.subr.bf16.mxu0 %v406_v9  ;;  %381 = vmatprep.subr.bf16.mxu1 %v406_v9 }
  0x13   :  { %156 = vmatpush1.bf16.msra.mxu0 %v408_v10  ;;  %389 = vmatpush1.bf16.msra.mxu1 %v408_v10 }
  0x14   :  { %157 = vmatprep.subr.bf16.mxu0 %v409_v11  ;;  %382 = vmatprep.subr.bf16.mxu1 %v409_v11 }
  0x17   :  { %158 = vmatpush1.bf16.msra.mxu0 %v411_v12  ;;  %390 = vmatpush1.bf16.msra.mxu1 %v411_v12 }
  0x18   :  { %159 = vmatprep.subr.bf16.mxu0 %v412_v13  ;;  %383 = vmatprep.subr.bf16.mxu1 %v412_v13 }
  0x1b   :  { %160 = vmatpush1.bf16.msra.mxu0 %v414_v14  ;;  %391 = vmatpush1.bf16.msra.mxu1 %v414_v14 }
  0x1c   :  { %161 = vmatprep.subr.bf16.mxu0 %v415_v15  ;;  %384 = vmatprep.subr.bf16.mxu1 %v415_v15 }
  0x1f   :  { %162 = vmatpush1.bf16.msra.mxu0 %v417_v16  ;;  %392 = vmatpush1.bf16.msra.mxu1 %v417_v16 }
  0x22   :  { %180 = vmatmul.mubr.bf16.vlgmr.msra.gmra.mrb[0].mxu0 %v418_v17  ;;  %190 = vmatmul.mubr.bf16.vlgmr.msra.gmra.mrb[0].mxu1 %v419_v18 }
  0xf5   :  { %v181_v26 = vpop.f32.mrb[0].mxu0  ;;  %v191_v27 = vpop.f32.mrb[0].mxu1 }
  0xf6   :  { %v514_v28 = vadd.f32 %v232_v24, %v181_v26  ;;  %v516_v29 = vadd.f32 %v232_v24, %v191_v27  ;;  %v183_v30 = vpop.f32.mrb[1].mxu0  ;;  %v193_v31 = vpop.f32.mrb[1].mxu1 }
  0xf7   :  { %v518_v32 = vadd.f32 %v236_v25, %v183_v30  ;;  %v520_v33 = vadd.f32 %v236_v25, %v193_v31  ;;  %v185_v34 = vpop.f32.mrb[2].mxu0  ;;  %v195_v35 = vpop.f32.mrb[2].mxu1 }
  0xf8   :  { %v255_v36 = vmul.f32 %v514_v28, %v514_v28  ;;  %v259_v37 = vmul.f32 %v516_v29, %v516_v29  ;;  %v187_v38 = vpop.f32.mrb[3].mxu0  ;;  %v197_v39 = vpop.f32.mrb[3].mxu1  ;;  %v532_v44 = vadd.f32 %v232_v24, %v185_v34  ;;  %v534_v45 = vadd.f32 %v232_v24, %v195_v35 }
  0xf9   :  { %v256_v40 = vmul.f32 %v518_v32, %v518_v32  ;;  %v260_v41 = vmul.f32 %v520_v33, %v520_v33  ;;  %v538_v48 = vadd.f32 %v236_v25, %v187_v38  ;;  %v542_v52 = vadd.f32 %v236_v25, %v197_v39 }
  0xfa   :  { %v263_v42 = vmul.f32 %v255_v36, %v514_v28  ;;  %v267_v43 = vmul.f32 %v259_v37, %v516_v29  ;;  %v257_v51 = vmul.f32 %v532_v44, %v532_v44  ;;  %v261_v55 = vmul.f32 %v534_v45, %v534_v45 }
  0xfb   :  { %v264_v46 = vmul.f32 %v256_v40, %v518_v32  ;;  %v268_v47 = vmul.f32 %v260_v41, %v520_v33  ;;  %v258_v62 = vmul.f32 %v538_v48, %v538_v48  ;;  %v262_v2 = vmul.f32 %v542_v52, %v542_v52 }
  0xfc   :  { %v271_v49 = vmul.f32 0.044715, %v263_v42  ;;  %v275_v50 = vmul.f32 0.044715, %v267_v43  ;;  %v265_v58 = vmul.f32 %v257_v51, %v532_v44  ;;  %v269_v61 = vmul.f32 %v261_v55, %v534_v45 }
  0xfd   :  { %v272_v53 = vmul.f32 0.044715, %v264_v46  ;;  %v276_v54 = vmul.f32 0.044715, %v268_v47  ;;  %v266_v6 = vmul.f32 %v258_v62, %v538_v48  ;;  %v270_v8 = vmul.f32 %v262_v2, %v542_v52 }
  0xfe   :  { %v279_v56 = vadd.f32 %v271_v49, %v514_v28  ;;  %v283_v57 = vadd.f32 %v275_v50, %v516_v29  ;;  %v273_v1 = vmul.f32 0.044715, %v265_v58  ;;  %v277_v5 = vmul.f32 0.044715, %v269_v61 }
  0xff   :  { %v280_v59 = vadd.f32 %v272_v53, %v518_v32  ;;  %v284_v60 = vadd.f32 %v276_v54, %v520_v33  ;;  %v274_v10 = vmul.f32 0.044715, %v266_v6  ;;  %v278_v12 = vmul.f32 0.044715, %v270_v8 }
 0x100   :  { %v287_v63 = vmul.f32 0.7978846, %v279_v56  ;;  %v291_v0 = vmul.f32 0.7978846, %v283_v57  ;;  %v281_v7 = vadd.f32 %v273_v1, %v532_v44  ;;  %v285_v9 = vadd.f32 %v277_v5, %v534_v45 }
 0x101   :  { %v288_v3 = vmul.f32 0.7978846, %v280_v59  ;;  %v292_v4 = vmul.f32 0.7978846, %v284_v60  ;;  %v282_v14 = vadd.f32 %v274_v10, %v538_v48  ;;  %v286_v15 = vadd.f32 %v278_v12, %v542_v52 }
 0x102   :  { %420 = vtanh.f32 %v287_v63  ;;  %v289_v11 = vmul.f32 0.7978846, %v281_v7  ;;  %v293_v13 = vmul.f32 0.7978846, %v285_v9  ;;  %v247_v20 = vmul.f32 0.5, %v514_v28 }
 0x103   :  { %422 = vtanh.f32 %v291_v0  ;;  %v290_v16 = vmul.f32 0.7978846, %v282_v14  ;;  %v294_v17 = vmul.f32 0.7978846, %v286_v15  ;;  %v251_v23 = vmul.f32 0.5, %v516_v29 }
 0x104   :  { %424 = vtanh.f32 %v288_v3  ;;  %v248_v27 = vmul.f32 0.5, %v518_v32  ;;  %v252_v35 = vmul.f32 0.5, %v520_v33  ;;  %v249_v28 = vmul.f32 0.5, %v532_v44 }
 0x105   :  { %426 = vtanh.f32 %v292_v4  ;;  %v253_v43 = vmul.f32 0.5, %v534_v45  ;;  %v250_v49 = vmul.f32 0.5, %v538_v48  ;;  %v254_v51 = vmul.f32 0.5, %v542_v52 }
 0x106   :  { %428 = vtanh.f32 %v289_v11 }
 0x107   :  { %430 = vtanh.f32 %v293_v13 }
 0x108   :  { %432 = vtanh.f32 %v290_v16 }
 0x109   :  { %434 = vtanh.f32 %v294_v17 }
 0x10c   :  { %v421_v18 = vpop.eup %420 }
 0x10d   :  { %v423_v19 = vpop.eup %422  ;;  %v303_v21 = vadd.f32 1.0, %v421_v18 }
 0x10e   :  { %v425_v22 = vpop.eup %424  ;;  %v307_v24 = vadd.f32 1.0, %v423_v19 }
 0x10f   :  { %v427_v25 = vpop.eup %426  ;;  %v311_v26 = vmul.f32 %v303_v21, %v247_v20  ;;  %v304_v30 = vadd.f32 1.0, %v425_v22 }
 0x110   :  { %v429_v31 = vpop.eup %428  ;;  %v315_v34 = vmul.f32 %v307_v24, %v251_v23  ;;  %v308_v36 = vadd.f32 1.0, %v427_v25 }
 0x111   :  { %v431_v37 = vpop.eup %430  ;;  %v312_v38 = vmul.f32 %v304_v30, %v248_v27  ;;  %v305_v39 = vadd.f32 1.0, %v429_v31 }
 0x112   :  { %v316_v40 = vmul.f32 %v308_v36, %v252_v35  ;;  %v309_v41 = vadd.f32 1.0, %v431_v37  ;;  %v433_v42 = vpop.eup %432 }
 0x113   :  { %v373_v29 = vpack.c.bf16 %v312_v38, %v311_v26  ;;  %v435_v46 = vpop.eup %434  ;;  %v313_v32 = vmul.f32 %v305_v39, %v249_v28  ;;  %v306_v50 = vadd.f32 1.0, %v433_v42 }
 0x114   :  { %v375_v47 = vpack.c.bf16 %v316_v40, %v315_v34  ;;  %v317_v33 = vmul.f32 %v309_v41, %v253_v43  ;;  %v310_v53 = vadd.f32 1.0, %v435_v46 }
 0x115   :  { %343 = vst [vmem:[%s585_s3] sm:$0xff] %v373_v29  ;;  %v314_v44 = vmul.f32 %v306_v50, %v250_v49 }
 0x116   :  { %345 = vst [vmem:[%s585_s3 + $0x10] sm:$0xff] %v375_v47  ;;  %v318_v45 = vmul.f32 %v310_v53, %v254_v51 }
 0x117   :  { %v374_v54 = vpack.c.bf16 %v314_v44, %v313_v32 }
 0x118   :  { %v376_v55 = vpack.c.bf16 %v318_v45, %v317_v33 }
 0x119   :  { %344 = vst [vmem:[%s585_s3 + $0x8] sm:$0xff] %v374_v54 }
 0x11a   :  { %346 = vst [vmem:[%s585_s3 + $0x18] sm:$0xff] %v376_v55 }

// kernel: _lambda_.65
= control target key start
LH: loop header
LB: loop body
LE: loop exit
PB: predicated region body
PF: predicated region fallthrough
CT: control target
= control target key end

     0   :  { %v314_v1 = vmov 0   ;;  %v191_v18 = vlaneseq  ;;  %s395_s1 = inlined_call_operand.vmem [shape: bf16[128,256], index: 1, kind: input, shape index: {}]   ;;  %s396_s0 = inlined_call_operand.vmem [shape: bf16[16,128], index: 0, kind: input, shape index: {}]   ;;  %s397_s2 = inlined_call_operand.vmem [shape: f32[1,256], index: 2, kind: input, shape index: {}]   ;;  %s398_s3 = inlined_call_operand.vmem [shape: bf16[16,256], index: 3, kind: output, shape index: {}]  }
   0x1   :  { %v281_v0 = vld [vmem:[%s395_s1 + $0x4] ss:$8 sps:$4 sm:$0xff]   ;;  %163 = vmatprep.mubr.bf16.mxu0 %v314_v1  ;;  %v283_v2 = vld [vmem:[%s395_s1] ss:$8 sps:$4 sm:$0xff]   ;;  %v284_v3 = vld [vmem:[%s395_s1 + $0x14] ss:$8 sps:$4 sm:$0xff]  }
   0x2   :  { %131 = vmatprep.subr.bf16.mxu0 %v281_v0  ;;  %v286_v4 = vld [vmem:[%s395_s1 + $0x10] ss:$8 sps:$4 sm:$0xff]   ;;  %v287_v5 = vld [vmem:[%s395_s1 + $0x24] ss:$8 sps:$4 sm:$0xff]   ;;  %v289_v6 = vld [vmem:[%s395_s1 + $0x20] ss:$8 sps:$4 sm:$0xff]  }
   0x3   :  { %132 = vmatpush1.bf16.msra.mxu0 %v283_v2  ;;  %v290_v7 = vld [vmem:[%s395_s1 + $0x34] ss:$8 sps:$4 sm:$0xff]   ;;  %v292_v8 = vld [vmem:[%s395_s1 + $0x30] ss:$8 sps:$4 sm:$0xff]   ;;  %v293_v9 = vld [vmem:[%s395_s1 + $0x44] ss:$8 sps:$4 sm:$0xff]  }
   0x4   :  { %133 = vmatprep.subr.bf16.mxu0 %v284_v3  ;;  %v295_v10 = vld [vmem:[%s395_s1 + $0x40] ss:$8 sps:$4 sm:$0xff]   ;;  %v296_v11 = vld [vmem:[%s395_s1 + $0x54] ss:$8 sps:$4 sm:$0xff]   ;;  %v298_v12 = vld [vmem:[%s395_s1 + $0x50] ss:$8 sps:$4 sm:$0xff]  }
   0x5   :  { %v299_v13 = vld [vmem:[%s395_s1 + $0x64] ss:$8 sps:$4 sm:$0xff]   ;;  %v301_v14 = vld [vmem:[%s395_s1 + $0x60] ss:$8 sps:$4 sm:$0xff]   ;;  %v302_v15 = vld [vmem:[%s395_s1 + $0x74] ss:$8 sps:$4 sm:$0xff]  }
   0x6   :  { %v304_v16 = vld [vmem:[%s395_s1 + $0x70] ss:$8 sps:$4 sm:$0xff]   ;;  %v305_v17 = vld [vmem:[%s396_s0] sm:$0xff]   ;;  %v192_v19 = vshrl.u32 %v191_v18, 7 }
   0x7   :  { %134 = vmatpush1.bf16.msra.mxu0 %v286_v4  ;;  %v189_v21 = vld [vmem:[%s397_s2] sm:$0x3] }
   0x8   :  { %135 = vmatprep.subr.bf16.mxu0 %v287_v5  ;;  %v193_v20 = vsub.s32 0, %v192_v19  ;;  %v197_v22 = vsub.s32 1, %v192_v19 }
   0xa   :  { %v194_v23 = vrot.slane %v189_v21, %v193_v20  ;;  %v198_v24 = vrot.slane %v189_v21, %v197_v22 }
   0xb   :  { %136 = vmatpush1.bf16.msra.mxu0 %v289_v6 }
   0xc   :  { %137 = vmatprep.subr.bf16.mxu0 %v290_v7 }
   0xf   :  { %138 = vmatpush1.bf16.msra.mxu0 %v292_v8 }
  0x10   :  { %139 = vmatprep.subr.bf16.mxu0 %v293_v9 }
  0x13   :  { %140 = vmatpush1.bf16.msra.mxu0 %v295_v10 }
  0x14   :  { %141 = vmatprep.subr.bf16.mxu0 %v296_v11 }
  0x17   :  { %142 = vmatpush1.bf16.msra.mxu0 %v298_v12 }
  0x18   :  { %143 = vmatprep.subr.bf16.mxu0 %v299_v13 }
  0x1b   :  { %144 = vmatpush1.bf16.msra.mxu0 %v301_v14 }
  0x1c   :  { %145 = vmatprep.subr.bf16.mxu0 %v302_v15 }
  0x1f   :  { %146 = vmatpush1.bf16.msra.mxu0 %v304_v16 }
  0x22   :  { %164 = vmatmul.mubr.bf16.vlgmr.msra.gmra.mrb[0].mxu0 %v305_v17 }
  0xf5   :  { %v165_v25 = vpop.f32.mrb[0].mxu0 }
  0xf6   :  { %v201_v26 = vadd.f32 %v194_v23, %v165_v25  ;;  %v167_v27 = vpop.f32.mrb[1].mxu0 }
  0xf7   :  { %v202_v28 = vadd.f32 %v198_v24, %v167_v27  ;;  %v169_v29 = vpop.f32.mrb[2].mxu0 }
  0xf8   :  { %v209_v30 = vmul.f32 %v201_v26, %v201_v26  ;;  %v203_v31 = vadd.f32 %v194_v23, %v169_v29  ;;  %v171_v32 = vpop.f32.mrb[3].mxu0  ;;  %v205_v55 = vmul.f32 0.5, %v201_v26 }
  0xf9   :  { %v210_v33 = vmul.f32 %v202_v28, %v202_v28  ;;  %v204_v34 = vadd.f32 %v198_v24, %v171_v32  ;;  %v206_v58 = vmul.f32 0.5, %v202_v28 }
  0xfa   :  { %v213_v35 = vmul.f32 %v209_v30, %v201_v26  ;;  %v211_v36 = vmul.f32 %v203_v31, %v203_v31  ;;  %v207_v62 = vmul.f32 0.5, %v203_v31 }
  0xfb   :  { %v214_v37 = vmul.f32 %v210_v33, %v202_v28  ;;  %v212_v38 = vmul.f32 %v204_v34, %v204_v34  ;;  %v208_v1 = vmul.f32 0.5, %v204_v34 }
  0xfc   :  { %v217_v39 = vmul.f32 0.044715, %v213_v35  ;;  %v215_v40 = vmul.f32 %v211_v36, %v203_v31 }
  0xfd   :  { %v218_v41 = vmul.f32 0.044715, %v214_v37  ;;  %v216_v42 = vmul.f32 %v212_v38, %v204_v34 }
  0xfe   :  { %v221_v43 = vadd.f32 %v217_v39, %v201_v26  ;;  %v219_v44 = vmul.f32 0.044715, %v215_v40 }
  0xff   :  { %v222_v45 = vadd.f32 %v218_v41, %v202_v28  ;;  %v220_v46 = vmul.f32 0.044715, %v216_v42 }
 0x100   :  { %v225_v47 = vmul.f32 0.7978846, %v221_v43  ;;  %v223_v48 = vadd.f32 %v219_v44, %v203_v31 }
 0x101   :  { %v226_v49 = vmul.f32 0.7978846, %v222_v45  ;;  %v224_v50 = vadd.f32 %v220_v46, %v204_v34 }
 0x102   :  { %306 = vtanh.f32 %v225_v47  ;;  %v227_v51 = vmul.f32 0.7978846, %v223_v48 }
 0x103   :  { %308 = vtanh.f32 %v226_v49  ;;  %v228_v52 = vmul.f32 0.7978846, %v224_v50 }
 0x104   :  { %310 = vtanh.f32 %v227_v51 }
 0x105   :  { %312 = vtanh.f32 %v228_v52 }
 0x10c   :  { %v307_v53 = vpop.eup %306 }
 0x10d   :  { %v309_v54 = vpop.eup %308  ;;  %v233_v56 = vadd.f32 1.0, %v307_v53 }
 0x10e   :  { %v311_v57 = vpop.eup %310  ;;  %v234_v59 = vadd.f32 1.0, %v309_v54 }
 0x10f   :  { %v313_v60 = vpop.eup %312  ;;  %v237_v61 = vmul.f32 %v233_v56, %v205_v55  ;;  %v235_v63 = vadd.f32 1.0, %v311_v57 }
 0x110   :  { %v238_v0 = vmul.f32 %v234_v59, %v206_v58  ;;  %v236_v2 = vadd.f32 1.0, %v313_v60 }
 0x111   :  { %v239_v3 = vmul.f32 %v235_v63, %v207_v62 }
 0x112   :  { %v278_v4 = vpack.c.bf16 %v238_v0, %v237_v61  ;;  %v240_v5 = vmul.f32 %v236_v2, %v208_v1 }
 0x114   :  { %253 = vst [vmem:[%s398_s3] sm:$0xff] %v278_v4  ;;  %v279_v6 = vpack.c.bf16 %v240_v5, %v239_v3 }
 0x116   :  { %254 = vst [vmem:[%s398_s3 + $0x8] sm:$0xff] %v279_v6 }

// kernel: _lambda_.66
= control target key start
LH: loop header
LB: loop body
LE: loop exit
PB: predicated region body
PF: predicated region fallthrough
CT: control target
= control target key end

     0   :  { %s371_s1 = inlined_call_operand.vmem [shape: bf16[256,128], index: 1, kind: input, shape index: {}]   ;;  %s372_s0 = inlined_call_operand.vmem [shape: bf16[16,256], index: 0, kind: input, shape index: {}]   ;;  %s373_s2 = inlined_call_operand.vmem [shape: f32[1,128], index: 2, kind: input, shape index: {}]   ;;  %s374_s3 = inlined_call_operand.vmem [shape: f32[16,128], index: 3, kind: output, shape index: {}]  }
   0x1   :  { %v269_v0 = vld [vmem:[%s371_s1 + $0x40] sm:$0xff]   ;;  %v271_v2 = vld [vmem:[%s371_s1 + $0x48] sm:$0xff]   ;;  %v273_v4 = vld [vmem:[%s371_s1 + $0x50] sm:$0xff]  }
   0x2   :  { %v270_v1 = vld [vmem:[%s371_s1] sm:$0xff]   ;;  %247 = vmatprep.subr.bf16.mxu0 %v269_v0  ;;  %v272_v3 = vld [vmem:[%s371_s1 + $0x8] sm:$0xff]   ;;  %v274_v5 = vld [vmem:[%s371_s1 + $0x10] sm:$0xff]  }
   0x3   :  { %248 = vmatpush3.bf16.msra.mxu0 %v270_v1  ;;  %v275_v6 = vld [vmem:[%s371_s1 + $0x58] sm:$0xff]   ;;  %v277_v8 = vld [vmem:[%s371_s1 + $0x60] sm:$0xff]   ;;  %v279_v10 = vld [vmem:[%s371_s1 + $0x68] sm:$0xff]  }
   0x4   :  { %249 = vmatprep.subr.bf16.mxu0 %v271_v2  ;;  %v276_v7 = vld [vmem:[%s371_s1 + $0x18] sm:$0xff]   ;;  %v278_v9 = vld [vmem:[%s371_s1 + $0x20] sm:$0xff]   ;;  %v280_v12 = vld [vmem:[%s371_s1 + $0x28] sm:$0xff]  }
   0x5   :  { %v287_v11 = vld [vmem:[%s372_s0 + $0x4] ss:$8 sps:$4 sm:$0xff]   ;;  %v281_v13 = vld [vmem:[%s371_s1 + $0x70] sm:$0xff]   ;;  %v283_v15 = vld [vmem:[%s371_s1 + $0x78] sm:$0xff]  }
   0x6   :  { %195 = vmatprep.mubr.bf16.mxu0 %v287_v11  ;;  %v282_v14 = vld [vmem:[%s371_s1 + $0x30] sm:$0xff]   ;;  %v284_v16 = vld [vmem:[%s371_s1 + $0x38] sm:$0xff]   ;;  %v285_v17 = vld [vmem:[%s372_s0] ss:$8 sps:$4 sm:$0xff]  }
   0x7   :  { %250 = vmatpush3.bf16.msra.mxu0 %v272_v3  ;;  %v246_v20 = vld [vmem:[%s373_s2] ss:$0 sm:$0xff] }
   0x8   :  { %251 = vmatprep.subr.bf16.mxu0 %v273_v4 }
   0xb   :  { %252 = vmatpush3.bf16.msra.mxu0 %v274_v5 }
   0xc   :  { %253 = vmatprep.subr.bf16.mxu0 %v275_v6 }
   0xf   :  { %254 = vmatpush3.bf16.msra.mxu0 %v276_v7 }
  0x10   :  { %255 = vmatprep.subr.bf16.mxu0 %v277_v8 }
  0x13   :  { %256 = vmatpush3.bf16.msra.mxu0 %v278_v9 }
  0x14   :  { %257 = vmatprep.subr.bf16.mxu0 %v279_v10 }
  0x17   :  { %258 = vmatpush3.bf16.msra.mxu0 %v280_v12 }
  0x18   :  { %259 = vmatprep.subr.bf16.mxu0 %v281_v13 }
  0x1b   :  { %260 = vmatpush3.bf16.msra.mxu0 %v282_v14 }
  0x1c   :  { %261 = vmatprep.subr.bf16.mxu0 %v283_v15 }
  0x1f   :  { %262 = vmatpush3.bf16.msra.mxu0 %v284_v16 }
  0x22   :  { %196 = vmatmul.mubr.bf16.vlgmr.msra.gmra.mrb[0].mxu0 %v285_v17 }
  0xf5   :  { %v263_v18 = vpop.f32.mrb[0].mxu0 }
  0xf6   :  { %v264_v19 = vpop.f32.mrb[1].mxu0 }
  0xf7   :  { %v265_v21 = vadd.f32 %v264_v19, %v263_v18  ;;  %v266_v22 = vpop.f32.mrb[2].mxu0 }
  0xf8   :  { %v267_v23 = vpop.f32.mrb[3].mxu0 }
  0xf9   :  { %v220_v24 = vadd.f32 %v265_v21, %v246_v20  ;;  %v268_v25 = vadd.f32 %v267_v23, %v266_v22 }
  0xfb   :  { %222 = vst [vmem:[%s374_s3] sm:$0xff] %v220_v24  ;;  %v221_v26 = vadd.f32 %v268_v25, %v246_v20 }
  0xfd   :  { %223 = vst [vmem:[%s374_s3 + $0x8] sm:$0xff] %v221_v26 }

// kernel: _lambda_.82
= control target key start
LH: loop header
LB: loop body
LE: loop exit
PB: predicated region body
PF: predicated region fallthrough
CT: control target
= control target key end

     0   :  { %s496_s12 = smov 0   ;;  %s498_s13 = smov 0   ;;  %s553_s0 = inlined_call_operand.vmem [shape: f32[2,24,64], index: 0, kind: input, shape index: {}]   ;;  %s554_s1 = inlined_call_operand.vmem [shape: f32[2,1,64], index: 1, kind: input, shape index: {}]   ;;  %s555_s2 = inlined_call_operand.vmem [shape: f32[2,1,64], index: 2, kind: input, shape index: {}]   ;;  %s556_s3 = inlined_call_operand.vmem [shape: f32[2,24,64], index: 3, kind: output, shape index: {}]  }
   0x1   :  { %s500_s14 = smov 0  }
   0x2 LB: > { %s25_s15 = sadd.s32 1, %s470_s13  ;;  %p415_p0 = scmp.ge.s32.totalorder %s474_s14, 1  ;;  %s474_s14 = sphi %s500_s14, %s13_s14   ;;  %s470_s13 = sphi %s498_s13, %s558_s13   ;;  %s466_s12 = sphi %s496_s12, %s557_s12  }
   0x3   : > { %p27_p1 = scmp.ge.s32.totalorder %s25_s15, 2  ;;  %p174_p2 = scmp.lt.s32.totalorder %s474_s14, 3 }
   0x5   : > { %s560_s15 = smov (%p27_p1, %s25_s15), 0  ;;  %p175_p3 = pnand %p415_p0, %p174_p2 }
   0x6   : > { %p213_p4 = scmp.lt.s32.totalorder (!%p175_p3), %s466_s12, 1  ;;  %vm241_vm0 = vcmask (!%p175_p3), 523264   ;;  %v285_v23 = vlaneseq (!%p175_p3) }
   0x7   : > { %178 = sbr.rel (%p175_p3) target bundleno = 338 (0x152), region = 32 }
   0x8   : > { %v286_v29 = vshrl.u32 (!%p175_p3), %v285_v23, 7 }
   0xa   : > { %v287_v34 = vsub.s32 (!%p175_p3), 0, %v286_v29 }
   0xe   : > { %s562_s12 = smov (!%p213_p4, %s466_s12), 1 }
   0xf   : > { %s421_s16 = smul.u32 24, %s562_s12  ;;  %s224_s22 = scalar_lea.vmem %s554_s1, %s562_s12 }
  0x10   : > { %v282_v30 = vld [vmem:[%s224_s22] sm:$0x1]  ;;  %s227_s25 = scalar_lea.vmem %s555_s2, %s562_s12 }
  0x11   : > { %s220_s19 = scalar_lea.vmem %s553_s0, %s421_s16  ;;  %v283_v33 = vadd.f32 1.0, %v282_v30  ;;  %v418_v38 = vld [vmem:[%s227_s25] ss:$0 sm:$0xff]  ;;  %s236_s28 = scalar_lea.vmem %s556_s3, %s421_s16 }
  0x12   : > { %v238_v0 = vld [vmem:[%s220_s19] sm:$0xff]  ;;  %v240_v1 = vld [vmem:[%s220_s19 + $0x10] sm:$0xff]  ;;  %v239_v2 = vld [vmem:[%s220_s19 + $0x8] sm:$0xff] }
  0x13   : > { %v242_v3 = vsel %vm241_vm0, %v238_v0, 0.0  ;;  %v248_v4 = vsel %vm241_vm0, %v240_v1, 0.0  ;;  %v245_v5 = vsel %vm241_vm0, %v239_v2, 0.0  ;;  %v288_v35 = vrot.slane %v283_v33, %v287_v34 }
  0x14   : > { %243 = vadd.xlane.f32.xlu0 %v242_v3  ;;  %249 = vadd.xlane.f32.xlu1 %v248_v4 }
  0x18   : > { %246 = vadd.xlane.f32.xlu0 %v245_v5 }
  0xa1   : > { %v244_v6 = vpop.xlane.xlu0 %243  ;;  %v250_v7 = vpop.xlane.xlu1 %249 }
  0xa2   : > { %v252_v8 = vmul.f32 0.015625, %v244_v6  ;;  %v254_v9 = vmul.f32 0.015625, %v250_v7 }
  0xa4   : > { %v255_v10 = vsub.f32 %v238_v0, %v252_v8  ;;  %v257_v11 = vsub.f32 %v240_v1, %v254_v9 }
  0xa5   : > { %v247_v12 = vpop.xlane.xlu0 %246 }
  0xa6   : > { %v253_v13 = vmul.f32 0.015625, %v247_v12  ;;  %v258_v14 = vmul.f32 %v255_v10, %v255_v10  ;;  %v260_v15 = vmul.f32 %v257_v11, %v257_v11 }
  0xa8   : > { %v256_v16 = vsub.f32 %v239_v2, %v253_v13  ;;  %v261_v17 = vsel %vm241_vm0, %v258_v14, 0.0  ;;  %v267_v18 = vsel %vm241_vm0, %v260_v15, 0.0 }
  0xa9   : > { %262 = vadd.xlane.f32.xlu1 %v261_v17 }
  0xaa   : > { %v259_v19 = vmul.f32 %v256_v16, %v256_v16 }
  0xac   : > { %v264_v20 = vsel %vm241_vm0, %v259_v19, 0.0 }
  0xad   : > { %268 = vadd.xlane.f32.xlu1 %v267_v18  ;;  %265 = vadd.xlane.f32.xlu0 %v264_v20 }
 0x136   : > { %v263_v21 = vpop.xlane.xlu1 %262 }
 0x137   : > { %v270_v22 = vmul.f32 0.015625, %v263_v21 }
 0x139   : > { %v273_v24 = vadd.f32 1e-06, %v270_v22 }
 0x13a   : > { %v269_v25 = vpop.xlane.xlu1 %268  ;;  %v266_v26 = vpop.xlane.xlu0 %265 }
 0x13b   : > { %446 = vrsqrt.f32 %v273_v24  ;;  %v272_v27 = vmul.f32 0.015625, %v269_v25  ;;  %v271_v28 = vmul.f32 0.015625, %v266_v26 }
 0x13d   : > { %v275_v31 = vadd.f32 1e-06, %v272_v27  ;;  %v274_v32 = vadd.f32 1e-06, %v271_v28 }
 0x13f   : > { %448 = vrsqrt.f32 %v275_v31 }
 0x140   : > { %450 = vrsqrt.f32 %v274_v32 }
 0x145   : > { %v447_v36 = vpop.eup %446 }
 0x146   : > { %v279_v37 = vmul.f32 %v447_v36, %v255_v10 }
 0x148   : > { %v290_v39 = vmul.f32 %v288_v35, %v279_v37 }
 0x149   : > { %v449_v40 = vpop.eup %448 }
 0x14a   : > { %v451_v41 = vpop.eup %450  ;;  %v300_v42 = vadd.f32 %v418_v38, %v290_v39  ;;  %v281_v43 = vmul.f32 %v449_v40, %v257_v11 }
 0x14b   : > { %v280_v44 = vmul.f32 %v451_v41, %v256_v16 }
 0x14c   : > { %303 = vst.msk [vmem:[%s236_s28] sm:$0xff] %vm241_vm0, %v300_v42  ;;  %v292_v45 = vmul.f32 %v288_v35, %v281_v43 }
 0x14d   : > { %v291_v46 = vmul.f32 %v288_v35, %v280_v44 }
 0x14e   : > { %v302_v47 = vadd.f32 %v418_v38, %v292_v45 }
 0x14f   : > { %v301_v48 = vadd.f32 %v418_v38, %v291_v46 }
 0x150   : > { %305 = vst.msk [vmem:[%s236_s28 + $0x10] sm:$0xff] %vm241_vm0, %v302_v47 }
 0x151   : > { %304 = vst.msk [vmem:[%s236_s28 + $0x8] sm:$0xff] %vm241_vm0, %v301_v48 }
 0x152 PF: > { %s13_s14 = sadd.s32 1, %s474_s14   ;;  %s557_s12 = smov %s470_s13 }
 0x153   : > { %p10_p5 = scmp.ge.s32.totalorder %s13_s14, 4   ;;  %s558_s13 = smov %s560_s15 }
 0x155   :  { %12 = sbr.rel (!%p10_p5) target bundleno = 2 (0x2), region = 68 }

// kernel: _lambda_.81
= control target key start
LH: loop header
LB: loop body
LE: loop exit
PB: predicated region body
PF: predicated region fallthrough
CT: control target
= control target key end

     0   :  { %v245_v1 = vmov 0   ;;  %v181_v25 = vlaneseq  ;;  %s326_s1 = inlined_call_operand.vmem [shape: bf16[128,256], index: 1, kind: input, shape index: {}]   ;;  %s327_s0 = inlined_call_operand.vmem [shape: bf16[8,128], index: 0, kind: input, shape index: {}]   ;;  %s328_s2 = inlined_call_operand.vmem [shape: f32[1,256], index: 2, kind: input, shape index: {}]   ;;  %s329_s3 = inlined_call_operand.vmem [shape: f32[8,256], index: 3, kind: output, shape index: {}]  }
   0x1   :  { %v217_v0 = vld [vmem:[%s326_s1 + $0x4] ss:$8 sps:$4 sm:$0xff]   ;;  %161 = vmatprep.mubr.bf16.mxu0 %v245_v1  ;;  %v219_v2 = vld [vmem:[%s326_s1] ss:$8 sps:$4 sm:$0xff]   ;;  %v220_v3 = vld [vmem:[%s326_s1 + $0x14] ss:$8 sps:$4 sm:$0xff]  }
   0x2   :  { %129 = vmatprep.subr.bf16.mxu0 %v217_v0  ;;  %v222_v4 = vld [vmem:[%s326_s1 + $0x10] ss:$8 sps:$4 sm:$0xff]   ;;  %v223_v5 = vld [vmem:[%s326_s1 + $0x24] ss:$8 sps:$4 sm:$0xff]   ;;  %v225_v6 = vld [vmem:[%s326_s1 + $0x20] ss:$8 sps:$4 sm:$0xff]  }
   0x3   :  { %130 = vmatpush1.bf16.msra.mxu0 %v219_v2  ;;  %v226_v7 = vld [vmem:[%s326_s1 + $0x34] ss:$8 sps:$4 sm:$0xff]   ;;  %v21_v8 = vld [vmem:[%s327_s0] sm:$0xf]  ;;  %v228_v9 = vld [vmem:[%s326_s1 + $0x30] ss:$8 sps:$4 sm:$0xff]  }
   0x4   :  { %131 = vmatprep.subr.bf16.mxu0 %v220_v3  ;;  %v22_v10 = vunpack.c.l.bf16 %v21_v8  ;;  %v229_v11 = vld [vmem:[%s326_s1 + $0x44] ss:$8 sps:$4 sm:$0xff]   ;;  %v231_v13 = vld [vmem:[%s326_s1 + $0x40] ss:$8 sps:$4 sm:$0xff]   ;;  %v232_v14 = vld [vmem:[%s326_s1 + $0x54] ss:$8 sps:$4 sm:$0xff]  }
   0x5   :  { %v234_v15 = vld [vmem:[%s326_s1 + $0x50] ss:$8 sps:$4 sm:$0xff]   ;;  %v235_v16 = vld [vmem:[%s326_s1 + $0x64] ss:$8 sps:$4 sm:$0xff]   ;;  %v237_v17 = vld [vmem:[%s326_s1 + $0x60] ss:$8 sps:$4 sm:$0xff]  }
   0x6   :  { %v199_v12 = vmul.f32 -1.442695, %v22_v10  ;;  %v238_v18 = vld [vmem:[%s326_s1 + $0x74] ss:$8 sps:$4 sm:$0xff]   ;;  %v240_v21 = vld [vmem:[%s326_s1 + $0x70] ss:$8 sps:$4 sm:$0xff]  }
   0x7   :  { %132 = vmatpush1.bf16.msra.mxu0 %v222_v4  ;;  %v182_v26 = vshrl.u32 %v181_v25, 7  ;;  %v179_v28 = vld [vmem:[%s328_s2] sm:$0x3] }
   0x8   :  { %133 = vmatprep.subr.bf16.mxu0 %v223_v5  ;;  %241 = vpow2.f32 %v199_v12 }
   0x9   :  { %v183_v27 = vsub.s32 0, %v182_v26  ;;  %v187_v29 = vsub.s32 1, %v182_v26 }
   0xb   :  { %134 = vmatpush1.bf16.msra.mxu0 %v225_v6  ;;  %v184_v30 = vrot.slane %v179_v28, %v183_v27  ;;  %v188_v31 = vrot.slane %v179_v28, %v187_v29 }
   0xc   :  { %135 = vmatprep.subr.bf16.mxu0 %v226_v7 }
   0xf   :  { %136 = vmatpush1.bf16.msra.mxu0 %v228_v9 }
  0x10   :  { %137 = vmatprep.subr.bf16.mxu0 %v229_v11 }
  0x12   :  { %v242_v19 = vpop.eup %241 }
  0x13   :  { %138 = vmatpush1.bf16.msra.mxu0 %v231_v13  ;;  %v26_v20 = vadd.f32 1.0, %v242_v19 }
  0x14   :  { %139 = vmatprep.subr.bf16.mxu0 %v232_v14 }
  0x15   :  { %243 = vrcp.f32 %v26_v20 }
  0x17   :  { %140 = vmatpush1.bf16.msra.mxu0 %v234_v15 }
  0x18   :  { %141 = vmatprep.subr.bf16.mxu0 %v235_v16 }
  0x1b   :  { %142 = vmatpush1.bf16.msra.mxu0 %v237_v17 }
  0x1c   :  { %143 = vmatprep.subr.bf16.mxu0 %v238_v18 }
  0x1f   :  { %144 = vmatpush1.bf16.msra.mxu0 %v240_v21  ;;  %v244_v22 = vpop.eup %243 }
  0x20   :  { %v29_v23 = vmul.f32 %v244_v22, %v22_v10 }
  0x22   :  { %v30_v24 = vpack.c.bf16 %v29_v23, %v29_v23 }
  0x24   :  { %162 = vmatmul.mubr.bf16.vlgmr.msra.gmra.mrb[0].mxu0 %v30_v24 }
  0xf7   :  { %v163_v32 = vpop.f32.mrb[0].mxu0 }
  0xf8   :  { %v191_v33 = vadd.f32 %v184_v30, %v163_v32  ;;  %v165_v34 = vpop.f32.mrb[1].mxu0 }
  0xf9   :  { %v192_v35 = vadd.f32 %v188_v31, %v165_v34  ;;  %v167_v36 = vpop.f32.mrb[2].mxu0 }
  0xfa   :  { %193 = vst [vmem:[%s329_s3] sm:$0xff] %v191_v33  ;;  %v168_v37 = vpop.f32.mrb[3].mxu0 }
  0xfb   :  { %194 = vst [vmem:[%s329_s3 + $0x8] sm:$0xff] %v192_v35 }

// kernel: _lambda_.83
= control target key start
LH: loop header
LB: loop body
LE: loop exit
PB: predicated region body
PF: predicated region fallthrough
CT: control target
= control target key end

     0   :  { %s964_s12 = smov 0   ;;  %s966_s13 = smov 0   ;;  %s1115_s0 = inlined_call_operand.vmem [shape: bf16[48,128], index: 0, kind: input, shape index: {}]   ;;  %s1116_s1 = inlined_call_operand.vmem [shape: bf16[128,512], index: 1, kind: input, shape index: {}]   ;;  %s1117_s2 = inlined_call_operand.vmem [shape: f32[1,512], index: 2, kind: input, shape index: {}]   ;;  %s1118_s3 = inlined_call_operand.vmem [shape: f32[48,512], index: 3, kind: output, shape index: {}]  }
   0x1   :  { %s968_s14 = smov 0   ;;  %s970_s15 = smov 0  }
   0x2   :  { %s972_s16 = smov 0  }
   0x3 LB: > { %s28_s17 = sadd.s32 1, %s937_s15  ;;  %s782_s18 = sadd.s32 4294967295, %s941_s16   ;;  %s941_s16 = sphi %s972_s16, %s13_s16   ;;  %s937_s15 = sphi %s970_s15, %s1123_s15   ;;  %s933_s14 = sphi %s968_s14, %s1122_s14   ;;  %s929_s13 = sphi %s966_s13, %s1121_s13   ;;  %s925_s12 = sphi %s964_s12, %s1120_s12  }
   0x4   : > { %p30_p0 = scmp.ge.s32.totalorder %s28_s17, 2  ;;  %p76_p1 = scmp.ne.s32.totalorder %s929_s13, %s925_s12 }
   0x5   : > { %p77_p2 = scmp.eq.s32.totalorder %s941_s16, 0  ;;  %p134_p4 = scmp.eq.s32.totalorder %s782_s18, 1 }
   0x6   : > { %s1125_s17 = smov (%p30_p0, %s28_s17), 0  ;;  %s69_s20 = sadd.s32 1, %s929_s13 }
   0x7   : > { %p78_p3 = por %p77_p2, %p76_p1  ;;  %s65_s19 = ssub.s32 %s937_s15, %s1125_s17 }
   0x8   : > { %p67_p5 = scmp.eq.s32.totalorder %s65_s19, 0  ;;  %p999_p6 = por %p134_p4, %p76_p1 }
   0x9   : > { %p786_p7 = scmp.ge.s32.totalorder %s941_s16, 2 }
   0xa   : > { %s1004_s22 = scalar_select %p67_p5, %s929_s13, %s69_s20  }
   0xb   : > { %168 = sbr.rel (%p786_p7) target bundleno = 30 (0x1e), region = 20 }
  0x12   : > { %171 = sbr.rel (!%p78_p3) target bundleno = 30 (0x1e), region = 24  ;;  %s173_s23 = sand.u32 (%p78_p3), 1, %s929_s13  }
  0x13   : > { %s816_s24 = sshll.u32 (%p78_p3), %s937_s15, 3  ;;  %s787_s25 = sshll.u32 (%p78_p3), %s173_s23, 7 }
  0x14   : > { %s1012_s28 = scalar_lea.vmem (%p78_p3), %s1116_s1, %s816_s24  ;;  %s175_s29 = scalar_lea.vmem (%p78_p3), [#allocation3], %s787_s25 }
  0x15   : > { %v239_v0 = vld [vmem:[%s1012_s28] sm:$0xff] (%p78_p3)  ;;  %v241_v1 = vld [vmem:[%s1012_s28 + $0x10] sm:$0xff] (%p78_p3) }
  0x16   : > { %v243_v2 = vld [vmem:[%s1012_s28 + $0x20] sm:$0xff] (%p78_p3)  ;;  %240 = vst [vmem:[%s175_s29] sm:$0xff] (%p78_p3), %v239_v0  ;;  %242 = vst [vmem:[%s175_s29 + $0x8] sm:$0xff] (%p78_p3), %v241_v1  ;;  %v245_v3 = vld [vmem:[%s1012_s28 + $0x30] sm:$0xff] (%p78_p3) }
  0x17   : > { %244 = vst [vmem:[%s175_s29 + $0x10] sm:$0xff] (%p78_p3), %v243_v2  ;;  %v247_v4 = vld [vmem:[%s1012_s28 + $0x40] sm:$0xff] (%p78_p3)  ;;  %v249_v5 = vld [vmem:[%s1012_s28 + $0x50] sm:$0xff] (%p78_p3)  ;;  %246 = vst [vmem:[%s175_s29 + $0x18] sm:$0xff] (%p78_p3), %v245_v3 }
  0x18   : > { %248 = vst [vmem:[%s175_s29 + $0x20] sm:$0xff] (%p78_p3), %v247_v4  ;;  %250 = vst [vmem:[%s175_s29 + $0x28] sm:$0xff] (%p78_p3), %v249_v5  ;;  %v251_v6 = vld [vmem:[%s1012_s28 + $0x60] sm:$0xff] (%p78_p3)  ;;  %v253_v7 = vld [vmem:[%s1012_s28 + $0x70] sm:$0xff] (%p78_p3) }
  0x19   : > { %v255_v8 = vld [vmem:[%s1012_s28 + $0x80] sm:$0xff]  ;;  %252 = vst [vmem:[%s175_s29 + $0x30] sm:$0xff] %v251_v6  ;;  %254 = vst [vmem:[%s175_s29 + $0x38] sm:$0xff] %v253_v7  ;;  %v257_v9 = vld [vmem:[%s1012_s28 + $0x90] sm:$0xff] }
  0x1a   : > { %256 = vst [vmem:[%s175_s29 + $0x40] sm:$0xff] %v255_v8  ;;  %v259_v10 = vld [vmem:[%s1012_s28 + $0xa0] sm:$0xff]  ;;  %v261_v11 = vld [vmem:[%s1012_s28 + $0xb0] sm:$0xff]  ;;  %258 = vst [vmem:[%s175_s29 + $0x48] sm:$0xff] %v257_v9 }
  0x1b   : > { %260 = vst [vmem:[%s175_s29 + $0x50] sm:$0xff] %v259_v10  ;;  %262 = vst [vmem:[%s175_s29 + $0x58] sm:$0xff] %v261_v11  ;;  %v263_v12 = vld [vmem:[%s1012_s28 + $0xc0] sm:$0xff]  ;;  %v265_v13 = vld [vmem:[%s1012_s28 + $0xd0] sm:$0xff] }
  0x1c   : > { %v267_v14 = vld [vmem:[%s1012_s28 + $0xe0] sm:$0xff]  ;;  %264 = vst [vmem:[%s175_s29 + $0x60] sm:$0xff] %v263_v12  ;;  %266 = vst [vmem:[%s175_s29 + $0x68] sm:$0xff] %v265_v13  ;;  %v269_v15 = vld [vmem:[%s1012_s28 + $0xf0] sm:$0xff] }
  0x1d   : > { %268 = vst [vmem:[%s175_s29 + $0x70] sm:$0xff] %v267_v14  ;;  %270 = vst [vmem:[%s175_s29 + $0x78] sm:$0xff] %v269_v15 }
  0x1e PF: > { %p790_p8 = scmp.ge.s32.totalorder %s941_s16, 1  ;;  %p283_p9 = scmp.lt.s32.totalorder %s941_s16, 3 }
  0x20   : > { %p284_p10 = pnand %p790_p8, %p283_p9 }
  0x21   : > { %s290_s30 = sand.u32 (!%p284_p10), 1, %s925_s12   ;;  %v943_v16 = vmov (!%p284_p10), 0   ;;  %v900_v33 = vld [vmem:[%s1115_s0 + $0x8] sm:$0xff] (!%p284_p10)   ;;  %v901_v34 = vld [vmem:[%s1115_s0] sm:$0xff] (!%p284_p10)   ;;  %v902_v35 = vld [vmem:[%s1115_s0 + $0x10] sm:$0xff] (!%p284_p10)   ;;  %s792_s18 = sshll.u32 (!%p284_p10), %s933_s14, 1  ;;  %v595_v36 = vlaneseq (!%p284_p10) }
  0x22   : > { %287 = sbr.rel (%p284_p10) target bundleno = 303 (0x12f), region = 66  ;;  %s791_s4 = sshll.u32 (!%p284_p10), %s290_s30, 7  ;;  %533 = vmatprep.mubr.bf16.mxu1 (!%p284_p10), %v943_v16  ;;  %523 = vmatprep.mubr.bf16.mxu0 (!%p284_p10), %v943_v16 }
  0x23   : > { %s1035_s5 = scalar_lea.vmem (!%p284_p10), [#allocation3], %s791_s4  ;;  %p336_p11 = scmp.lt.s32.totalorder (!%p284_p10), %s792_s18, 3  ;;  %v596_v37 = vshrl.u32 (!%p284_p10), %v595_v36, 7 }
  0x24   : > { %v876_v17 = vld [vmem:[%s1035_s5 + $0x4] ss:$8 sps:$4 sm:$0xff] (!%p284_p10)   ;;  %v878_v18 = vld [vmem:[%s1035_s5] ss:$8 sps:$4 sm:$0xff] (!%p284_p10)   ;;  %v879_v19 = vld [vmem:[%s1035_s5 + $0x14] ss:$8 sps:$4 sm:$0xff] (!%p284_p10)  }
  0x25   : > { %818 = vmatprep.subr.bf16.mxu1 (!%p284_p10), %v876_v17  ;;  %491 = vmatprep.subr.bf16.mxu0 (!%p284_p10), %v876_v17  ;;  %v881_v20 = vld [vmem:[%s1035_s5 + $0x10] ss:$8 sps:$4 sm:$0xff] (!%p284_p10)   ;;  %v882_v21 = vld [vmem:[%s1035_s5 + $0x24] ss:$8 sps:$4 sm:$0xff] (!%p284_p10)   ;;  %v884_v22 = vld [vmem:[%s1035_s5 + $0x20] ss:$8 sps:$4 sm:$0xff] (!%p284_p10)  }
  0x26   : > { %826 = vmatpush1.bf16.msra.mxu1 (!%p284_p10), %v878_v18  ;;  %492 = vmatpush1.bf16.msra.mxu0 (!%p284_p10), %v878_v18  ;;  %v885_v23 = vld [vmem:[%s1035_s5 + $0x34] ss:$8 sps:$4 sm:$0xff] (!%p284_p10)   ;;  %v887_v24 = vld [vmem:[%s1035_s5 + $0x30] ss:$8 sps:$4 sm:$0xff] (!%p284_p10)   ;;  %v888_v25 = vld [vmem:[%s1035_s5 + $0x44] ss:$8 sps:$4 sm:$0xff] (!%p284_p10)  }
  0x27   : > { %819 = vmatprep.subr.bf16.mxu1 (!%p284_p10), %v879_v19  ;;  %493 = vmatprep.subr.bf16.mxu0 (!%p284_p10), %v879_v19  ;;  %v890_v26 = vld [vmem:[%s1035_s5 + $0x40] ss:$8 sps:$4 sm:$0xff] (!%p284_p10)   ;;  %v891_v27 = vld [vmem:[%s1035_s5 + $0x54] ss:$8 sps:$4 sm:$0xff] (!%p284_p10)   ;;  %v893_v28 = vld [vmem:[%s1035_s5 + $0x50] ss:$8 sps:$4 sm:$0xff] (!%p284_p10)  }
  0x28   : > { %v894_v29 = vld [vmem:[%s1035_s5 + $0x64] ss:$8 sps:$4 sm:$0xff] (!%p284_p10)   ;;  %v896_v30 = vld [vmem:[%s1035_s5 + $0x60] ss:$8 sps:$4 sm:$0xff] (!%p284_p10)   ;;  %v897_v31 = vld [vmem:[%s1035_s5 + $0x74] ss:$8 sps:$4 sm:$0xff] (!%p284_p10)  }
  0x29   : > { %v899_v32 = vld [vmem:[%s1035_s5 + $0x70] ss:$8 sps:$4 sm:$0xff]   ;;  %s1127_s18 = smov (!%p336_p11, %s792_s18), 3  ;;  %v597_v38 = vsub.s32 0, %v596_v37  ;;  %v601_v40 = vsub.s32 1, %v596_v37  ;;  %s834_s24 = smul.u32 96, %s290_s30 }
  0x2a   : > { %827 = vmatpush1.bf16.msra.mxu1 %v881_v20  ;;  %494 = vmatpush1.bf16.msra.mxu0 %v881_v20  ;;  %s338_s23 = scalar_lea.vmem %s1117_s2, %s1127_s18  ;;  %s817_s12 = sshll.u32 (%p999_p6), %s933_s14, 4 }
  0x2b   : > { %820 = vmatprep.subr.bf16.mxu1 %v882_v21  ;;  %495 = vmatprep.subr.bf16.mxu0 %v882_v21  ;;  %v593_v39 = vld [vmem:[%s338_s23] sm:$0x3]  ;;  %s1068_s25 = scalar_lea.vmem [#allocation4], %s834_s24  ;;  %s641_s28 = scalar_lea.vmem (%p999_p6), %s1118_s3, %s817_s12 }
  0x2c   : > { %v598_v41 = vrot.slane %v593_v39, %v597_v38  ;;  %v602_v42 = vrot.slane %v593_v39, %v601_v40 }
  0x2e   : > { %828 = vmatpush1.bf16.msra.mxu1 %v884_v22  ;;  %496 = vmatpush1.bf16.msra.mxu0 %v884_v22 }
  0x2f   : > { %821 = vmatprep.subr.bf16.mxu1 %v885_v23  ;;  %497 = vmatprep.subr.bf16.mxu0 %v885_v23 }
  0x32   : > { %829 = vmatpush1.bf16.msra.mxu1 %v887_v24  ;;  %498 = vmatpush1.bf16.msra.mxu0 %v887_v24 }
  0x33   : > { %822 = vmatprep.subr.bf16.mxu1 %v888_v25  ;;  %499 = vmatprep.subr.bf16.mxu0 %v888_v25 }
  0x36   : > { %830 = vmatpush1.bf16.msra.mxu1 %v890_v26  ;;  %500 = vmatpush1.bf16.msra.mxu0 %v890_v26 }
  0x37   : > { %823 = vmatprep.subr.bf16.mxu1 %v891_v27  ;;  %501 = vmatprep.subr.bf16.mxu0 %v891_v27 }
  0x3a   : > { %831 = vmatpush1.bf16.msra.mxu1 %v893_v28  ;;  %502 = vmatpush1.bf16.msra.mxu0 %v893_v28 }
  0x3b   : > { %824 = vmatprep.subr.bf16.mxu1 %v894_v29  ;;  %503 = vmatprep.subr.bf16.mxu0 %v894_v29 }
  0x3e   : > { %832 = vmatpush1.bf16.msra.mxu1 %v896_v30  ;;  %504 = vmatpush1.bf16.msra.mxu0 %v896_v30 }
  0x3f   : > { %825 = vmatprep.subr.bf16.mxu1 %v897_v31  ;;  %505 = vmatprep.subr.bf16.mxu0 %v897_v31 }
  0x42   : > { %833 = vmatpush1.bf16.msra.mxu1 %v899_v32  ;;  %506 = vmatpush1.bf16.msra.mxu0 %v899_v32 }
  0x45   : > { %534 = vmatmul.mubr.bf16.vlgmr.msra.gmra.mrb[0].mxu1 %v900_v33  ;;  %524 = vmatmul.mubr.bf16.vlgmr.msra.gmra.mrb[0].mxu0 %v901_v34 }
  0x46   : > { %543 = vmatprep.mubr.bf16.mxu1 %v943_v16 }
  0x4d   : > { %544 = vmatmul.mubr.bf16.gmra.mrb[4].mxu1 %v902_v35 }
 0x118   : > { %v535_v43 = vpop.f32.mrb[0].mxu1  ;;  %v525_v44 = vpop.f32.mrb[0].mxu0 }
 0x119   : > { %v609_v45 = vadd.f32 %v598_v41, %v535_v43  ;;  %v537_v46 = vpop.f32.mrb[1].mxu1  ;;  %v605_v47 = vadd.f32 %v598_v41, %v525_v44  ;;  %v527_v48 = vpop.f32.mrb[1].mxu0 }
 0x11a   : > { %v610_v49 = vadd.f32 %v602_v42, %v537_v46  ;;  %v539_v50 = vpop.f32.mrb[2].mxu1  ;;  %v606_v51 = vadd.f32 %v602_v42, %v527_v48  ;;  %v529_v52 = vpop.f32.mrb[2].mxu0 }
 0x11b   : > { %621 = vst [vmem:[%s1068_s25 + $0x20] sm:$0xff] %v609_v45  ;;  %v611_v53 = vadd.f32 %v598_v41, %v539_v50  ;;  %v541_v54 = vpop.f32.mrb[3].mxu1  ;;  %617 = vst [vmem:[%s1068_s25] sm:$0xff] %v605_v47  ;;  %v607_v55 = vadd.f32 %v598_v41, %v529_v52  ;;  %v531_v56 = vpop.f32.mrb[3].mxu0 }
 0x11c   : > { %622 = vst [vmem:[%s1068_s25 + $0x28] sm:$0xff] %v610_v49  ;;  %v612_v57 = vadd.f32 %v602_v42, %v541_v54  ;;  %618 = vst [vmem:[%s1068_s25 + $0x8] sm:$0xff] %v606_v51  ;;  %v608_v58 = vadd.f32 %v602_v42, %v531_v56 }
 0x11d   : > { %623 = vst [vmem:[%s1068_s25 + $0x30] sm:$0xff] %v611_v53  ;;  %619 = vst [vmem:[%s1068_s25 + $0x10] sm:$0xff] %v607_v55 }
 0x11e   : > { %624 = vst [vmem:[%s1068_s25 + $0x38] sm:$0xff] %v612_v57  ;;  %620 = vst [vmem:[%s1068_s25 + $0x18] sm:$0xff] %v608_v58 }
 0x120   : > { %v545_v59 = vpop.f32.mrb[4].mxu1  ;;  %635 = sbr.rel (!%p999_p6) target bundleno = 303 (0x12f), region = 82 }
 0x121   : > { %v613_v60 = vadd.f32 %v598_v41, %v545_v59  ;;  %v547_v61 = vpop.f32.mrb[5].mxu1 }
 0x122   : > { %v614_v62 = vadd.f32 %v602_v42, %v547_v61  ;;  %v549_v63 = vpop.f32.mrb[6].mxu1  ;;  %v654_v3 = vld [vmem:[%s1068_s25] sm:$0xff] (%p999_p6) }
 0x123   : > { %625 = vst [vmem:[%s1068_s25 + $0x40] sm:$0xff] %v613_v60  ;;  %v615_v0 = vadd.f32 %v598_v41, %v549_v63  ;;  %v551_v1 = vpop.f32.mrb[7].mxu1  ;;  %v656_v4 = vld [vmem:[%s1068_s25 + $0x8] sm:$0xff] (%p999_p6)  ;;  %v662_v7 = vld [vmem:[%s1068_s25 + $0x20] sm:$0xff] (%p999_p6)  ;;  %655 = vst [vmem:[%s641_s28] sm:$0xff] (%p999_p6), %v654_v3 }
 0x124   : > { %626 = vst [vmem:[%s1068_s25 + $0x48] sm:$0xff] %v614_v62  ;;  %v616_v2 = vadd.f32 %v602_v42, %v551_v1  ;;  %v658_v5 = vld [vmem:[%s1068_s25 + $0x10] sm:$0xff] (%p999_p6)  ;;  %v664_v8 = vld [vmem:[%s1068_s25 + $0x28] sm:$0xff] (%p999_p6)  ;;  %657 = vst [vmem:[%s641_s28 + $0x8] sm:$0xff] (%p999_p6), %v656_v4 }
 0x125   : > { %627 = vst [vmem:[%s1068_s25 + $0x50] sm:$0xff] %v615_v0  ;;  %v660_v6 = vld [vmem:[%s1068_s25 + $0x18] sm:$0xff] (%p999_p6)  ;;  %659 = vst [vmem:[%s641_s28 + $0x20] sm:$0xff] (%p999_p6), %v658_v5  ;;  %v666_v9 = vld [vmem:[%s1068_s25 + $0x30] sm:$0xff] (%p999_p6) }
 0x126   : > { %628 = vst [vmem:[%s1068_s25 + $0x58] sm:$0xff] %v616_v2  ;;  %661 = vst [vmem:[%s641_s28 + $0x28] sm:$0xff] (%p999_p6), %v660_v6  ;;  %v668_v10 = vld [vmem:[%s1068_s25 + $0x38] sm:$0xff] (%p999_p6) }
 0x127   : > { %663 = vst [vmem:[%s641_s28 + $0x40] sm:$0xff] %v662_v7  ;;  %665 = vst [vmem:[%s641_s28 + $0x48] sm:$0xff] %v664_v8 }
 0x128   : > { %667 = vst [vmem:[%s641_s28 + $0x60] sm:$0xff] %v666_v9  ;;  %669 = vst [vmem:[%s641_s28 + $0x68] sm:$0xff] %v668_v10 }
 0x12a   : > { %v670_v11 = vld [vmem:[%s1068_s25 + $0x40] sm:$0xff] }
 0x12b   : > { %671 = vst [vmem:[%s641_s28 + $0x80] sm:$0xff] %v670_v11  ;;  %v672_v12 = vld [vmem:[%s1068_s25 + $0x48] sm:$0xff] }
 0x12c   : > { %v674_v13 = vld [vmem:[%s1068_s25 + $0x50] sm:$0xff]  ;;  %673 = vst [vmem:[%s641_s28 + $0x88] sm:$0xff] %v672_v12 }
 0x12d   : > { %v676_v14 = vld [vmem:[%s1068_s25 + $0x58] sm:$0xff]  ;;  %675 = vst [vmem:[%s641_s28 + $0xa0] sm:$0xff] %v674_v13 }
 0x12e   : > { %677 = vst [vmem:[%s641_s28 + $0xa8] sm:$0xff] %v676_v14 }
 0x12f PF: > { %s13_s16 = sadd.s32 1, %s941_s16   ;;  %s1120_s12 = smov %s929_s13 }
 0x130   : > { %p10_p12 = scmp.ge.s32.totalorder %s13_s16, 4   ;;  %s1121_s13 = smov %s1004_s22 }
 0x131   : > { %s1122_s14 = smov %s937_s15  ;;  %s1123_s15 = smov %s1125_s17 }
 0x132   :  { %12 = sbr.rel (!%p10_p12) target bundleno = 3 (0x3), region = 142 }

// kernel: _lambda_.85
= control target key start
LH: loop header
LB: loop body
LE: loop exit
PB: predicated region body
PF: predicated region fallthrough
CT: control target
= control target key end

     0   :  { %v586_v1 = vmov 0.0   ;;  %vm587_vm0 = vmmov 0   ;;  %s742_s1 = inlined_call_operand.vmem [shape: bf16[384,128], index: 1, kind: input, shape index: {}]   ;;  %s743_s0 = inlined_call_operand.vmem [shape: bf16[48,384], index: 0, kind: input, shape index: {}]   ;;  %s744_s2 = inlined_call_operand.vmem [shape: f32[1,128], index: 2, kind: input, shape index: {}]   ;;  %s745_s3 = inlined_call_operand.vmem [shape: f32[48,128], index: 3, kind: output, shape index: {}]  }
   0x1   :  { %v550_v0 = vld [vmem:[%s742_s1 + $0x40] sm:$0xff]   ;;  %520 = vmatprep.subr.bf16.mxu1 %v586_v1  ;;  %536 = vmatprep.mubr.msk.bf16.mxu1 %vm587_vm0, %v586_v1  ;;  %v553_v4 = vld [vmem:[%s742_s1 + $0x48] sm:$0xff]   ;;  %v556_v7 = vld [vmem:[%s742_s1 + $0x50] sm:$0xff]  }
   0x2   :  { %v551_v2 = vld [vmem:[%s742_s1] sm:$0xff]   ;;  %475 = vmatprep.subr.bf16.mxu0 %v550_v0  ;;  %v554_v5 = vld [vmem:[%s742_s1 + $0x8] sm:$0xff]   ;;  %v557_v8 = vld [vmem:[%s742_s1 + $0x10] sm:$0xff]  }
   0x3   :  { %v552_v3 = vld [vmem:[%s742_s1 + $0x80] sm:$0xff]   ;;  %476 = vmatpush3.bf16.msra.mxu0 %v551_v2  ;;  %v555_v6 = vld [vmem:[%s742_s1 + $0x88] sm:$0xff]   ;;  %v558_v9 = vld [vmem:[%s742_s1 + $0x90] sm:$0xff]  }
   0x4   :  { %521 = vmatpush3.bf16.msra.mxu1 %v552_v3  ;;  %477 = vmatprep.subr.bf16.mxu0 %v553_v4  ;;  %v559_v10 = vld [vmem:[%s742_s1 + $0x58] sm:$0xff]   ;;  %v562_v13 = vld [vmem:[%s742_s1 + $0x60] sm:$0xff]   ;;  %v565_v16 = vld [vmem:[%s742_s1 + $0x68] sm:$0xff]  }
   0x5   :  { %522 = vmatprep.subr.bf16.mxu1 %v586_v1  ;;  %v560_v11 = vld [vmem:[%s742_s1 + $0x18] sm:$0xff]   ;;  %v563_v14 = vld [vmem:[%s742_s1 + $0x20] sm:$0xff]   ;;  %v566_v17 = vld [vmem:[%s742_s1 + $0x28] sm:$0xff]  }
   0x6   :  { %v561_v12 = vld [vmem:[%s742_s1 + $0x98] sm:$0xff]   ;;  %v564_v15 = vld [vmem:[%s742_s1 + $0xa0] sm:$0xff]   ;;  %v567_v18 = vld [vmem:[%s742_s1 + $0xa8] sm:$0xff]  }
   0x7   :  { %478 = vmatpush3.bf16.msra.mxu0 %v554_v5  ;;  %v568_v19 = vld [vmem:[%s742_s1 + $0x70] sm:$0xff]   ;;  %v571_v22 = vld [vmem:[%s742_s1 + $0x78] sm:$0xff]   ;;  %v574_v26 = vld [vmem:[%s743_s0] ss:$12 sps:$4 sm:$0xff]  }
   0x8   :  { %523 = vmatpush3.bf16.msra.mxu1 %v555_v6  ;;  %479 = vmatprep.subr.bf16.mxu0 %v556_v7  ;;  %v569_v20 = vld [vmem:[%s742_s1 + $0x30] sm:$0xff]   ;;  %v572_v24 = vld [vmem:[%s742_s1 + $0x38] sm:$0xff]   ;;  %v581_v30 = vld [vmem:[%s743_s0 + $0x20] ss:$12 sps:$4 sm:$0xff]  }
   0x9   :  { %524 = vmatprep.subr.bf16.mxu1 %v586_v1  ;;  %v570_v21 = vld [vmem:[%s742_s1 + $0xb0] sm:$0xff]   ;;  %v573_v25 = vld [vmem:[%s742_s1 + $0xb8] sm:$0xff]   ;;  %v474_v40 = vld [vmem:[%s744_s2] ss:$0 sm:$0xff] }
   0xa   :  { %v576_v23 = vld [vmem:[%s743_s0 + $0x4] ss:$12 sps:$4 sm:$0xff]   ;;  %v577_v27 = vld [vmem:[%s743_s0 + $0x8] ss:$12 sps:$4 sm:$0xff]  }
   0xb   :  { %480 = vmatpush3.bf16.msra.mxu0 %v557_v8  ;;  %315 = vmatprep.mubr.bf16.mxu0 %v576_v23  ;;  %v578_v28 = vld [vmem:[%s743_s0 + $0x1c] ss:$12 sps:$4 sm:$0xff]   ;;  %v580_v29 = vld [vmem:[%s743_s0 + $0x18] ss:$12 sps:$4 sm:$0xff]   ;;  %v582_v31 = vld [vmem:[%s743_s0 + $0x34] ss:$12 sps:$4 sm:$0xff]  }
   0xc   :  { %525 = vmatpush3.bf16.msra.mxu1 %v558_v9  ;;  %481 = vmatprep.subr.bf16.mxu0 %v559_v10  ;;  %v584_v32 = vld [vmem:[%s743_s0 + $0x30] ss:$12 sps:$4 sm:$0xff]   ;;  %v585_v33 = vld [vmem:[%s743_s0 + $0x38] ss:$12 sps:$4 sm:$0xff]  }
   0xd   :  { %526 = vmatprep.subr.bf16.mxu1 %v586_v1 }
   0xf   :  { %482 = vmatpush3.bf16.msra.mxu0 %v560_v11 }
  0x10   :  { %527 = vmatpush3.bf16.msra.mxu1 %v561_v12  ;;  %483 = vmatprep.subr.bf16.mxu0 %v562_v13 }
  0x11   :  { %528 = vmatprep.subr.bf16.mxu1 %v586_v1 }
  0x13   :  { %484 = vmatpush3.bf16.msra.mxu0 %v563_v14 }
  0x14   :  { %529 = vmatpush3.bf16.msra.mxu1 %v564_v15  ;;  %485 = vmatprep.subr.bf16.mxu0 %v565_v16 }
  0x15   :  { %530 = vmatprep.subr.bf16.mxu1 %v586_v1 }
  0x17   :  { %486 = vmatpush3.bf16.msra.mxu0 %v566_v17 }
  0x18   :  { %531 = vmatpush3.bf16.msra.mxu1 %v567_v18  ;;  %487 = vmatprep.subr.bf16.mxu0 %v568_v19 }
  0x19   :  { %532 = vmatprep.subr.bf16.mxu1 %v586_v1 }
  0x1b   :  { %488 = vmatpush3.bf16.msra.mxu0 %v569_v20 }
  0x1c   :  { %533 = vmatpush3.bf16.msra.mxu1 %v570_v21  ;;  %489 = vmatprep.subr.bf16.mxu0 %v571_v22 }
  0x1d   :  { %534 = vmatprep.subr.bf16.mxu1 %v586_v1 }
  0x1f   :  { %490 = vmatpush3.bf16.msra.mxu0 %v572_v24 }
  0x20   :  { %535 = vmatpush3.bf16.msra.mxu1 %v573_v25 }
  0x22   :  { %316 = vmatmul.mubr.bf16.vlgmr.msra.gmra.mrb[0].mxu0 %v574_v26 }
  0x23   :  { %537 = vmatmul.mubr.bf16.vlgmr.msra.gmra.mrb[0].mxu1 %v577_v27  ;;  %323 = vmatprep.mubr.bf16.mxu0 %v578_v28 }
  0x24   :  { %540 = vmatprep.mubr.msk.bf16.mxu1 %vm587_vm0, %v586_v1 }
  0x2a   :  { %324 = vmatmul.mubr.bf16.gmra.mrb[4].mxu0 %v580_v29 }
  0x2b   :  { %541 = vmatmul.mubr.bf16.gmra.mrb[4].mxu1 %v581_v30  ;;  %331 = vmatprep.mubr.bf16.mxu0 %v582_v31 }
  0x2c   :  { %544 = vmatprep.mubr.msk.bf16.mxu1 %vm587_vm0, %v586_v1 }
  0x32   :  { %332 = vmatmul.mubr.bf16.gmra.mrb[8].mxu0 %v584_v32 }
  0x33   :  { %545 = vmatmul.mubr.bf16.gmra.mrb[8].mxu1 %v585_v33 }
  0xf5   :  { %v491_v34 = vpop.f32.mrb[0].mxu0 }
  0xf6   :  { %v374_v35 = vpop.f32.mrb[0].mxu1  ;;  %v492_v36 = vpop.f32.mrb[1].mxu0 }
  0xf7   :  { %v493_v37 = vadd.f32 %v492_v36, %v491_v34  ;;  %v538_v38 = vpop.f32.mrb[1].mxu1  ;;  %v494_v39 = vpop.f32.mrb[2].mxu0 }
  0xf8   :  { %v377_v41 = vpop.f32.mrb[2].mxu1  ;;  %v495_v42 = vpop.f32.mrb[3].mxu0 }
  0xf9   :  { %v375_v43 = vadd.f32 %v493_v37, %v374_v35  ;;  %v496_v44 = vadd.f32 %v495_v42, %v494_v39  ;;  %v539_v45 = vpop.f32.mrb[3].mxu1 }
  0xfb   :  { %v425_v46 = vadd.f32 %v474_v40, %v375_v43  ;;  %v378_v47 = vadd.f32 %v496_v44, %v377_v41 }
  0xfd   :  { %431 = vst [vmem:[%s745_s3] sm:$0xff] %v425_v46  ;;  %v426_v48 = vadd.f32 %v474_v40, %v378_v47  ;;  %v497_v49 = vpop.f32.mrb[4].mxu0 }
  0xfe   :  { %v382_v50 = vpop.f32.mrb[4].mxu1  ;;  %v498_v51 = vpop.f32.mrb[5].mxu0 }
  0xff   :  { %432 = vst [vmem:[%s745_s3 + $0x8] sm:$0xff] %v426_v48  ;;  %v499_v52 = vadd.f32 %v498_v51, %v497_v49  ;;  %v542_v53 = vpop.f32.mrb[5].mxu1  ;;  %v500_v54 = vpop.f32.mrb[6].mxu0 }
 0x100   :  { %v385_v55 = vpop.f32.mrb[6].mxu1  ;;  %v501_v56 = vpop.f32.mrb[7].mxu0 }
 0x101   :  { %v383_v57 = vadd.f32 %v499_v52, %v382_v50  ;;  %v502_v58 = vadd.f32 %v501_v56, %v500_v54  ;;  %v543_v59 = vpop.f32.mrb[7].mxu1 }
 0x103   :  { %v427_v60 = vadd.f32 %v474_v40, %v383_v57  ;;  %v386_v61 = vadd.f32 %v502_v58, %v385_v55 }
 0x105   :  { %433 = vst [vmem:[%s745_s3 + $0x10] sm:$0xff] %v427_v60  ;;  %v428_v62 = vadd.f32 %v474_v40, %v386_v61  ;;  %v503_v63 = vpop.f32.mrb[8].mxu0 }
 0x106   :  { %v390_v0 = vpop.f32.mrb[8].mxu1  ;;  %v504_v1 = vpop.f32.mrb[9].mxu0 }
 0x107   :  { %434 = vst [vmem:[%s745_s3 + $0x18] sm:$0xff] %v428_v62  ;;  %v505_v2 = vadd.f32 %v504_v1, %v503_v63  ;;  %v546_v3 = vpop.f32.mrb[9].mxu1  ;;  %v506_v4 = vpop.f32.mrb[10].mxu0 }
 0x108   :  { %v393_v5 = vpop.f32.mrb[10].mxu1  ;;  %v507_v6 = vpop.f32.mrb[11].mxu0 }
 0x109   :  { %v391_v7 = vadd.f32 %v505_v2, %v390_v0  ;;  %v508_v8 = vadd.f32 %v507_v6, %v506_v4  ;;  %v547_v9 = vpop.f32.mrb[11].mxu1 }
 0x10b   :  { %v429_v10 = vadd.f32 %v474_v40, %v391_v7  ;;  %v394_v11 = vadd.f32 %v508_v8, %v393_v5 }
 0x10d   :  { %435 = vst [vmem:[%s745_s3 + $0x20] sm:$0xff] %v429_v10  ;;  %v430_v12 = vadd.f32 %v474_v40, %v394_v11 }
 0x10f   :  { %436 = vst [vmem:[%s745_s3 + $0x28] sm:$0xff] %v430_v12 }

// kernel: _lambda_.91
= control target key start
LH: loop header
LB: loop body
LE: loop exit
PB: predicated region body
PF: predicated region fallthrough
CT: control target
= control target key end

     0   :  { %v207_v0 = vmov 0.0   ;;  %vm208_vm0 = vmmov 0   ;;  %s262_s1 = inlined_call_operand.vmem [shape: bf16[128,128], index: 1, kind: input, shape index: {}]   ;;  %s263_s0 = inlined_call_operand.vmem [shape: bf16[8,128], index: 0, kind: input, shape index: {}]   ;;  %s264_s2 = inlined_call_operand.vmem [shape: f32[1,128], index: 2, kind: input, shape index: {}]   ;;  %s265_s3 = inlined_call_operand.vmem [shape: f32[8,128], index: 3, kind: output, shape index: {}]  }
   0x1   :  { %173 = vmatprep.subr.bf16.mxu0 %v207_v0  ;;  %v195_v1 = vld [vmem:[%s262_s1] sm:$0xff]   ;;  %189 = vmatprep.mubr.msk.bf16.mxu0 %vm208_vm0, %v207_v0  ;;  %v196_v2 = vld [vmem:[%s262_s1 + $0x8] sm:$0xff]   ;;  %v197_v3 = vld [vmem:[%s262_s1 + $0x10] sm:$0xff]  }
   0x2   :  { %174 = vmatpush3.bf16.msra.mxu0 %v195_v1  ;;  %v20_v4 = vld [vmem:[%s263_s0] sm:$0xf]  ;;  %v198_v6 = vld [vmem:[%s262_s1 + $0x18] sm:$0xff]   ;;  %v200_v9 = vld [vmem:[%s262_s1 + $0x28] sm:$0xff]  }
   0x3   :  { %175 = vmatprep.subr.bf16.mxu0 %v207_v0  ;;  %v21_v5 = vunpack.c.l.bf16 %v20_v4  ;;  %v199_v8 = vld [vmem:[%s262_s1 + $0x20] sm:$0xff]   ;;  %v201_v10 = vld [vmem:[%s262_s1 + $0x30] sm:$0xff]   ;;  %v202_v13 = vld [vmem:[%s262_s1 + $0x38] sm:$0xff]  }
   0x4   :  { %v163_v17 = vld [vmem:[%s264_s2] ss:$0 sm:$0xff] }
   0x5   :  { %v154_v7 = vmul.f32 -1.442695, %v21_v5 }
   0x6   :  { %176 = vmatpush3.bf16.msra.mxu0 %v196_v2 }
   0x7   :  { %177 = vmatprep.subr.bf16.mxu0 %v207_v0  ;;  %203 = vpow2.f32 %v154_v7 }
   0xa   :  { %178 = vmatpush3.bf16.msra.mxu0 %v197_v3 }
   0xb   :  { %179 = vmatprep.subr.bf16.mxu0 %v207_v0 }
   0xe   :  { %180 = vmatpush3.bf16.msra.mxu0 %v198_v6 }
   0xf   :  { %181 = vmatprep.subr.bf16.mxu0 %v207_v0 }
  0x11   :  { %v204_v11 = vpop.eup %203 }
  0x12   :  { %182 = vmatpush3.bf16.msra.mxu0 %v199_v8  ;;  %v25_v12 = vadd.f32 1.0, %v204_v11 }
  0x13   :  { %183 = vmatprep.subr.bf16.mxu0 %v207_v0 }
  0x14   :  { %205 = vrcp.f32 %v25_v12 }
  0x16   :  { %184 = vmatpush3.bf16.msra.mxu0 %v200_v9 }
  0x17   :  { %185 = vmatprep.subr.bf16.mxu0 %v207_v0 }
  0x1a   :  { %186 = vmatpush3.bf16.msra.mxu0 %v201_v10 }
  0x1b   :  { %187 = vmatprep.subr.bf16.mxu0 %v207_v0 }
  0x1e   :  { %188 = vmatpush3.bf16.msra.mxu0 %v202_v13  ;;  %v206_v14 = vpop.eup %205 }
  0x1f   :  { %v28_v15 = vmul.f32 %v206_v14, %v21_v5 }
  0x21   :  { %v29_v16 = vpack.c.bf16 %v28_v15, %v28_v15 }
  0x23   :  { %190 = vmatmul.mubr.bf16.vlgmr.msra.gmra.mrb[0].mxu0 %v29_v16 }
  0xf6   :  { %v129_v18 = vpop.f32.mrb[0].mxu0 }
  0xf7   :  { %v148_v19 = vadd.f32 %v163_v17, %v129_v18  ;;  %v191_v20 = vpop.f32.mrb[1].mxu0 }
  0xf8   :  { %v132_v21 = vpop.f32.mrb[2].mxu0 }
  0xf9   :  { %149 = vst [vmem:[%s265_s3] sm:$0xff] %v148_v19  ;;  %v192_v22 = vpop.f32.mrb[3].mxu0 }

// kernel: _lambda_.93
= control target key start
LH: loop header
LB: loop body
LE: loop exit
PB: predicated region body
PF: predicated region fallthrough
CT: control target
= control target key end

     0   :  { %s349_s0 = inlined_call_operand.vmem [shape: bf16[32,128], index: 0, kind: input, shape index: {}]   ;;  %s350_s1 = inlined_call_operand.vmem [shape: bf16[128,128], index: 1, kind: input, shape index: {}]   ;;  %s351_s2 = inlined_call_operand.vmem [shape: f32[1,128], index: 2, kind: input, shape index: {}]   ;;  %s352_s3 = inlined_call_operand.hbm [shape: f32[32,128], index: 3, kind: output, shape index: {}]  }
   0x1   :  { %v247_v0 = vld [vmem:[%s350_s1] sm:$0xff]   ;;  %v248_v1 = vld [vmem:[%s350_s1 + $0x8] sm:$0xff]   ;;  %v249_v2 = vld [vmem:[%s350_s1 + $0x10] sm:$0xff]  }
   0x2   :  { %224 = vmatprep.subr.bf16.mxu0 %v247_v0  ;;  %v250_v3 = vld [vmem:[%s350_s1 + $0x18] sm:$0xff]   ;;  %v255_v4 = vld [vmem:[%s349_s0] sm:$0xff]  }
   0x3   :  { %225 = vmatpush3.bf16.msra.mxu0 %v247_v0  ;;  %240 = vmatprep.mubr.bf16.mxu0 %v255_v4 }
   0x4   :  { %226 = vmatprep.subr.bf16.mxu0 %v248_v1 }
   0x7   :  { %227 = vmatpush3.bf16.msra.mxu0 %v248_v1 }
   0x8   :  { %228 = vmatprep.subr.bf16.mxu0 %v249_v2 }
   0x9   :  { %8 = vsyncpa [#allocation4], 0  ;;  %v251_v5 = vld [vmem:[%s350_s1 + $0x20] sm:$0xff]   ;;  %v252_v6 = vld [vmem:[%s350_s1 + $0x28] sm:$0xff]   ;;  %s281_s7 = smov [#allocation3]  }
   0xa   :  { %v253_v7 = vld [vmem:[%s350_s1 + $0x30] sm:$0xff]   ;;  %v254_v8 = vld [vmem:[%s350_s1 + $0x38] sm:$0xff]   ;;  %v256_v9 = vld [vmem:[%s349_s0 + $0x8] sm:$0xff]   ;;  %s192_s8 = sshll.u32 %s281_s7, 4  ;;  %s193_s8 = int_to_ptr.vmem [resolvable:$true] %s192_s8 }
   0xb   :  { %229 = vmatpush3.bf16.msra.mxu0 %v249_v2  ;;  %v213_v10 = vld [vmem:[%s351_s2] ss:$0 sm:$0xff]  ;;  %s257_s0 = scalar_lea.vmem %s193_s8, 512  ;;  %p262_p1 = scmp.lt.s32.totalorder %s193_s8, %s193_s8 }
   0xc   :  { %230 = vmatprep.subr.bf16.mxu0 %v250_v3  ;;  %p258_p0 = scmp.ne.s32.totalorder %s193_s8, %s257_s0  ;;  %p263_p2 = scmp.lt.s32.totalorder %s257_s0, %s257_s0 }
   0xe   :  { %p264_p3 = por %p263_p2, %p262_p1 }
   0xf   :  { %231 = vmatpush3.bf16.msra.mxu0 %v250_v3 }
  0x10   :  { %232 = vmatprep.subr.bf16.mxu0 %v251_v5  ;;  %p265_p4 = pnand %p264_p3, %p258_p0 }
  0x13   :  { %233 = vmatpush3.bf16.msra.mxu0 %v251_v5 }
  0x14   :  { %234 = vmatprep.subr.bf16.mxu0 %v252_v6 }
  0x17   :  { %235 = vmatpush3.bf16.msra.mxu0 %v252_v6 }
  0x18   :  { %236 = vmatprep.subr.bf16.mxu0 %v253_v7 }
  0x1b   :  { %237 = vmatpush3.bf16.msra.mxu0 %v253_v7 }
  0x1c   :  { %238 = vmatprep.subr.bf16.mxu0 %v254_v8 }
  0x1f   :  { %239 = vmatpush3.bf16.msra.mxu0 %v254_v8 }
  0x22   :  { %241 = vmatmul.mubr.bf16.vlgmr.msra.gmra.mrb[0].mxu0 %v256_v9 }
  0xf5   :  { %v242_v11 = vpop.f32.mrb[0].mxu0 }
  0xf6   :  { %v181_v12 = vadd.f32 %v242_v11, %v213_v10  ;;  %v142_v13 = vpop.f32.mrb[1].mxu0 }
  0xf7   :  { %v179_v14 = vadd.f32 %v213_v10, %v142_v13  ;;  %v243_v15 = vpop.f32.mrb[2].mxu0 }
  0xf8   :  { %185 = vst [vmem:[#allocation3 + $0x10] sm:$0xff] %v181_v12  ;;  %v182_v16 = vadd.f32 %v243_v15, %v213_v10  ;;  %v145_v17 = vpop.f32.mrb[3].mxu0 }
  0xf9   :  { %183 = vst [vmem:[#allocation3] sm:$0xff] %v179_v14  ;;  %v180_v18 = vadd.f32 %v213_v10, %v145_v17 }
  0xfa   :  { %186 = vst [vmem:[#allocation3 + $0x18] sm:$0xff] %v182_v16 }
  0xfb   :  { %184 = vst [vmem:[#allocation3 + $0x8] sm:$0xff] %v180_v18 }
  0xfc   :  { %268 = shalt.err (!%p265_p4)
}
  0xfd   :  { %s269_s9 = scalar_lea.hbm %s352_s3, 512 }
  0xfe   :  { %p270_p5 = scmp.ne.s32.totalorder %s352_s3, %s269_s9  ;;  %p273_p6 = scmp.lt.u32.totalorder %s269_s9, %s352_s3 }
 0x100   :  { %p275_p7 = pnand %p273_p6, %p270_p5 }
 0x102   :  { %278 = shalt.err (!%p275_p7)
}
 0x103   :  { %s282_s14 = smov 128   ;;  %s283_s15 = smov 8  }
 0x104   :  { %198 = dma.vmem_to_hbm [thread:$0]  %s193_s8, 512, %s352_s3, [#allocation4], %s282_s14, %s282_s14, %s283_s15  }
 0x105   :  { %279 = dma.done.wait [#allocation4], 512  }
 0x106   :  { %280 = vsyncadd [#allocation4], 4294966784 }
 0x107   :  { %202 = vsyncpa [#allocation4], 1 }

</bundles_post_ra>
